<compile_context>
chip_gen: v6e
topology: v6e:2x2x1
jax: 0.10.0
libtpu: 0.0.40
codegen_flags: <defaults>
</compile_context>

<pallas_src>
import jax
import jax.numpy as jnp
from jax.experimental import pallas as pl
from jax.experimental.pallas import tpu as pltpu


D_IN = 784        # 28*28
D_H = 400         # logical hidden width (nn.Linear(784, 400))
D_HP = 512        # padded hidden width (lane-dense, MXU aligned)
D_Z = 20          # latent width
D_HALF = 128      # lane offset where logvar starts in the fused head
D_HEAD = 256      # padded fused-head width: mu in [0,20), logvar in [128,148)


def _vae_kernel(x_ref, eps_ref,
                w1_ref, b1_ref,
                wh_ref, bh_ref,
                w3_ref, b3_ref,
                w4_ref, b4_ref,
                recon_ref, head_ref):
    # encode: h1 = relu(x @ W1 + b1)                       (TM, 512)
    x = x_ref[...].astype(jnp.bfloat16)                    # (TM, 784)
    h1 = jnp.dot(x, w1_ref[...], preferred_element_type=jnp.float32) + b1_ref[...]
    h1 = jnp.maximum(h1, 0.0).astype(jnp.bfloat16)

    # fused (padded) mu/logvar head: one (512, 256) matmul (TM, 256)
    head = jnp.dot(h1, wh_ref[...], preferred_element_type=jnp.float32) + bh_ref[...]
    head_ref[...] = head                                   # single lane-dense output

    mu = head[:, :D_Z]                                     # lanes [0, 20)
    logvar = head[:, D_HALF:D_HALF + D_Z]                  # 128-aligned slice

    # reparameterize: z = mu + eps * exp(0.5 * logvar)     (TM, 20)
    std = jnp.exp(0.5 * logvar)
    z = (mu + eps_ref[...] * std).astype(jnp.bfloat16)

    # decode: sigmoid(relu(z @ W3 + b3) @ W4 + b4)
    h3 = jnp.dot(z, w3_ref[...], preferred_element_type=jnp.float32) + b3_ref[...]
    h3 = jnp.maximum(h3, 0.0).astype(jnp.bfloat16)         # (TM, 512)
    logits = jnp.dot(h3, w4_ref[...], preferred_element_type=jnp.float32) + b4_ref[...]

    # sigmoid(x) = 0.5*(tanh(0.5*x) + 1): one EUP op, output strictly in (0,1)
    recon_ref[...] = 0.5 * (jnp.tanh(0.5 * logits) + 1.0)


def vae_forward(x, eps, params, *, tm=256):
    """x: (B, 1, 28, 28) float32 (NCHW).  eps: (B, 20) float32 (randn_like)."""
    B = x.shape[0]
    x_flat = x.reshape(B, D_IN)                            # x.view(-1, 784)
    (w1, b1, wh, bh, w3, b3, w4, b4) = params

    # Pick the batch tile: fill the 256-wide MXU M on v6e/v7x, but keep >= 2
    # grid steps when B > 128 so v7x's two TensorCores both get work.
    tm = min(tm, B)
    if B > 128:
        tm = min(tm, max(128, B // 2))
    if B >= 8:
        tm = max(8, (tm // 8) * 8)
    else:
        tm = B

    # Pad the batch so partial tiles never compute on undefined rows.
    Bp = pl.cdiv(B, tm) * tm
    if Bp != B:
        x_flat = jnp.pad(x_flat, ((0, Bp - B), (0, 0)))
        eps = jnp.pad(eps, ((0, Bp - B), (0, 0)))

    grid = (Bp // tm,)

    def batch_spec(feat):
        # Activation tiles stream over the batch axis.
        return pl.BlockSpec((tm, feat), lambda i: (i, 0))

    def resident_spec(arr):
        # Full-array block, constant index_map -> weights stay VMEM resident.
        nd = len(arr.shape)
        return pl.BlockSpec(arr.shape, lambda i, _nd=nd: (0,) * _nd)

    in_specs = [
        batch_spec(D_IN),          # x
        batch_spec(D_Z),           # eps
        resident_spec(w1), resident_spec(b1),
        resident_spec(wh), resident_spec(bh),
        resident_spec(w3), resident_spec(b3),
        resident_spec(w4), resident_spec(b4),
    ]
    out_specs = [batch_spec(D_IN), batch_spec(D_HEAD)]

    flops = 2 * Bp * (D_IN * D_H + D_H * 2 * D_Z + D_Z * D_H + D_H * D_IN)
    transcendentals = Bp * (D_IN + D_Z)
    weight_bytes = sum(int(a.size) * a.dtype.itemsize for a in params)
    bytes_accessed = Bp * (D_IN + D_Z + D_IN + D_HEAD) * 4 + weight_bytes

    recon, head = pl.pallas_call(
        _vae_kernel,
        out_shape=(
            jax.ShapeDtypeStruct((Bp, D_IN), jnp.float32),
            jax.ShapeDtypeStruct((Bp, D_HEAD), jnp.float32),
        ),
        grid=grid,
        in_specs=in_specs,
        out_specs=out_specs,
        compiler_params=pltpu.CompilerParams(
            dimension_semantics=("parallel",)),
        cost_estimate=pl.CostEstimate(
            flops=flops,
            transcendentals=transcendentals,
            bytes_accessed=bytes_accessed),
    )(x_flat, eps, w1, b1, wh, bh, w3, b3, w4, b4)

    recon = recon[:B]
    mu = head[:B, :D_Z]
    logvar = head[:B, D_HALF:D_HALF + D_Z]
    return recon, mu, logvar


def init_params(key):
    """nn.Linear-style init U(-1/sqrt(fan_in), +1/sqrt(fan_in)).

    Weights stored (in_features, out_features) in bfloat16, biases (1, out)
    f32.  The hidden dim is zero-padded 400 -> 512 and fc21/fc22 are fused
    into one (512, 256) head: mu in columns [0,20), logvar in [128,148).
    Zero padding is an exact no-op for the math."""
    def linear(key, fan_in, fan_out):
        kw, kb = jax.random.split(key)
        bound = 1.0 / jnp.sqrt(jnp.float32(fan_in))
        w = jax.random.uniform(kw, (fan_in, fan_out), jnp.float32, -bound, bound)
        b = jax.random.uniform(kb, (fan_out,), jnp.float32, -bound, bound)
        return w, b

    k1, k21, k22, k3, k4 = jax.random.split(key, 5)
    w1, b1 = linear(k1, D_IN, D_H)
    w21, b21 = linear(k21, D_H, D_Z)
    w22, b22 = linear(k22, D_H, D_Z)
    w3, b3 = linear(k3, D_Z, D_H)
    w4, b4 = linear(k4, D_H, D_IN)

    w1p = jnp.zeros((D_IN, D_HP), jnp.float32).at[:, :D_H].set(w1)
    b1p = jnp.zeros((1, D_HP), jnp.float32).at[0, :D_H].set(b1)

    whp = jnp.zeros((D_HP, D_HEAD), jnp.float32)
    whp = whp.at[:D_H, :D_Z].set(w21).at[:D_H, D_HALF:D_HALF + D_Z].set(w22)
    bhp = jnp.zeros((1, D_HEAD), jnp.float32)
    bhp = bhp.at[0, :D_Z].set(b21).at[0, D_HALF:D_HALF + D_Z].set(b22)

    w3p = jnp.zeros((D_Z, D_HP), jnp.float32).at[:, :D_H].set(w3)
    b3p = jnp.zeros((1, D_HP), jnp.float32).at[0, :D_H].set(b3)
    w4p = jnp.zeros((D_HP, D_IN), jnp.float32).at[:D_H, :].set(w4)
    b4p = b4.reshape(1, D_IN)

    bf = lambda a: a.astype(jnp.bfloat16)
    return (bf(w1p), b1p, bf(whp), bhp, bf(w3p), b3p, bf(w4p), b4p)


if __name__ == "__main__":
    key = jax.random.PRNGKey(0)
    k_params, k_x, k_eps = jax.random.split(key, 3)

    B = 256                                   # -> tm=128, 2 grid steps
    params = init_params(k_params)
    x = jax.random.uniform(k_x, (B, 1, 28, 28), jnp.float32)   # MNIST-like NCHW
    # TODO(synk): torch.randn_like(std) is drawn outside the kernel as `eps`.
    eps = jax.random.normal(k_eps, (B, D_Z), jnp.float32)

    recon, mu, logvar = vae_forward(x, eps, params)
    jax.block_until_ready((recon, mu, logvar))

    # Reference in plain JAX with the same bf16 (padded) weights.
    (w1, b1, wh, bh, w3, b3, w4, b4) = params
    xf = x.reshape(B, D_IN).astype(jnp.bfloat16)
    h1 = jnp.maximum(jnp.dot(xf, w1, preferred_element_type=jnp.float32) + b1, 0.0)
    head_r = jnp.dot(h1.astype(jnp.bfloat16), wh,
                     preferred_element_type=jnp.float32) + bh
    mu_r = head_r[:, :D_Z]
    lv_r = head_r[:, D_HALF:D_HALF + D_Z]
    z_r = (mu_r + eps * jnp.exp(0.5 * lv_r)).astype(jnp.bfloat16)
    h3 = jnp.maximum(jnp.dot(z_r, w3, preferred_element_type=jnp.float32) + b3, 0.0)
    logits = jnp.dot(h3.astype(jnp.bfloat16), w4,
                     preferred_element_type=jnp.float32) + b4
    rec_r = jax.nn.sigmoid(logits)

    assert recon.shape == (B, D_IN) and mu.shape == (B, D_Z) and logvar.shape == (B, D_Z)
    assert jnp.allclose(mu, mu_r, atol=2e-2), "mu mismatch"
    assert jnp.allclose(logvar, lv_r, atol=2e-2), "logvar mismatch"
    assert jnp.allclose(recon, rec_r, atol=2e-2), "recon mismatch"
    assert bool(jnp.all(jnp.isfinite(recon)))
    assert bool(jnp.all((recon >= 0.0) & (recon <= 1.0)))

    print("KERNEL_OK")
</pallas_src>

<mosaic_0001>
module attributes {stable_mosaic.version = 11 : i64} {
  func.func @_vae_kernel(%arg0: i32, %arg1: memref<128x784xf32, #tpu.memory_space<vmem>>, %arg2: memref<128x20xf32, #tpu.memory_space<vmem>>, %arg3: memref<784x512xbf16, #tpu.memory_space<vmem>>, %arg4: memref<1x512xf32, #tpu.memory_space<vmem>>, %arg5: memref<512x256xbf16, #tpu.memory_space<vmem>>, %arg6: memref<1x256xf32, #tpu.memory_space<vmem>>, %arg7: memref<20x512xbf16, #tpu.memory_space<vmem>>, %arg8: memref<1x512xf32, #tpu.memory_space<vmem>>, %arg9: memref<512x784xbf16, #tpu.memory_space<vmem>>, %arg10: memref<1x784xf32, #tpu.memory_space<vmem>>, %arg11: memref<128x784xf32, #tpu.memory_space<vmem>>, %arg12: memref<128x256xf32, #tpu.memory_space<vmem>>) attributes {dimension_semantics = [#tpu.dimension_semantics<parallel>], iteration_bounds = array<i64: 2>, scalar_prefetch = 0 : i64, scratch_operands = 0 : i64, tpu.core_type = #tpu.core_type<tc>, window_params = [{transform_indices = @transform_0, window_bounds = array<i64: 128, 784>}, {transform_indices = @transform_1, window_bounds = array<i64: 128, 20>}, {pipeline_mode = #tpu.pipeline_mode<synchronous>, transform_indices = @transform_2, window_bounds = array<i64: 784, 512>}, {pipeline_mode = #tpu.pipeline_mode<synchronous>, transform_indices = @transform_3, window_bounds = array<i64: 1, 512>}, {pipeline_mode = #tpu.pipeline_mode<synchronous>, transform_indices = @transform_4, window_bounds = array<i64: 512, 256>}, {pipeline_mode = #tpu.pipeline_mode<synchronous>, transform_indices = @transform_5, window_bounds = array<i64: 1, 256>}, {pipeline_mode = #tpu.pipeline_mode<synchronous>, transform_indices = @transform_6, window_bounds = array<i64: 20, 512>}, {pipeline_mode = #tpu.pipeline_mode<synchronous>, transform_indices = @transform_7, window_bounds = array<i64: 1, 512>}, {pipeline_mode = #tpu.pipeline_mode<synchronous>, transform_indices = @transform_8, window_bounds = array<i64: 512, 784>}, {pipeline_mode = #tpu.pipeline_mode<synchronous>, transform_indices = @transform_9, window_bounds = array<i64: 1, 784>}, {transform_indices = @transform_10, window_bounds = array<i64: 128, 784>}, {transform_indices = @transform_11, window_bounds = array<i64: 128, 256>}]} {
    %c0 = arith.constant 0 : index
    %c0_0 = arith.constant 0 : index
    %0 = vector.load %arg1[%c0, %c0_0] : memref<128x784xf32, #tpu.memory_space<vmem>>, vector<128x784xf32>
    %1 = arith.truncf %0 : vector<128x784xf32> to vector<128x784xbf16>
    %c0_1 = arith.constant 0 : index
    %c0_2 = arith.constant 0 : index
    %2 = vector.load %arg3[%c0_1, %c0_2] : memref<784x512xbf16, #tpu.memory_space<vmem>>, vector<784x512xbf16>
    %cst = arith.constant dense<0.000000e+00> : vector<128x512xf32>
    %3 = tpu.matmul %1, %2, %cst {dimension_numbers = #tpu.dot_dimension_numbers<[1], [0], [0], [1], [0, 0, 1, 1], [], []>} : vector<128x784xbf16>, vector<784x512xbf16>, vector<128x512xf32> -> vector<128x512xf32>
    %c0_3 = arith.constant 0 : index
    %c0_4 = arith.constant 0 : index
    %4 = vector.load %arg4[%c0_3, %c0_4] : memref<1x512xf32, #tpu.memory_space<vmem>>, vector<1x512xf32>
    %5 = vector.broadcast %4 : vector<1x512xf32> to vector<128x512xf32>
    %6 = arith.addf %3, %5 : vector<128x512xf32>
    %cst_5 = arith.constant 0.000000e+00 : f32
    %7 = vector.broadcast %cst_5 : f32 to vector<128x512xf32>
    %8 = arith.maximumf %6, %7 : vector<128x512xf32>
    %9 = arith.truncf %8 : vector<128x512xf32> to vector<128x512xbf16>
    %c0_6 = arith.constant 0 : index
    %c0_7 = arith.constant 0 : index
    %10 = vector.load %arg5[%c0_6, %c0_7] : memref<512x256xbf16, #tpu.memory_space<vmem>>, vector<512x256xbf16>
    %cst_8 = arith.constant dense<0.000000e+00> : vector<128x256xf32>
    %11 = tpu.matmul %9, %10, %cst_8 {dimension_numbers = #tpu.dot_dimension_numbers<[1], [0], [0], [1], [0, 0, 1, 1], [], []>} : vector<128x512xbf16>, vector<512x256xbf16>, vector<128x256xf32> -> vector<128x256xf32>
    %c0_9 = arith.constant 0 : index
    %c0_10 = arith.constant 0 : index
    %12 = vector.load %arg6[%c0_9, %c0_10] : memref<1x256xf32, #tpu.memory_space<vmem>>, vector<1x256xf32>
    %13 = vector.broadcast %12 : vector<1x256xf32> to vector<128x256xf32>
    %14 = arith.addf %11, %13 : vector<128x256xf32>
    %c0_11 = arith.constant 0 : index
    %c0_12 = arith.constant 0 : index
    %15 = vector.load %arg12[%c0_11, %c0_12] : memref<128x256xf32, #tpu.memory_space<vmem>>, vector<128x256xf32>
    tpu.vector_store %arg12[%c0_11, %c0_12], %14 {strides = array<i32>} : memref<128x256xf32, #tpu.memory_space<vmem>>, vector<128x256xf32>,
    %16 = vector.extract_strided_slice %14 {offsets = [0, 0], sizes = [128, 20], strides = [1, 1]} : vector<128x256xf32> to vector<128x20xf32>
    %17 = vector.extract_strided_slice %14 {offsets = [0, 128], sizes = [128, 20], strides = [1, 1]} : vector<128x256xf32> to vector<128x20xf32>
    %cst_13 = arith.constant 5.000000e-01 : f32
    %18 = vector.broadcast %cst_13 : f32 to vector<128x20xf32>
    %19 = arith.mulf %18, %17 : vector<128x20xf32>
    %20 = math.exp %19 : vector<128x20xf32>
    %c0_14 = arith.constant 0 : index
    %c0_15 = arith.constant 0 : index
    %21 = vector.load %arg2[%c0_14, %c0_15] : memref<128x20xf32, #tpu.memory_space<vmem>>, vector<128x20xf32>
    %22 = arith.mulf %21, %20 : vector<128x20xf32>
    %23 = arith.addf %16, %22 : vector<128x20xf32>
    %24 = arith.truncf %23 : vector<128x20xf32> to vector<128x20xbf16>
    %c0_16 = arith.constant 0 : index
    %c0_17 = arith.constant 0 : index
    %25 = vector.load %arg7[%c0_16, %c0_17] : memref<20x512xbf16, #tpu.memory_space<vmem>>, vector<20x512xbf16>
    %cst_18 = arith.constant dense<0.000000e+00> : vector<128x512xf32>
    %26 = tpu.matmul %24, %25, %cst_18 {dimension_numbers = #tpu.dot_dimension_numbers<[1], [0], [0], [1], [0, 0, 1, 1], [], []>} : vector<128x20xbf16>, vector<20x512xbf16>, vector<128x512xf32> -> vector<128x512xf32>
    %c0_19 = arith.constant 0 : index
    %c0_20 = arith.constant 0 : index
    %27 = vector.load %arg8[%c0_19, %c0_20] : memref<1x512xf32, #tpu.memory_space<vmem>>, vector<1x512xf32>
    %28 = vector.broadcast %27 : vector<1x512xf32> to vector<128x512xf32>
    %29 = arith.addf %26, %28 : vector<128x512xf32>
    %cst_21 = arith.constant 0.000000e+00 : f32
    %30 = vector.broadcast %cst_21 : f32 to vector<128x512xf32>
    %31 = arith.maximumf %29, %30 : vector<128x512xf32>
    %32 = arith.truncf %31 : vector<128x512xf32> to vector<128x512xbf16>
    %c0_22 = arith.constant 0 : index
    %c0_23 = arith.constant 0 : index
    %33 = vector.load %arg9[%c0_22, %c0_23] : memref<512x784xbf16, #tpu.memory_space<vmem>>, vector<512x784xbf16>
    %cst_24 = arith.constant dense<0.000000e+00> : vector<128x784xf32>
    %34 = tpu.matmul %32, %33, %cst_24 {dimension_numbers = #tpu.dot_dimension_numbers<[1], [0], [0], [1], [0, 0, 1, 1], [], []>} : vector<128x512xbf16>, vector<512x784xbf16>, vector<128x784xf32> -> vector<128x784xf32>
    %c0_25 = arith.constant 0 : index
    %c0_26 = arith.constant 0 : index
    %35 = vector.load %arg10[%c0_25, %c0_26] : memref<1x784xf32, #tpu.memory_space<vmem>>, vector<1x784xf32>
    %36 = vector.broadcast %35 : vector<1x784xf32> to vector<128x784xf32>
    %37 = arith.addf %34, %36 : vector<128x784xf32>
    %cst_27 = arith.constant 5.000000e-01 : f32
    %38 = vector.broadcast %cst_27 : f32 to vector<128x784xf32>
    %39 = arith.mulf %38, %37 : vector<128x784xf32>
    %40 = math.tanh %39 : vector<128x784xf32>
    %cst_28 = arith.constant 1.000000e+00 : f32
    %41 = vector.broadcast %cst_28 : f32 to vector<128x784xf32>
    %42 = arith.addf %40, %41 : vector<128x784xf32>
    %cst_29 = arith.constant 5.000000e-01 : f32
    %43 = vector.broadcast %cst_29 : f32 to vector<128x784xf32>
    %44 = arith.mulf %43, %42 : vector<128x784xf32>
    %c0_30 = arith.constant 0 : index
    %c0_31 = arith.constant 0 : index
    %45 = vector.load %arg11[%c0_30, %c0_31] : memref<128x784xf32, #tpu.memory_space<vmem>>, vector<128x784xf32>
    tpu.vector_store %arg11[%c0_30, %c0_31], %44 {strides = array<i32>} : memref<128x784xf32, #tpu.memory_space<vmem>>, vector<128x784xf32>,
    return
  }
  func.func @transform_0(%arg0: i32) -> (i32, i32) {
    %c0_i32 = arith.constant 0 : i32
    %c0_i32_0 = arith.constant 0 : i32
    return %arg0, %c0_i32 : i32, i32
  }
  func.func @transform_1(%arg0: i32) -> (i32, i32) {
    %c0_i32 = arith.constant 0 : i32
    %c0_i32_0 = arith.constant 0 : i32
    return %arg0, %c0_i32 : i32, i32
  }
  func.func @transform_2(%arg0: i32) -> (i32, i32) {
    %c0_i32 = arith.constant 0 : i32
    %c0_i32_0 = arith.constant 0 : i32
    %c0_i32_1 = arith.constant 0 : i32
    return %c0_i32, %c0_i32_0 : i32, i32
  }
  func.func @transform_3(%arg0: i32) -> (i32, i32) {
    %c0_i32 = arith.constant 0 : i32
    %c0_i32_0 = arith.constant 0 : i32
    %c0_i32_1 = arith.constant 0 : i32
    return %c0_i32, %c0_i32_0 : i32, i32
  }
  func.func @transform_4(%arg0: i32) -> (i32, i32) {
    %c0_i32 = arith.constant 0 : i32
    %c0_i32_0 = arith.constant 0 : i32
    %c0_i32_1 = arith.constant 0 : i32
    return %c0_i32, %c0_i32_0 : i32, i32
  }
  func.func @transform_5(%arg0: i32) -> (i32, i32) {
    %c0_i32 = arith.constant 0 : i32
    %c0_i32_0 = arith.constant 0 : i32
    %c0_i32_1 = arith.constant 0 : i32
    return %c0_i32, %c0_i32_0 : i32, i32
  }
  func.func @transform_6(%arg0: i32) -> (i32, i32) {
    %c0_i32 = arith.constant 0 : i32
    %c0_i32_0 = arith.constant 0 : i32
    %c0_i32_1 = arith.constant 0 : i32
    return %c0_i32, %c0_i32_0 : i32, i32
  }
  func.func @transform_7(%arg0: i32) -> (i32, i32) {
    %c0_i32 = arith.constant 0 : i32
    %c0_i32_0 = arith.constant 0 : i32
    %c0_i32_1 = arith.constant 0 : i32
    return %c0_i32, %c0_i32_0 : i32, i32
  }
  func.func @transform_8(%arg0: i32) -> (i32, i32) {
    %c0_i32 = arith.constant 0 : i32
    %c0_i32_0 = arith.constant 0 : i32
    %c0_i32_1 = arith.constant 0 : i32
    return %c0_i32, %c0_i32_0 : i32, i32
  }
  func.func @transform_9(%arg0: i32) -> (i32, i32) {
    %c0_i32 = arith.constant 0 : i32
    %c0_i32_0 = arith.constant 0 : i32
    %c0_i32_1 = arith.constant 0 : i32
    return %c0_i32, %c0_i32_0 : i32, i32
  }
  func.func @transform_10(%arg0: i32) -> (i32, i32) {
    %c0_i32 = arith.constant 0 : i32
    %c0_i32_0 = arith.constant 0 : i32
    return %arg0, %c0_i32 : i32, i32
  }
  func.func @transform_11(%arg0: i32) -> (i32, i32) {
    %c0_i32 = arith.constant 0 : i32
    %c0_i32_0 = arith.constant 0 : i32
    return %arg0, %c0_i32 : i32, i32
  }
}

</mosaic_0001>

<bundles_post_ra>
// kernel: tpu_custom_call.1
= control target key start
LH: loop header
LB: loop body
LE: loop exit
PB: predicated region body
PF: predicated region fallthrough
CT: control target
= control target key end

     0   :  { %17 = vsyncpa [#allocation3], 0  ;;  %s11961_s0 = inlined_call_operand.vmem [shape: f32[256,784], index: 0, kind: input, shape index: {}]   ;;  %s11962_s1 = inlined_call_operand.vmem [shape: f32[256,20], index: 1, kind: input, shape index: {}]   ;;  %s11963_s2 = inlined_call_operand.vmem [shape: bf16[784,512], index: 2, kind: input, shape index: {}]   ;;  %s11964_s3 = inlined_call_operand.vmem [shape: f32[1,512], index: 3, kind: input, shape index: {}]   ;;  %s11965_s4 = inlined_call_operand.vmem [shape: bf16[512,256], index: 4, kind: input, shape index: {}]   ;;  %s11966_s5 = inlined_call_operand.vmem [shape: f32[1,256], index: 5, kind: input, shape index: {}]   ;;  %s11967_s6 = inlined_call_operand.vmem [shape: bf16[20,512], index: 6, kind: input, shape index: {}]   ;;  %s11968_s7 = inlined_call_operand.vmem [shape: f32[1,512], index: 7, kind: input, shape index: {}]   ;;  %s11969_s8 = inlined_call_operand.vmem [shape: bf16[512,784], index: 8, kind: input, shape index: {}]   ;;  %s11970_s9 = inlined_call_operand.vmem [shape: f32[1,784], index: 9, kind: input, shape index: {}]   ;;  %s11971_s10 = inlined_call_operand.vmem [shape: f32[256,784], index: 10, kind: output, shape index: {0}]   ;;  %s11972_s11 = inlined_call_operand.hbm [shape: f32[256,256], index: 11, kind: output, shape index: {1}]  }
   0x1   :  { %19 = vsyncpa [#allocation3 + $0x1], 0  ;;  %s8819_s17 = smov 0   ;;  %s8821_s18 = smov 0  }
   0x2   :  { %s8823_s19 = smov 0   ;;  %s8825_s20 = smov 0  }
   0x3 LB: > { %11995 = sst [smem:[#allocation5_spill]] %s8749_s19  ;;  %s8840_s21 = sadd.s32 4294967295, %s8753_s20   ;;  %s8753_s20 = sphi %s8825_s20, %s12050_s20   ;;  %s8749_s19 = sphi %s8823_s19, %s12047_s19   ;;  %s8745_s18 = sphi %s8821_s18, %s12049_s18   ;;  %s8741_s17 = sphi %s8819_s17, %s12048_s17  }
   0x4   : > { %s6999_s22 = sadd.s32 4294967294, %s8753_s20   ;;  %s8844_s23 = sadd.s32 1, %s8753_s20  }
   0x5   : > { %s278_s24 = sadd.s32 1, %s8749_s19  ;;  %s275_s25 = ssub.s32 %s8753_s20, %s8844_s23 }
   0x6   : > { %p288_p0 = scmp.ne.s32.totalorder %s8749_s19, %s8745_s18  ;;  %p276_p1 = scmp.eq.s32.totalorder %s275_s25, 0 }
   0x7   : > { %p289_p2 = scmp.eq.s32.totalorder %s8840_s21, 1  ;;  %p294_p3 = scmp.ne.s32.totalorder %s8745_s18, %s8741_s17 }
   0x8   : > { %p295_p4 = scmp.eq.s32.totalorder %s6999_s22, 1  ;;  %p7002_p7 = scmp.ge.s32.totalorder %s8753_s20, 1 }
   0x9   : > { %s8855_s26 = scalar_select %p276_p1, %s8749_s19, %s278_s24  }
   0xa   : > { %p8857_p5 = por %p289_p2, %p288_p0  ;;  %p8861_p6 = por %p295_p4, %p294_p3 }
   0xb   : > { %11996 = sst [smem:[#allocation6_spill]] %s8855_s26  ;;  %p356_p8 = scmp.lt.s32.totalorder %s8753_s20, 3 }
   0xd   : > { %p357_p9 = pnand %p7002_p7, %p356_p8 }
   0xf   : > { %360 = sbr.rel (%p357_p9) target bundleno = 1402 (0x57a), region = 60 }
  0x14   : > { %v7715_v0 = vld [vmem:[%s11963_s2 + $0xe4] ss:$16 sps:$4 sm:$0xff]   ;;  %v7719_v2 = vld [vmem:[%s11963_s2 + $0xe0] ss:$16 sps:$4 sm:$0xff]   ;;  %s7004_s24 = sshll.u32 %s8840_s21, 4  ;;  %vm1796_vm0 = vcmask 130048  }
  0x15   : > { %v7717_v1 = vld [vmem:[%s11963_s2 + $0x2e4] ss:$16 sps:$4 sm:$0xff]   ;;  %1821 = vmatprep.subr.bf16.mxu0 %v7715_v0  ;;  %v7720_v3 = vld [vmem:[%s11963_s2 + $0x2e0] ss:$16 sps:$4 sm:$0xff]   ;;  %p409_p10 = scmp.lt.s32.totalorder %s7004_s24, 31  ;;  %vm3662_vm1 = vcmask 1041408  }
  0x16   : > { %1934 = vmatprep.subr.bf16.mxu1 %v7717_v1  ;;  %v7721_v4 = vld [vmem:[%s11963_s2 + $0xc4] ss:$16 sps:$4 sm:$0xff]   ;;  %1822 = vmatpush1.bf16.msra.mxu0 %v7719_v2  ;;  %v7725_v6 = vld [vmem:[%s11963_s2 + $0xc0] ss:$16 sps:$4 sm:$0xff]   ;;  %s11994_s15 = sand.u32 1, %s8745_s18   ;;  %vm3637_vm2 = vcmask 162816  }
  0x17   : > { %1935 = vmatpush1.bf16.msra.mxu1 %v7720_v3  ;;  %v7723_v5 = vld [vmem:[%s11963_s2 + $0x2c4] ss:$16 sps:$4 sm:$0xff]   ;;  %1823 = vmatprep.subr.bf16.mxu0 %v7721_v4  ;;  %v7726_v7 = vld [vmem:[%s11963_s2 + $0x2c0] ss:$16 sps:$4 sm:$0xff]   ;;  %s12052_s24 = smov (!%p409_p10, %s7004_s24), 31  ;;  %s7003_s19 = sshll.u32 %s11994_s15, 8 }
  0x18   : > { %1936 = vmatprep.subr.bf16.mxu1 %v7723_v5  ;;  %v7727_v8 = vld [vmem:[%s11963_s2 + $0xa4] ss:$16 sps:$4 sm:$0xff]   ;;  %v7731_v10 = vld [vmem:[%s11963_s2 + $0xa0] ss:$16 sps:$4 sm:$0xff]   ;;  %s11999_s29 = smul.u32 56, %s12052_s24  ;;  %s10473_s16 = scalar_lea.vmem [#allocation2], %s7003_s19 }
  0x19   : > { %v7729_v9 = vld [vmem:[%s11963_s2 + $0x2a4] ss:$16 sps:$4 sm:$0xff]   ;;  %v7732_v11 = vld [vmem:[%s11963_s2 + $0x2a0] ss:$16 sps:$4 sm:$0xff]   ;;  %s12043_s15 = smul.u32 56, %s12052_s24  ;;  %s7543_s22 = sshll.u32 %s8840_s21, 12 }
  0x1a   : > { %1824 = vmatpush1.bf16.msra.mxu0 %v7725_v6  ;;  %v7733_v12 = vld [vmem:[%s11963_s2 + $0x84] ss:$16 sps:$4 sm:$0xff]   ;;  %v7737_v14 = vld [vmem:[%s11963_s2 + $0x80] ss:$16 sps:$4 sm:$0xff]   ;;  %s9008_s12 = scalar_lea.vmem %s11961_s0, %s11999_s29  ;;  %s6899_s25 = sshll.u32 %s10473_s16, 4  ;;  %s11815_s25 = int_to_ptr.vmem [resolvable:$true] %s6899_s25 }
  0x1b   : > { %1937 = vmatpush1.bf16.msra.mxu1 %v7726_v7  ;;  %1825 = vmatprep.subr.bf16.mxu0 %v7727_v8  ;;  %v7735_v13 = vld [vmem:[%s11963_s2 + $0x284] ss:$16 sps:$4 sm:$0xff]   ;;  %v7738_v15 = vld [vmem:[%s11963_s2 + $0x280] ss:$16 sps:$4 sm:$0xff]   ;;  %v431_v46 = vld [vmem:[%s9008_s12 + $0x8] sm:$0xff]  ;;  %s11635_s19 = scalar_lea.vmem %s11971_s10, %s12043_s15  ;;  %s11812_s14 = scalar_lea.hbm %s11972_s11, %s7543_s22 }
  0x1c   : > { %1938 = vmatprep.subr.bf16.mxu1 %v7729_v9  ;;  %v7739_v16 = vld [vmem:[%s11963_s2 + $0x64] ss:$16 sps:$4 sm:$0xff]   ;;  %v7743_v18 = vld [vmem:[%s11963_s2 + $0x60] ss:$16 sps:$4 sm:$0xff]   ;;  %v433_v48 = vld [vmem:[%s9008_s12 + $0x18] sm:$0xff]  ;;  %s12045_s21 = sand.u32 1, %s8745_s18  }
  0x1d   : > { %v7741_v17 = vld [vmem:[%s11963_s2 + $0x264] ss:$16 sps:$4 sm:$0xff]   ;;  %v7744_v19 = vld [vmem:[%s11963_s2 + $0x260] ss:$16 sps:$4 sm:$0xff]   ;;  %v437_v7 = vld [vmem:[%s9008_s12 + $0x38] sm:$0xff]  ;;  %s8693_s15 = scalar_lea.vmem %s11815_s25, 4096 }
  0x1e   : > { %1826 = vmatpush1.bf16.msra.mxu0 %v7731_v10  ;;  %v7745_v20 = vld [vmem:[%s11963_s2 + $0x44] ss:$16 sps:$4 sm:$0xff]   ;;  %v7749_v22 = vld [vmem:[%s11963_s2 + $0x40] ss:$16 sps:$4 sm:$0xff]   ;;  %v439_v9 = vld [vmem:[%s9008_s12 + $0x48] sm:$0xff]  ;;  %p8694_p11 = scmp.ne.s32.totalorder %s11815_s25, %s8693_s15  ;;  %s8756_s26 = smov [#allocation2]  }
  0x1f   : > { %1939 = vmatpush1.bf16.msra.mxu1 %v7732_v11  ;;  %1827 = vmatprep.subr.bf16.mxu0 %v7733_v12  ;;  %v7747_v21 = vld [vmem:[%s11963_s2 + $0x244] ss:$16 sps:$4 sm:$0xff]   ;;  %v7750_v23 = vld [vmem:[%s11963_s2 + $0x240] ss:$16 sps:$4 sm:$0xff]  }
  0x20   : > { %1940 = vmatprep.subr.bf16.mxu1 %v7735_v13  ;;  %v7751_v24 = vld [vmem:[%s11963_s2 + $0x24] ss:$16 sps:$4 sm:$0xff]   ;;  %v7755_v26 = vld [vmem:[%s11963_s2 + $0x20] ss:$16 sps:$4 sm:$0xff]   ;;  %v445_v13 = vld [vmem:[%s9008_s12 + $0x78] sm:$0xff]  ;;  %p8695_p12 = pnand %p8694_p11, %p8857_p5 }
  0x21   : > { %v7753_v25 = vld [vmem:[%s11963_s2 + $0x224] ss:$16 sps:$4 sm:$0xff]   ;;  %v7756_v27 = vld [vmem:[%s11963_s2 + $0x220] ss:$16 sps:$4 sm:$0xff]  }
  0x22   : > { %1828 = vmatpush1.bf16.msra.mxu0 %v7737_v14  ;;  %v7757_v28 = vld [vmem:[%s11963_s2 + $0x4] ss:$16 sps:$4 sm:$0xff]   ;;  %v7761_v30 = vld [vmem:[%s11963_s2] ss:$16 sps:$4 sm:$0xff]   ;;  %p8696_p13 = pneg %p8695_p12 }
  0x23   : > { %1941 = vmatpush1.bf16.msra.mxu1 %v7738_v15  ;;  %1829 = vmatprep.subr.bf16.mxu0 %v7739_v16  ;;  %v7759_v29 = vld [vmem:[%s11963_s2 + $0x204] ss:$16 sps:$4 sm:$0xff]   ;;  %v7762_v31 = vld [vmem:[%s11963_s2 + $0x200] ss:$16 sps:$4 sm:$0xff]  }
  0x24   : > { %1942 = vmatprep.subr.bf16.mxu1 %v7741_v17  ;;  %v7763_v32 = vld [vmem:[%s11963_s2 + $0x1e4] ss:$16 sps:$4 sm:$0xff]   ;;  %v7767_v34 = vld [vmem:[%s11963_s2 + $0x1e0] ss:$16 sps:$4 sm:$0xff]   ;;  %v447_v17 = vld [vmem:[%s9008_s12 + $0x88] sm:$0xff] }
  0x25   : > { %v7765_v33 = vld [vmem:[%s11963_s2 + $0x3e4] ss:$16 sps:$4 sm:$0xff]   ;;  %v7768_v35 = vld [vmem:[%s11963_s2 + $0x3e0] ss:$16 sps:$4 sm:$0xff]  }
  0x26   : > { %1830 = vmatpush1.bf16.msra.mxu0 %v7743_v18  ;;  %v7769_v36 = vld [vmem:[%s11963_s2 + $0x1c4] ss:$16 sps:$4 sm:$0xff]   ;;  %v7773_v38 = vld [vmem:[%s11963_s2 + $0x1c0] ss:$16 sps:$4 sm:$0xff]  }
  0x27   : > { %1943 = vmatpush1.bf16.msra.mxu1 %v7744_v19  ;;  %1831 = vmatprep.subr.bf16.mxu0 %v7745_v20  ;;  %v7771_v37 = vld [vmem:[%s11963_s2 + $0x3c4] ss:$16 sps:$4 sm:$0xff]   ;;  %v7774_v39 = vld [vmem:[%s11963_s2 + $0x3c0] ss:$16 sps:$4 sm:$0xff]  }
  0x28   : > { %1944 = vmatprep.subr.bf16.mxu1 %v7747_v21  ;;  %v7775_v40 = vld [vmem:[%s11963_s2 + $0x1a4] ss:$16 sps:$4 sm:$0xff]   ;;  %v7779_v42 = vld [vmem:[%s11963_s2 + $0x1a0] ss:$16 sps:$4 sm:$0xff]  }
  0x29   : > { %v7777_v41 = vld [vmem:[%s11963_s2 + $0x3a4] ss:$16 sps:$4 sm:$0xff]   ;;  %v7780_v43 = vld [vmem:[%s11963_s2 + $0x3a0] ss:$16 sps:$4 sm:$0xff]  }
  0x2a   : > { %1832 = vmatpush1.bf16.msra.mxu0 %v7749_v22  ;;  %v7781_v44 = vld [vmem:[%s11963_s2 + $0x184] ss:$16 sps:$4 sm:$0xff]   ;;  %v7785_v50 = vld [vmem:[%s11963_s2 + $0x180] ss:$16 sps:$4 sm:$0xff]  }
  0x2b   : > { %1945 = vmatpush1.bf16.msra.mxu1 %v7750_v23  ;;  %1833 = vmatprep.subr.bf16.mxu0 %v7751_v24  ;;  %v7783_v45 = vld [vmem:[%s11963_s2 + $0x384] ss:$16 sps:$4 sm:$0xff]   ;;  %v7786_v51 = vld [vmem:[%s11963_s2 + $0x380] ss:$16 sps:$4 sm:$0xff]  }
  0x2c   : > { %1946 = vmatprep.subr.bf16.mxu1 %v7753_v25  ;;  %v438_v47 = vld [vmem:[%s9008_s12 + $0x40] sm:$0xff]  ;;  %v440_v49 = vld [vmem:[%s9008_s12 + $0x50] sm:$0xff]  ;;  %v451_v25 = vld [vmem:[%s9008_s12 + $0xa8] sm:$0xff] }
  0x2d   : > { %v7787_v52 = vld [vmem:[%s11963_s2 + $0x164] ss:$16 sps:$4 sm:$0xff]   ;;  %v9029_v53 = vpack.c.bf16 %v438_v47, %v431_v46  ;;  %v9031_v54 = vpack.c.bf16 %v440_v49, %v433_v48  ;;  %v7791_v56 = vld [vmem:[%s11963_s2 + $0x160] ss:$16 sps:$4 sm:$0xff]   ;;  %v475_v47 = vld [vmem:[%s9008_s12 + $0x168] sm:$0xff] }
  0x2e   : > { %1834 = vmatpush1.bf16.msra.mxu0 %v7755_v26  ;;  %v7789_v55 = vld [vmem:[%s11963_s2 + $0x364] ss:$16 sps:$4 sm:$0xff]   ;;  %v7792_v57 = vld [vmem:[%s11963_s2 + $0x360] ss:$16 sps:$4 sm:$0xff]  }
  0x2f   : > { %1947 = vmatpush1.bf16.msra.mxu1 %v7756_v27  ;;  %1835 = vmatprep.subr.bf16.mxu0 %v7757_v28  ;;  %v7793_v58 = vld [vmem:[%s11963_s2 + $0x144] ss:$16 sps:$4 sm:$0xff]   ;;  %v7797_v60 = vld [vmem:[%s11963_s2 + $0x140] ss:$16 sps:$4 sm:$0xff]   ;;  %v453_v27 = vld [vmem:[%s9008_s12 + $0xb8] sm:$0xff] }
  0x30   : > { %1948 = vmatprep.subr.bf16.mxu1 %v7759_v29  ;;  %1853 = vmatprep.mubr.bf16.mxu0 %v9029_v53  ;;  %v7795_v59 = vld [vmem:[%s11963_s2 + $0x344] ss:$16 sps:$4 sm:$0xff]   ;;  %v7798_v61 = vld [vmem:[%s11963_s2 + $0x340] ss:$16 sps:$4 sm:$0xff]   ;;  %v459_v29 = vld [vmem:[%s9008_s12 + $0xe8] sm:$0xff] }
  0x31   : > { %1966 = vmatprep.mubr.bf16.mxu1 %v9031_v54  ;;  %v7799_v62 = vld [vmem:[%s11963_s2 + $0x124] ss:$16 sps:$4 sm:$0xff]   ;;  %v7803_v0 = vld [vmem:[%s11963_s2 + $0x120] ss:$16 sps:$4 sm:$0xff]  }
  0x32   : > { %1836 = vmatpush1.bf16.msra.mxu0 %v7761_v30  ;;  %v7801_v63 = vld [vmem:[%s11963_s2 + $0x324] ss:$16 sps:$4 sm:$0xff]   ;;  %v7804_v1 = vld [vmem:[%s11963_s2 + $0x320] ss:$16 sps:$4 sm:$0xff]  }
  0x33   : > { %1949 = vmatpush1.bf16.msra.mxu1 %v7762_v31  ;;  %1837 = vmatprep.subr.bf16.mxu0 %v7763_v32  ;;  %v7805_v2 = vld [vmem:[%s11963_s2 + $0x104] ss:$16 sps:$4 sm:$0xff]   ;;  %v7809_v4 = vld [vmem:[%s11963_s2 + $0x100] ss:$16 sps:$4 sm:$0xff]   ;;  %v461_v31 = vld [vmem:[%s9008_s12 + $0xf8] sm:$0xff] }
  0x34   : > { %1950 = vmatprep.subr.bf16.mxu1 %v7765_v33  ;;  %v7807_v3 = vld [vmem:[%s11963_s2 + $0x304] ss:$16 sps:$4 sm:$0xff]   ;;  %v7810_v5 = vld [vmem:[%s11963_s2 + $0x300] ss:$16 sps:$4 sm:$0xff]  }
  0x35   : > { %v430_v6 = vld [vmem:[%s9008_s12] sm:$0xff]  ;;  %v432_v8 = vld [vmem:[%s9008_s12 + $0x10] sm:$0xff] }
  0x36   : > { %1838 = vmatpush2.bf16.msra.mxu0 %v7767_v34  ;;  %v7813_v10 = vld [vmem:[%s11963_s2 + $0x4e4] ss:$16 sps:$4 sm:$0xff]   ;;  %v7811_v12 = vld [vmem:[%s11963_s2 + $0x4e0] ss:$16 sps:$4 sm:$0xff]   ;;  %v9095_v15 = vpack.c.bf16 %v437_v7, %v430_v6  ;;  %v9097_v16 = vpack.c.bf16 %v439_v9, %v432_v8 }
  0x37   : > { %1951 = vmatpush2.bf16.msra.mxu1 %v7768_v35  ;;  %1839 = vmatprep.subr.bf16.mxu0 %v7769_v36  ;;  %v7816_v11 = vld [vmem:[%s11963_s2 + $0x604] ss:$16 sps:$4 sm:$0xff]   ;;  %v7814_v19 = vld [vmem:[%s11963_s2 + $0x600] ss:$16 sps:$4 sm:$0xff]  }
  0x38   : > { %1952 = vmatprep.subr.bf16.mxu1 %v7771_v37  ;;  %v452_v14 = vld [vmem:[%s9008_s12 + $0xb0] sm:$0xff]  ;;  %v454_v18 = vld [vmem:[%s9008_s12 + $0xc0] sm:$0xff] }
  0x39   : > { %v7819_v20 = vld [vmem:[%s11963_s2 + $0x4c4] ss:$16 sps:$4 sm:$0xff]   ;;  %v9107_v21 = vpack.c.bf16 %v452_v14, %v445_v13  ;;  %v7817_v22 = vld [vmem:[%s11963_s2 + $0x4c0] ss:$16 sps:$4 sm:$0xff]   ;;  %v9112_v23 = vpack.c.bf16 %v454_v18, %v447_v17  ;;  %v7867_v13 = vld [vmem:[%s11963_s2 + $0x2ec] ss:$16 sps:$4 sm:$0xff]  }
  0x3a   : > { %1840 = vmatpush2.bf16.msra.mxu0 %v7773_v38  ;;  %v444_v24 = vld [vmem:[%s9008_s12 + $0x70] sm:$0xff]  ;;  %v446_v26 = vld [vmem:[%s9008_s12 + $0x80] sm:$0xff]  ;;  %v495_v14 = vld [vmem:[%s9008_s12 + $0x208] sm:$0xff] }
  0x3b   : > { %1953 = vmatpush2.bf16.msra.mxu1 %v7774_v39  ;;  %1841 = vmatprep.subr.bf16.mxu0 %v7775_v40  ;;  %v7822_v28 = vld [vmem:[%s11963_s2 + $0x4a4] ss:$16 sps:$4 sm:$0xff]   ;;  %v9129_v33 = vpack.c.bf16 %v451_v25, %v444_v24  ;;  %v9131_v34 = vpack.c.bf16 %v453_v27, %v446_v26  ;;  %v7820_v35 = vld [vmem:[%s11963_s2 + $0x4a0] ss:$16 sps:$4 sm:$0xff]   ;;  %v501_v18 = vld [vmem:[%s9008_s12 + $0x238] sm:$0xff] }
  0x3c   : > { %1954 = vmatprep.subr.bf16.mxu1 %v7777_v41  ;;  %v466_v30 = vld [vmem:[%s9008_s12 + $0x120] sm:$0xff]  ;;  %v468_v32 = vld [vmem:[%s9008_s12 + $0x130] sm:$0xff]  ;;  %v465_v41 = vld [vmem:[%s9008_s12 + $0x118] sm:$0xff] }
  0x3d   : > { %v9136_v36 = vpack.c.bf16 %v466_v30, %v459_v29  ;;  %v7825_v37 = vld [vmem:[%s11963_s2 + $0x484] ss:$16 sps:$4 sm:$0xff]   ;;  %v9141_v38 = vpack.c.bf16 %v468_v32, %v461_v31  ;;  %v7823_v39 = vld [vmem:[%s11963_s2 + $0x480] ss:$16 sps:$4 sm:$0xff]   ;;  %v507_v32 = vld [vmem:[%s9008_s12 + $0x268] sm:$0xff] }
  0x3e   : > { %1842 = vmatpush2.bf16.msra.mxu0 %v7779_v42  ;;  %v458_v40 = vld [vmem:[%s9008_s12 + $0xe0] sm:$0xff]  ;;  %v460_v42 = vld [vmem:[%s9008_s12 + $0xf0] sm:$0xff] }
  0x3f   : > { %1955 = vmatpush2.bf16.msra.mxu1 %v7780_v43  ;;  %1843 = vmatprep.subr.bf16.mxu0 %v7781_v44  ;;  %v467_v43 = vld [vmem:[%s9008_s12 + $0x128] sm:$0xff]  ;;  %v7828_v44 = vld [vmem:[%s11963_s2 + $0x464] ss:$16 sps:$4 sm:$0xff]   ;;  %v9161_v49 = vpack.c.bf16 %v465_v41, %v458_v40  ;;  %v7835_v9 = vld [vmem:[%s11963_s2 + $0x400] ss:$16 sps:$4 sm:$0xff]  }
  0x40   : > { %1956 = vmatprep.subr.bf16.mxu1 %v7783_v45  ;;  %v473_v45 = vld [vmem:[%s9008_s12 + $0x158] sm:$0xff]  ;;  %v480_v46 = vld [vmem:[%s9008_s12 + $0x190] sm:$0xff]  ;;  %v482_v48 = vld [vmem:[%s9008_s12 + $0x1a0] sm:$0xff] }
  0x41   : > { %v7837_v7 = vld [vmem:[%s11963_s2 + $0x404] ss:$16 sps:$4 sm:$0xff]   ;;  %v7838_v26 = vld [vmem:[%s11963_s2 + $0x5e0] ss:$16 sps:$4 sm:$0xff]   ;;  %v515_v40 = vld [vmem:[%s9008_s12 + $0x2a8] sm:$0xff] }
  0x42   : > { %1844 = vmatpush2.bf16.msra.mxu0 %v7785_v50  ;;  %v9163_v50 = vpack.c.bf16 %v467_v43, %v460_v42  ;;  %v7840_v17 = vld [vmem:[%s11963_s2 + $0x5e4] ss:$16 sps:$4 sm:$0xff]   ;;  %v7841_v30 = vld [vmem:[%s11963_s2 + $0x5c0] ss:$16 sps:$4 sm:$0xff]   ;;  %v517_v42 = vld [vmem:[%s9008_s12 + $0x2b8] sm:$0xff] }
  0x43   : > { %1957 = vmatpush2.bf16.msra.mxu1 %v7786_v51  ;;  %1845 = vmatprep.subr.bf16.mxu0 %v7787_v52  ;;  %v7826_v51 = vld [vmem:[%s11963_s2 + $0x460] ss:$16 sps:$4 sm:$0xff]   ;;  %v9168_v52 = vpack.c.bf16 %v480_v46, %v473_v45 }
  0x44   : > { %1958 = vmatprep.subr.bf16.mxu1 %v7789_v55  ;;  %v7831_v55 = vld [vmem:[%s11963_s2 + $0x444] ss:$16 sps:$4 sm:$0xff]   ;;  %v7844_v46 = vld [vmem:[%s11963_s2 + $0x5a0] ss:$16 sps:$4 sm:$0xff]  }
  0x45   : > { %v500_v31 = vld [vmem:[%s9008_s12 + $0x230] sm:$0xff]  ;;  %v522_v41 = vld [vmem:[%s9008_s12 + $0x2e0] sm:$0xff] }
  0x46   : > { %1846 = vmatpush2.bf16.msra.mxu0 %v7791_v56  ;;  %v9173_v56 = vpack.c.bf16 %v482_v48, %v475_v47  ;;  %v524_v43 = vld [vmem:[%s9008_s12 + $0x2f0] sm:$0xff]  ;;  %v9267_v47 = vpack.c.bf16 %v522_v41, %v515_v40  ;;  %v443_v41 = vld [vmem:[%s9008_s12 + $0x68] sm:$0xff] }
  0x47   : > { %1959 = vmatpush2.bf16.msra.mxu1 %v7792_v57  ;;  %1847 = vmatprep.subr.bf16.mxu0 %v7793_v58  ;;  %v7829_v57 = vld [vmem:[%s11963_s2 + $0x440] ss:$16 sps:$4 sm:$0xff]   ;;  %v7849_v48 = vld [vmem:[%s11963_s2 + $0x584] ss:$16 sps:$4 sm:$0xff]  }
  0x48   : > { %1960 = vmatprep.subr.bf16.mxu1 %v7795_v59  ;;  %v472_v58 = vld [vmem:[%s9008_s12 + $0x150] sm:$0xff]  ;;  %v479_v59 = vld [vmem:[%s9008_s12 + $0x188] sm:$0xff] }
  0x49   : > { %v436_v40 = vld [vmem:[%s9008_s12 + $0x30] sm:$0xff] }
  0x4a   : > { %1848 = vmatpush2.bf16.msra.mxu0 %v7797_v60  ;;  %v474_v60 = vld [vmem:[%s9008_s12 + $0x160] sm:$0xff] }
  0x4b   : > { %1961 = vmatpush2.bf16.msra.mxu1 %v7798_v61  ;;  %1849 = vmatprep.subr.bf16.mxu0 %v7799_v62  ;;  %v481_v61 = vld [vmem:[%s9008_s12 + $0x198] sm:$0xff]  ;;  %v7834_v62 = vld [vmem:[%s11963_s2 + $0x424] ss:$16 sps:$4 sm:$0xff]  }
  0x4c   : > { %1962 = vmatprep.subr.bf16.mxu1 %v7801_v63  ;;  %v487_v63 = vld [vmem:[%s9008_s12 + $0x1c8] sm:$0xff] }
  0x4e   : > { %1850 = vmatpush2.bf16.msra.mxu0 %v7803_v0  ;;  %v494_v0 = vld [vmem:[%s9008_s12 + $0x200] sm:$0xff] }
  0x4f   : > { %1963 = vmatpush2.bf16.msra.mxu1 %v7804_v1  ;;  %1851 = vmatprep.subr.bf16.mxu0 %v7805_v2  ;;  %v489_v1 = vld [vmem:[%s9008_s12 + $0x1d8] sm:$0xff]  ;;  %v496_v2 = vld [vmem:[%s9008_s12 + $0x210] sm:$0xff]  ;;  %v9200_v6 = vpack.c.bf16 %v494_v0, %v487_v63  ;;  %v531_v0 = vld [vmem:[%s9008_s12 + $0x328] sm:$0xff] }
  0x50   : > { %1964 = vmatprep.subr.bf16.mxu1 %v7807_v3  ;;  %v9193_v3 = vpack.c.bf16 %v479_v59, %v472_v58  ;;  %v9205_v8 = vpack.c.bf16 %v496_v2, %v489_v1  ;;  %v521_v58 = vld [vmem:[%s9008_s12 + $0x2d8] sm:$0xff]  ;;  %v516_v59 = vld [vmem:[%s9008_s12 + $0x2b0] sm:$0xff]  ;;  %v538_v1 = vld [vmem:[%s9008_s12 + $0x360] sm:$0xff] }
  0x51   : > { %v536_v63 = vld [vmem:[%s9008_s12 + $0x350] sm:$0xff] }
  0x52   : > { %1852 = vmatpush2.bf16.msra.mxu0 %v7809_v4  ;;  %v9195_v4 = vpack.c.bf16 %v481_v61, %v474_v60  ;;  %v523_v60 = vld [vmem:[%s9008_s12 + $0x2e8] sm:$0xff]  ;;  %v7852_v61 = vld [vmem:[%s11963_s2 + $0x564] ss:$16 sps:$4 sm:$0xff]  }
  0x53   : > { %1965 = vmatpush2.bf16.msra.mxu1 %v7810_v5  ;;  %2047 = vmatprep.subr.bf16.mxu0 %v7813_v10  ;;  %v7832_v5 = vld [vmem:[%s11963_s2 + $0x420] ss:$16 sps:$4 sm:$0xff]  }
  0x54   : > { %2174 = vmatprep.subr.bf16.mxu1 %v7816_v11  ;;  %v486_v10 = vld [vmem:[%s9008_s12 + $0x1c0] sm:$0xff]  ;;  %v493_v11 = vld [vmem:[%s9008_s12 + $0x1f8] sm:$0xff] }
  0x55   : > { %1854 = vmatmul.mubr.bf16.vlgmr.msra.gmra.mxu0 %v9095_v15  ;;  %v9228_v24 = vpack.c.bf16 %v493_v11, %v486_v10  ;;  %v7855_v10 = vld [vmem:[%s11963_s2 + $0x544] ss:$16 sps:$4 sm:$0xff]   ;;  %v9304_v11 = vpack.c.bf16 %v538_v1, %v531_v0  ;;  %v7871_v0 = vld [vmem:[%s11963_s2 + $0x2c8] ss:$16 sps:$4 sm:$0xff]  }
  0x56   : > { %1967 = vmatmul.mubr.bf16.vlgmr.msra.gmra.mxu1 %v9097_v16  ;;  %2048 = vmatpush1.bf16.msra.mxu0 %v7811_v12  ;;  %v488_v12 = vld [vmem:[%s9008_s12 + $0x1d0] sm:$0xff] }
  0x57   : > { %2175 = vmatpush1.bf16.msra.mxu1 %v7814_v19  ;;  %2049 = vmatprep.subr.bf16.mxu0 %v7819_v20  ;;  %v508_v19 = vld [vmem:[%s9008_s12 + $0x270] sm:$0xff]  ;;  %v503_v20 = vld [vmem:[%s9008_s12 + $0x248] sm:$0xff]  ;;  %v9230_v25 = vpack.c.bf16 %v495_v14, %v488_v12 }
  0x58   : > { %1863 = vmatprep.mubr.bf16.mxu0 %v9107_v21  ;;  %1976 = vmatprep.mubr.bf16.mxu1 %v9112_v23  ;;  %v9235_v27 = vpack.c.bf16 %v508_v19, %v501_v18  ;;  %v7853_v12 = vld [vmem:[%s11963_s2 + $0x540] ss:$16 sps:$4 sm:$0xff]   ;;  %v535_v14 = vld [vmem:[%s9008_s12 + $0x348] sm:$0xff]  ;;  %v537_v18 = vld [vmem:[%s9008_s12 + $0x358] sm:$0xff] }
  0x59   : > { %2386 = vmatprep.subr.bf16.mxu1 %v7867_v13  ;;  %v528_v13 = vld [vmem:[%s9008_s12 + $0x310] sm:$0xff] }
  0x5a   : > { %2050 = vmatpush1.bf16.msra.mxu0 %v7817_v22  ;;  %v510_v22 = vld [vmem:[%s9008_s12 + $0x280] sm:$0xff]  ;;  %v448_v1 = vld [vmem:[%s9008_s12 + $0x90] sm:$0xff] }
  0x5b   : > { %2051 = vmatprep.subr.bf16.mxu0 %v7822_v28  ;;  %v7843_v28 = vld [vmem:[%s11963_s2 + $0x5c4] ss:$16 sps:$4 sm:$0xff]   ;;  %v9240_v29 = vpack.c.bf16 %v510_v22, %v503_v20  ;;  %v435_v20 = vld [vmem:[%s9008_s12 + $0x28] sm:$0xff] }
  0x5c   : > { %v7858_v19 = vld [vmem:[%s11963_s2 + $0x524] ss:$16 sps:$4 sm:$0xff]  }
  0x5d   : > { %1864 = vmatmul.mubr.bf16.gmra.mxu0 %v9129_v33  ;;  %v442_v22 = vld [vmem:[%s9008_s12 + $0x60] sm:$0xff] }
  0x5e   : > { %1977 = vmatmul.mubr.bf16.gmra.mxu1 %v9131_v34  ;;  %2052 = vmatpush1.bf16.msra.mxu0 %v7820_v35  ;;  %v502_v35 = vld [vmem:[%s9008_s12 + $0x240] sm:$0xff] }
  0x5f   : > { %1873 = vmatprep.mubr.bf16.mxu0 %v9136_v36  ;;  %2053 = vmatprep.subr.bf16.mxu0 %v7825_v37  ;;  %v509_v37 = vld [vmem:[%s9008_s12 + $0x278] sm:$0xff] }
  0x60   : > { %1986 = vmatprep.mubr.bf16.mxu1 %v9141_v38  ;;  %v9262_v45 = vpack.c.bf16 %v509_v37, %v502_v35  ;;  %v7859_v35 = vld [vmem:[%s11963_s2 + $0x500] ss:$16 sps:$4 sm:$0xff]  }
  0x61   : > { %v434_v37 = vld [vmem:[%s9008_s12 + $0x20] sm:$0xff] }
  0x62   : > { %2054 = vmatpush1.bf16.msra.mxu0 %v7823_v39  ;;  %v7846_v39 = vld [vmem:[%s11963_s2 + $0x5a4] ss:$16 sps:$4 sm:$0xff]  }
  0x63   : > { %2055 = vmatprep.subr.bf16.mxu0 %v7828_v44  ;;  %v9260_v44 = vpack.c.bf16 %v507_v32, %v500_v31  ;;  %v9329_v31 = vpack.c.bf16 %v442_v22, %v435_v20  ;;  %v7861_v32 = vld [vmem:[%s11963_s2 + $0x504] ss:$16 sps:$4 sm:$0xff]   ;;  %v7874_v22 = vld [vmem:[%s11963_s2 + $0xa8] ss:$16 sps:$4 sm:$0xff]  }
  0x64   : > { %v470_v20 = vld [vmem:[%s9008_s12 + $0x140] sm:$0xff] }
  0x65   : > { %1874 = vmatmul.mubr.bf16.gmra.mxu0 %v9161_v49 }
  0x66   : > { %1987 = vmatmul.mubr.bf16.gmra.mxu1 %v9163_v50  ;;  %2056 = vmatpush1.bf16.msra.mxu0 %v7826_v51  ;;  %v9272_v51 = vpack.c.bf16 %v524_v43, %v517_v42  ;;  %v11975_v42 = vmov 0   ;;  %v7864_v43 = vld [vmem:[%s11963_s2 + $0xec] ss:$16 sps:$4 sm:$0xff]  }
  0x67   : > { %1883 = vmatprep.mubr.bf16.mxu0 %v9168_v52  ;;  %2057 = vmatprep.subr.bf16.mxu0 %v7831_v55  ;;  %v7847_v55 = vld [vmem:[%s11963_s2 + $0x580] ss:$16 sps:$4 sm:$0xff]  }
  0x68   : > { %1996 = vmatprep.mubr.bf16.mxu1 %v9173_v56 }
  0x6a   : > { %2058 = vmatpush1.bf16.msra.mxu0 %v7829_v57  ;;  %v514_v57 = vld [vmem:[%s9008_s12 + $0x2a0] sm:$0xff] }
  0x6b   : > { %2059 = vmatprep.subr.bf16.mxu0 %v7834_v62  ;;  %v529_v62 = vld [vmem:[%s9008_s12 + $0x318] sm:$0xff]  ;;  %v9292_v2 = vpack.c.bf16 %v521_v58, %v514_v57  ;;  %v9356_v57 = vpack.c.bf16 %v443_v41, %v436_v40  ;;  %v462_v41 = vld [vmem:[%s9008_s12 + $0x100] sm:$0xff] }
  0x6c   : > { %v449_v58 = vld [vmem:[%s9008_s12 + $0x98] sm:$0xff] }
  0x6d   : > { %1884 = vmatmul.mubr.bf16.gmra.mxu0 %v9193_v3 }
  0x6e   : > { %1997 = vmatmul.mubr.bf16.gmra.mxu1 %v9195_v4  ;;  %2060 = vmatpush1.bf16.msra.mxu0 %v7832_v5  ;;  %v9294_v5 = vpack.c.bf16 %v523_v60, %v516_v59  ;;  %v456_v59 = vld [vmem:[%s9008_s12 + $0xd0] sm:$0xff]  ;;  %v7870_v60 = vld [vmem:[%s11963_s2 + $0xcc] ss:$16 sps:$4 sm:$0xff]  }
  0x6f   : > { %1893 = vmatprep.mubr.bf16.mxu0 %v9200_v6  ;;  %2061 = vmatprep.subr.bf16.mxu0 %v7837_v7  ;;  %v7850_v7 = vld [vmem:[%s11963_s2 + $0x560] ss:$16 sps:$4 sm:$0xff]  }
  0x70   : > { %2006 = vmatprep.mubr.bf16.mxu1 %v9205_v8 }
  0x72   : > { %2062 = vmatpush1.bf16.msra.mxu0 %v7835_v9  ;;  %v9299_v9 = vpack.c.bf16 %v536_v63, %v529_v62  ;;  %v7868_v62 = vld [vmem:[%s11963_s2 + $0xc8] ss:$16 sps:$4 sm:$0xff]   ;;  %v9369_v63 = vpack.c.bf16 %v456_v59, %v449_v58  ;;  %v7888_v58 = vld [vmem:[%s11963_s2 + $0x6c] ss:$16 sps:$4 sm:$0xff]  }
  0x73   : > { %2063 = vmatprep.subr.bf16.mxu0 %v7840_v17  ;;  %v530_v17 = vld [vmem:[%s9008_s12 + $0x320] sm:$0xff]  ;;  %v7891_v59 = vld [vmem:[%s11963_s2 + $0x26c] ss:$16 sps:$4 sm:$0xff]  }
  0x75   : > { %1894 = vmatmul.mubr.bf16.gmra.mxu0 %v9228_v24 }
  0x76   : > { %2007 = vmatmul.mubr.bf16.gmra.mxu1 %v9230_v25  ;;  %2064 = vmatpush2.bf16.msra.mxu0 %v7838_v26  ;;  %v9322_v26 = vpack.c.bf16 %v535_v14, %v528_v13  ;;  %v7876_v13 = vld [vmem:[%s11963_s2 + $0xac] ss:$16 sps:$4 sm:$0xff]  }
  0x77   : > { %1903 = vmatprep.mubr.bf16.mxu0 %v9235_v27  ;;  %2065 = vmatprep.subr.bf16.mxu0 %v7843_v28  ;;  %v9324_v28 = vpack.c.bf16 %v537_v18, %v530_v17  ;;  %v7879_v14 = vld [vmem:[%s11963_s2 + $0x2ac] ss:$16 sps:$4 sm:$0xff]  }
  0x78   : > { %2016 = vmatprep.mubr.bf16.mxu1 %v9240_v29  ;;  %v463_v17 = vld [vmem:[%s9008_s12 + $0x108] sm:$0xff] }
  0x79   : > { %v9413_v40 = vpack.c.bf16 %v470_v20, %v463_v17  ;;  %v476_v20 = vld [vmem:[%s9008_s12 + $0x170] sm:$0xff] }
  0x7a   : > { %2066 = vmatpush2.bf16.msra.mxu0 %v7841_v30  ;;  %v7856_v30 = vld [vmem:[%s11963_s2 + $0x520] ss:$16 sps:$4 sm:$0xff]  }
  0x7b   : > { %2067 = vmatprep.subr.bf16.mxu0 %v7846_v39  ;;  %v441_v39 = vld [vmem:[%s9008_s12 + $0x58] sm:$0xff] }
  0x7d   : > { %1904 = vmatmul.mubr.bf16.gmra.mxu0 %v9260_v44 }
  0x7e   : > { %2017 = vmatmul.mubr.bf16.gmra.mxu1 %v9262_v45  ;;  %2068 = vmatpush2.bf16.msra.mxu0 %v7844_v46  ;;  %v7862_v46 = vld [vmem:[%s11963_s2 + $0xe8] ss:$16 sps:$4 sm:$0xff]  }
  0x7f   : > { %1913 = vmatprep.mubr.bf16.mxu0 %v9267_v47  ;;  %2069 = vmatprep.subr.bf16.mxu0 %v7849_v48  ;;  %v7865_v48 = vld [vmem:[%s11963_s2 + $0x2e8] ss:$16 sps:$4 sm:$0xff]  }
  0x80   : > { %2026 = vmatprep.mubr.bf16.mxu1 %v9272_v51 }
  0x82   : > { %2070 = vmatpush2.bf16.msra.mxu0 %v7847_v55  ;;  %v9354_v55 = vpack.c.bf16 %v441_v39, %v434_v37  ;;  %v7880_v37 = vld [vmem:[%s11963_s2 + $0x88] ss:$16 sps:$4 sm:$0xff]  }
  0x83   : > { %2071 = vmatprep.subr.bf16.mxu0 %v7852_v61  ;;  %v7873_v61 = vld [vmem:[%s11963_s2 + $0x2cc] ss:$16 sps:$4 sm:$0xff]   ;;  %v7883_v39 = vld [vmem:[%s11963_s2 + $0x288] ss:$16 sps:$4 sm:$0xff]  }
  0x85   : > { %1914 = vmatmul.mubr.bf16.gmra.mxu0 %v9292_v2 }
  0x86   : > { %2027 = vmatmul.mubr.bf16.gmra.mxu1 %v9294_v5  ;;  %2072 = vmatpush2.bf16.msra.mxu0 %v7850_v7  ;;  %v455_v7 = vld [vmem:[%s9008_s12 + $0xc8] sm:$0xff] }
  0x87   : > { %1923 = vmatprep.mubr.bf16.mxu0 %v9299_v9  ;;  %2073 = vmatprep.subr.bf16.mxu0 %v7855_v10  ;;  %v450_v10 = vld [vmem:[%s9008_s12 + $0xa0] sm:$0xff]  ;;  %v9390_v18 = vpack.c.bf16 %v455_v7, %v448_v1  ;;  %v477_v1 = vld [vmem:[%s9008_s12 + $0x178] sm:$0xff]  ;;  %v484_v7 = vld [vmem:[%s9008_s12 + $0x1b0] sm:$0xff] }
  0x88   : > { %2036 = vmatprep.mubr.bf16.mxu1 %v9304_v11  ;;  %v9454_v17 = vpack.c.bf16 %v484_v7, %v477_v1  ;;  %v7907_v1 = vld [vmem:[%s11963_s2 + $0x208] ss:$16 sps:$4 sm:$0xff]  }
  0x8a   : > { %2074 = vmatpush2.bf16.msra.mxu0 %v7853_v12  ;;  %v457_v12 = vld [vmem:[%s9008_s12 + $0xd8] sm:$0xff] }
  0x8b   : > { %2075 = vmatprep.subr.bf16.mxu0 %v7858_v19  ;;  %v9392_v19 = vpack.c.bf16 %v457_v12, %v450_v10  ;;  %v7894_v10 = vld [vmem:[%s11963_s2 + $0x4c] ss:$16 sps:$4 sm:$0xff]  }
  0x8c   : > { %v7897_v12 = vld [vmem:[%s11963_s2 + $0x24c] ss:$16 sps:$4 sm:$0xff]  }
  0x8d   : > { %1924 = vmatmul.mubr.bf16.gmra.mxu0 %v9322_v26 }
  0x8e   : > { %2037 = vmatmul.mubr.bf16.gmra.mxu1 %v9324_v28  ;;  %2076 = vmatpush2.bf16.msra.mxu0 %v7856_v30  ;;  %v7877_v30 = vld [vmem:[%s11963_s2 + $0x2a8] ss:$16 sps:$4 sm:$0xff]  }
  0x8f   : > { %2079 = vmatprep.mubr.bf16.mxu0 %v9329_v31  ;;  %2077 = vmatprep.subr.bf16.mxu0 %v7861_v32  ;;  %v7882_v32 = vld [vmem:[%s11963_s2 + $0x8c] ss:$16 sps:$4 sm:$0xff]  }
  0x90   : > { %2192 = vmatprep.mubr.bf16.mxu1 %v11975_v42 }
  0x92   : > { %2078 = vmatpush2.bf16.msra.mxu0 %v7859_v35  ;;  %v7885_v35 = vld [vmem:[%s11963_s2 + $0x28c] ss:$16 sps:$4 sm:$0xff]  }
  0x93   : > { %2273 = vmatprep.subr.bf16.mxu0 %v7864_v43  ;;  %v469_v43 = vld [vmem:[%s9008_s12 + $0x138] sm:$0xff] }
  0x95   : > { %2080 = vmatmul.mubr.bf16.vlgmr.msra.gmra.mxu0 %v9354_v55 }
  0x96   : > { %7206 = vmatmul.mubr.msk.bf16.vlgmr.msra.gmra.mxu1 %vm1796_vm0, %v9356_v57  ;;  %2274 = vmatpush1.bf16.msra.mxu0 %v7862_v46  ;;  %v464_v46 = vld [vmem:[%s9008_s12 + $0x110] sm:$0xff] }
  0x97   : > { %2387 = vmatpush1.bf16.msra.mxu1 %v7865_v48  ;;  %2275 = vmatprep.subr.bf16.mxu0 %v7870_v60  ;;  %v471_v48 = vld [vmem:[%s9008_s12 + $0x148] sm:$0xff] }
  0x98   : > { %2388 = vmatprep.subr.bf16.mxu1 %v7873_v61  ;;  %2089 = vmatprep.mubr.bf16.mxu0 %v9369_v63  ;;  %v7886_v60 = vld [vmem:[%s11963_s2 + $0x68] ss:$16 sps:$4 sm:$0xff]  }
  0x99   : > { %2202 = vmatprep.mubr.bf16.mxu1 %v11975_v42  ;;  %v7889_v61 = vld [vmem:[%s11963_s2 + $0x268] ss:$16 sps:$4 sm:$0xff]  }
  0x9a   : > { %2276 = vmatpush1.bf16.msra.mxu0 %v7868_v62  ;;  %v9436_v62 = vpack.c.bf16 %v469_v43, %v462_v41  ;;  %v7901_v41 = vld [vmem:[%s11963_s2 + $0x228] ss:$16 sps:$4 sm:$0xff]  }
  0x9b   : > { %2389 = vmatpush1.bf16.msra.mxu1 %v7871_v0  ;;  %2277 = vmatprep.subr.bf16.mxu0 %v7876_v13  ;;  %v9438_v0 = vpack.c.bf16 %v471_v48, %v464_v46  ;;  %v7892_v13 = vld [vmem:[%s11963_s2 + $0x48] ss:$16 sps:$4 sm:$0xff]  }
  0x9c   : > { %2390 = vmatprep.subr.bf16.mxu1 %v7879_v14  ;;  %v7895_v14 = vld [vmem:[%s11963_s2 + $0x248] ss:$16 sps:$4 sm:$0xff]  }
  0x9d   : > { %2090 = vmatmul.mubr.bf16.gmra.mxu0 %v9390_v18  ;;  %v491_v48 = vld [vmem:[%s9008_s12 + $0x1e8] sm:$0xff] }
  0x9e   : > { %7207 = vmatmul.mubr.msk.bf16.gmra.mxu1 %vm1796_vm0, %v9392_v19  ;;  %2278 = vmatpush1.bf16.msra.mxu0 %v7874_v22  ;;  %v483_v22 = vld [vmem:[%s9008_s12 + $0x1a8] sm:$0xff] }
  0x9f   : > { %2391 = vmatpush1.bf16.msra.mxu1 %v7877_v30  ;;  %2279 = vmatprep.subr.bf16.mxu0 %v7882_v32  ;;  %v478_v30 = vld [vmem:[%s9008_s12 + $0x180] sm:$0xff]  ;;  %v485_v32 = vld [vmem:[%s9008_s12 + $0x1b8] sm:$0xff]  ;;  %v9477_v43 = vpack.c.bf16 %v483_v22, %v476_v20 }
  0xa0   : > { %2392 = vmatprep.subr.bf16.mxu1 %v7885_v35  ;;  %2099 = vmatprep.mubr.bf16.mxu0 %v9413_v40  ;;  %v7900_v35 = vld [vmem:[%s11963_s2 + $0x2c] ss:$16 sps:$4 sm:$0xff]   ;;  %v9479_v46 = vpack.c.bf16 %v485_v32, %v478_v30  ;;  %v7910_v30 = vld [vmem:[%s11963_s2 + $0x1e8] ss:$16 sps:$4 sm:$0xff]  }
  0xa1   : > { %2212 = vmatprep.mubr.bf16.mxu1 %v11975_v42  ;;  %v7912_v20 = vld [vmem:[%s11963_s2 + $0x1ec] ss:$16 sps:$4 sm:$0xff]   ;;  %v7913_v32 = vld [vmem:[%s11963_s2 + $0x3e8] ss:$16 sps:$4 sm:$0xff]  }
  0xa2   : > { %2280 = vmatpush1.bf16.msra.mxu0 %v7880_v37  ;;  %v7903_v37 = vld [vmem:[%s11963_s2 + $0x22c] ss:$16 sps:$4 sm:$0xff]  }
  0xa3   : > { %2393 = vmatpush1.bf16.msra.mxu1 %v7883_v39  ;;  %2281 = vmatprep.subr.bf16.mxu0 %v7888_v58  ;;  %v7898_v39 = vld [vmem:[%s11963_s2 + $0x28] ss:$16 sps:$4 sm:$0xff]   ;;  %v498_v58 = vld [vmem:[%s9008_s12 + $0x220] sm:$0xff]  ;;  %v7915_v22 = vld [vmem:[%s11963_s2 + $0x3ec] ss:$16 sps:$4 sm:$0xff]  }
  0xa4   : > { %2394 = vmatprep.subr.bf16.mxu1 %v7891_v59  ;;  %v7906_v59 = vld [vmem:[%s11963_s2 + $0xc] ss:$16 sps:$4 sm:$0xff]   ;;  %v9495_v7 = vpack.c.bf16 %v498_v58, %v491_v48 }
  0xa5   : > { %2100 = vmatmul.mubr.bf16.gmra.mxu0 %v9436_v62  ;;  %v7918_v48 = vld [vmem:[%s11963_s2 + $0x1cc] ss:$16 sps:$4 sm:$0xff]  }
  0xa6   : > { %7208 = vmatmul.mubr.msk.bf16.gmra.mxu1 %vm1796_vm0, %v9438_v0  ;;  %2282 = vmatpush1.bf16.msra.mxu0 %v7886_v60  ;;  %v7909_v60 = vld [vmem:[%s11963_s2 + $0x20c] ss:$16 sps:$4 sm:$0xff]  }
  0xa7   : > { %2395 = vmatpush1.bf16.msra.mxu1 %v7889_v61  ;;  %2283 = vmatprep.subr.bf16.mxu0 %v7894_v10  ;;  %v7904_v61 = vld [vmem:[%s11963_s2 + $0x8] ss:$16 sps:$4 sm:$0xff]   ;;  %v490_v10 = vld [vmem:[%s9008_s12 + $0x1e0] sm:$0xff]  ;;  %v7921_v58 = vld [vmem:[%s11963_s2 + $0x3cc] ss:$16 sps:$4 sm:$0xff]  }
  0xa8   : > { %2396 = vmatprep.subr.bf16.mxu1 %v7897_v12  ;;  %2109 = vmatprep.mubr.bf16.mxu0 %v9454_v17  ;;  %v497_v12 = vld [vmem:[%s9008_s12 + $0x218] sm:$0xff] }
  0xa9   : > { %2222 = vmatprep.mubr.bf16.mxu1 %v11975_v42 }
  0xaa   : > { %2284 = vmatpush1.bf16.msra.mxu0 %v7892_v13  ;;  %v492_v13 = vld [vmem:[%s9008_s12 + $0x1f0] sm:$0xff] }
  0xab   : > { %2397 = vmatpush1.bf16.msra.mxu1 %v7895_v14  ;;  %2285 = vmatprep.subr.bf16.mxu0 %v7900_v35  ;;  %v499_v14 = vld [vmem:[%s9008_s12 + $0x228] sm:$0xff]  ;;  %v9518_v35 = vpack.c.bf16 %v497_v12, %v490_v10  ;;  %v506_v12 = vld [vmem:[%s9008_s12 + $0x260] sm:$0xff] }
  0xac   : > { %2398 = vmatprep.subr.bf16.mxu1 %v7903_v37  ;;  %v9520_v37 = vpack.c.bf16 %v499_v14, %v492_v13  ;;  %v511_v10 = vld [vmem:[%s9008_s12 + $0x288] sm:$0xff]  ;;  %v513_v13 = vld [vmem:[%s9008_s12 + $0x298] sm:$0xff] }
  0xad   : > { %2110 = vmatmul.mubr.bf16.gmra.mxu0 %v9477_v43  ;;  %v7924_v14 = vld [vmem:[%s11963_s2 + $0x1ac] ss:$16 sps:$4 sm:$0xff]  }
  0xae   : > { %7209 = vmatmul.mubr.msk.bf16.gmra.mxu1 %vm1796_vm0, %v9479_v46  ;;  %2286 = vmatpush1.bf16.msra.mxu0 %v7898_v39  ;;  %v505_v39 = vld [vmem:[%s9008_s12 + $0x258] sm:$0xff] }
  0xaf   : > { %2399 = vmatpush1.bf16.msra.mxu1 %v7901_v41  ;;  %2287 = vmatprep.subr.bf16.mxu0 %v7906_v59  ;;  %v512_v41 = vld [vmem:[%s9008_s12 + $0x290] sm:$0xff]  ;;  %v7916_v59 = vld [vmem:[%s11963_s2 + $0x1c8] ss:$16 sps:$4 sm:$0xff]  }
  0xb0   : > { %2400 = vmatprep.subr.bf16.mxu1 %v7909_v60  ;;  %2119 = vmatprep.mubr.bf16.mxu0 %v9495_v7  ;;  %v7919_v60 = vld [vmem:[%s11963_s2 + $0x3c8] ss:$16 sps:$4 sm:$0xff]  }
  0xb1   : > { %2232 = vmatprep.mubr.bf16.mxu1 %v11975_v42 }
  0xb2   : > { %2288 = vmatpush1.bf16.msra.mxu0 %v7904_v61  ;;  %v9536_v61 = vpack.c.bf16 %v512_v41, %v505_v39  ;;  %v519_v39 = vld [vmem:[%s9008_s12 + $0x2c8] sm:$0xff]  ;;  %v526_v41 = vld [vmem:[%s9008_s12 + $0x300] sm:$0xff] }
  0xb3   : > { %2401 = vmatpush1.bf16.msra.mxu1 %v7907_v1  ;;  %2289 = vmatprep.subr.bf16.mxu0 %v7912_v20  ;;  %v504_v1 = vld [vmem:[%s9008_s12 + $0x250] sm:$0xff]  ;;  %v7927_v20 = vld [vmem:[%s11963_s2 + $0x3ac] ss:$16 sps:$4 sm:$0xff]  }
  0xb4   : > { %2402 = vmatprep.subr.bf16.mxu1 %v7915_v22  ;;  %v7922_v22 = vld [vmem:[%s11963_s2 + $0x1a8] ss:$16 sps:$4 sm:$0xff]  }
  0xb5   : > { %2120 = vmatmul.mubr.bf16.gmra.mxu0 %v9518_v35 }
  0xb6   : > { %7210 = vmatmul.mubr.msk.bf16.gmra.mxu1 %vm1796_vm0, %v9520_v37  ;;  %2290 = vmatpush2.bf16.msra.mxu0 %v7910_v30  ;;  %v9556_v30 = vpack.c.bf16 %v511_v10, %v504_v1  ;;  %v7933_v1 = vld [vmem:[%s11963_s2 + $0x38c] ss:$16 sps:$4 sm:$0xff]   ;;  %v9577_v10 = vpack.c.bf16 %v526_v41, %v519_v39 }
  0xb7   : > { %2403 = vmatpush2.bf16.msra.mxu1 %v7913_v32  ;;  %2291 = vmatprep.subr.bf16.mxu0 %v7918_v48  ;;  %v9558_v32 = vpack.c.bf16 %v513_v13, %v506_v12  ;;  %v7925_v48 = vld [vmem:[%s11963_s2 + $0x3a8] ss:$16 sps:$4 sm:$0xff]   ;;  %v518_v12 = vld [vmem:[%s9008_s12 + $0x2c0] sm:$0xff]  ;;  %v7936_v39 = vld [vmem:[%s11963_s2 + $0x16c] ss:$16 sps:$4 sm:$0xff]  }
  0xb8   : > { %2404 = vmatprep.subr.bf16.mxu1 %v7921_v58  ;;  %2129 = vmatprep.mubr.bf16.mxu0 %v9536_v61  ;;  %12000 = vst [vmem:[#allocation7_spill] sm:$0xff] %v9556_v30  ;;  %v7930_v58 = vld [vmem:[%s11963_s2 + $0x18c] ss:$16 sps:$4 sm:$0xff]   ;;  %12002 = vst [vmem:[#allocation9_spill] sm:$0xff] %v9577_v10 }
  0xb9   : > { %2242 = vmatprep.mubr.bf16.mxu1 %v11975_v42  ;;  %12001 = vst [vmem:[#allocation8_spill] sm:$0xff] %v9558_v32  ;;  %v525_v13 = vld [vmem:[%s9008_s12 + $0x2f8] sm:$0xff] }
  0xba   : > { %2292 = vmatpush2.bf16.msra.mxu0 %v7916_v59  ;;  %v7928_v59 = vld [vmem:[%s11963_s2 + $0x188] ss:$16 sps:$4 sm:$0xff]   ;;  %v7939_v41 = vld [vmem:[%s11963_s2 + $0x36c] ss:$16 sps:$4 sm:$0xff]  }
  0xbb   : > { %2405 = vmatpush2.bf16.msra.mxu1 %v7919_v60  ;;  %2293 = vmatprep.subr.bf16.mxu0 %v7924_v14  ;;  %v7931_v60 = vld [vmem:[%s11963_s2 + $0x388] ss:$16 sps:$4 sm:$0xff]   ;;  %v520_v14 = vld [vmem:[%s9008_s12 + $0x2d0] sm:$0xff] }
  0xbc   : > { %2406 = vmatprep.subr.bf16.mxu1 %v7927_v20  ;;  %v527_v20 = vld [vmem:[%s9008_s12 + $0x308] sm:$0xff] }
  0xbd   : > { %2130 = vmatmul.mubr.bf16.gmra.mxu0 %v9556_v30  ;;  %v7948_v30 = vld [vmem:[%s11963_s2 + $0x12c] ss:$16 sps:$4 sm:$0xff]  }
  0xbe   : > { %7211 = vmatmul.mubr.msk.bf16.gmra.mxu1 %vm1796_vm0, %v9558_v32  ;;  %2294 = vmatpush2.bf16.msra.mxu0 %v7922_v22  ;;  %v7934_v22 = vld [vmem:[%s11963_s2 + $0x168] ss:$16 sps:$4 sm:$0xff]   ;;  %v540_v32 = vld [vmem:[%s9008_s12 + $0x370] sm:$0xff] }
  0xbf   : > { %2407 = vmatpush2.bf16.msra.mxu1 %v7925_v48  ;;  %2295 = vmatprep.subr.bf16.mxu0 %v7930_v58  ;;  %v533_v48 = vld [vmem:[%s9008_s12 + $0x338] sm:$0xff]  ;;  %v9598_v58 = vpack.c.bf16 %v525_v13, %v518_v12 }
  0xc0   : > { %2408 = vmatprep.subr.bf16.mxu1 %v7933_v1  ;;  %2139 = vmatprep.mubr.bf16.mxu0 %v9577_v10  ;;  %v9600_v1 = vpack.c.bf16 %v527_v20, %v520_v14  ;;  %v7942_v10 = vld [vmem:[%s11963_s2 + $0x14c] ss:$16 sps:$4 sm:$0xff]   ;;  %v7940_v13 = vld [vmem:[%s11963_s2 + $0x148] ss:$16 sps:$4 sm:$0xff]   ;;  %v532_v14 = vld [vmem:[%s9008_s12 + $0x330] sm:$0xff] }
  0xc1   : > { %2252 = vmatprep.mubr.bf16.mxu1 %v11975_v42  ;;  %12003 = vst [vmem:[#allocation10_spill] sm:$0xff] %v9598_v58  ;;  %v7937_v42 = vld [vmem:[%s11963_s2 + $0x368] ss:$16 sps:$4 sm:$0xff]   ;;  %v7945_v12 = vld [vmem:[%s11963_s2 + $0x34c] ss:$16 sps:$4 sm:$0xff]  }
  0xc2   : > { %12004 = vst [vmem:[#allocation11_spill] sm:$0xff] %v9600_v1  ;;  %2296 = vmatpush2.bf16.msra.mxu0 %v7928_v59  ;;  %v7943_v59 = vld [vmem:[%s11963_s2 + $0x348] ss:$16 sps:$4 sm:$0xff]  }
  0xc3   : > { %2409 = vmatpush2.bf16.msra.mxu1 %v7931_v60  ;;  %2297 = vmatprep.subr.bf16.mxu0 %v7936_v39  ;;  %v9618_v60 = vpack.c.bf16 %v540_v32, %v533_v48  ;;  %v539_v20 = vld [vmem:[%s9008_s12 + $0x368] sm:$0xff]  ;;  %v534_v39 = vld [vmem:[%s9008_s12 + $0x340] sm:$0xff]  ;;  %v12006_v48 = vmov 0  }
  0xc4   : > { %2410 = vmatprep.subr.bf16.mxu1 %v7939_v41  ;;  %v541_v41 = vld [vmem:[%s9008_s12 + $0x378] sm:$0xff]  ;;  %s7007_s12 = sshll.u32 %s12052_s24, 3 }
  0xc5   : > { %12005 = vst [vmem:[#allocation12_spill] sm:$0xff] %v9618_v60  ;;  %2140 = vmatmul.mubr.bf16.gmra.mxu0 %v9598_v58  ;;  %v7951_v32 = vld [vmem:[%s11963_s2 + $0x32c] ss:$16 sps:$4 sm:$0xff]   ;;  %v7952_v58 = vld [vmem:[%s11963_s2 + $0x108] ss:$16 sps:$4 sm:$0xff]   ;;  %s10514_s29 = scalar_lea.vmem %s11962_s1, %s7007_s12 }
  0xc6   : > { %7212 = vmatmul.mubr.msk.bf16.gmra.mxu1 %vm1796_vm0, %v9600_v1  ;;  %2298 = vmatpush2.bf16.msra.mxu0 %v7934_v22  ;;  %v7946_v1 = vld [vmem:[%s11963_s2 + $0x128] ss:$16 sps:$4 sm:$0xff]   ;;  %v9641_v22 = vpack.c.bf16 %v539_v20, %v532_v14 }
  0xc7   : > { %2411 = vmatpush2.bf16.msra.mxu1 %v7937_v42  ;;  %2299 = vmatprep.subr.bf16.mxu0 %v7942_v10  ;;  %v7949_v42 = vld [vmem:[%s11963_s2 + $0x328] ss:$16 sps:$4 sm:$0xff]   ;;  %v9643_v10 = vpack.c.bf16 %v541_v41, %v534_v39  ;;  %v8011_v39 = vld [vmem:[%s11965_s4 + $0x74] ss:$8 sps:$4 sm:$0xff]  }
  0xc8   : > { %2412 = vmatprep.subr.bf16.mxu1 %v7945_v12  ;;  %2149 = vmatprep.mubr.bf16.mxu0 %v9618_v60  ;;  %v7954_v12 = vld [vmem:[%s11963_s2 + $0x10c] ss:$16 sps:$4 sm:$0xff]   ;;  %v7955_v14 = vld [vmem:[%s11963_s2 + $0x308] ss:$16 sps:$4 sm:$0xff]  }
  0xc9   : > { %2262 = vmatprep.mubr.bf16.mxu1 %v12006_v48  ;;  %v7957_v60 = vld [vmem:[%s11963_s2 + $0x30c] ss:$16 sps:$4 sm:$0xff]   ;;  %v7961_v20 = vld [vmem:[%s11963_s2 + $0x608] ss:$16 sps:$4 sm:$0xff]  }
  0xca   : > { %2300 = vmatpush2.bf16.msra.mxu0 %v7940_v13  ;;  %v7963_v13 = vld [vmem:[%s11963_s2 + $0x60c] ss:$16 sps:$4 sm:$0xff]  }
  0xcb   : > { %2413 = vmatpush2.bf16.msra.mxu1 %v7943_v59  ;;  %2301 = vmatprep.subr.bf16.mxu0 %v7948_v30  ;;  %v7960_v30 = vld [vmem:[%s11963_s2 + $0x4ec] ss:$16 sps:$4 sm:$0xff]   ;;  %v7958_v59 = vld [vmem:[%s11963_s2 + $0x4e8] ss:$16 sps:$4 sm:$0xff]  }
  0xcc   : > { %2414 = vmatprep.subr.bf16.mxu1 %v7951_v32 }
  0xcd   : > { %2150 = vmatmul.mubr.bf16.gmra.mxu0 %v9641_v22 }
  0xce   : > { %7213 = vmatmul.mubr.msk.bf16.gmra.mxu1 %vm1796_vm0, %v9643_v10  ;;  %2302 = vmatpush2.bf16.msra.mxu0 %v7946_v1  ;;  %v7966_v1 = vld [vmem:[%s11963_s2 + $0x4cc] ss:$16 sps:$4 sm:$0xff]  }
  0xcf   : > { %2415 = vmatpush2.bf16.msra.mxu1 %v7949_v42  ;;  %2303 = vmatprep.subr.bf16.mxu0 %v7954_v12 }
  0xd0   : > { %2416 = vmatprep.subr.bf16.mxu1 %v7957_v60  ;;  %2305 = vmatprep.mubr.bf16.mxu0 %v9029_v53  ;;  %v7964_v53 = vld [vmem:[%s11963_s2 + $0x4c8] ss:$16 sps:$4 sm:$0xff]  }
  0xd1   : > { %2418 = vmatprep.mubr.bf16.mxu1 %v9031_v54  ;;  %v7969_v54 = vld [vmem:[%s11963_s2 + $0x4ac] ss:$16 sps:$4 sm:$0xff]   ;;  %v8003_v60 = vld [vmem:[%s11963_s2 + $0x528] ss:$16 sps:$4 sm:$0xff]  }
  0xd2   : > { %2304 = vmatpush2.bf16.msra.mxu0 %v7952_v58  ;;  %v7967_v58 = vld [vmem:[%s11963_s2 + $0x4a8] ss:$16 sps:$4 sm:$0xff]  }
  0xd3   : > { %2417 = vmatpush2.bf16.msra.mxu1 %v7955_v14  ;;  %2499 = vmatprep.subr.bf16.mxu0 %v7960_v30  ;;  %v8012_v30 = vld [vmem:[%s11965_s4 + $0x60] ss:$8 sps:$4 sm:$0xff]  }
  0xd4   : > { %2626 = vmatprep.subr.bf16.mxu1 %v7963_v13 }
  0xd5   : > { %2306 = vmatmul.mubr.bf16.vlgmr.msra.gmra.mxu0 %v9095_v15  ;;  %v7972_v15 = vld [vmem:[%s11963_s2 + $0x48c] ss:$16 sps:$4 sm:$0xff]  }
  0xd6   : > { %2419 = vmatmul.mubr.bf16.vlgmr.msra.gmra.mxu1 %v9097_v16  ;;  %2500 = vmatpush1.bf16.msra.mxu0 %v7958_v59  ;;  %v7970_v16 = vld [vmem:[%s11963_s2 + $0x488] ss:$16 sps:$4 sm:$0xff]   ;;  %v8017_v59 = vld [vmem:[%s11965_s4 + $0x54] ss:$8 sps:$4 sm:$0xff]  }
  0xd7   : > { %2627 = vmatpush1.bf16.msra.mxu1 %v7961_v20  ;;  %2501 = vmatprep.subr.bf16.mxu0 %v7966_v1 }
  0xd8   : > { %2315 = vmatprep.mubr.bf16.mxu0 %v9107_v21  ;;  %2428 = vmatprep.mubr.bf16.mxu1 %v9112_v23  ;;  %v7975_v21 = vld [vmem:[%s11963_s2 + $0x46c] ss:$16 sps:$4 sm:$0xff]   ;;  %v7973_v23 = vld [vmem:[%s11963_s2 + $0x468] ss:$16 sps:$4 sm:$0xff]  }
  0xda   : > { %2502 = vmatpush1.bf16.msra.mxu0 %v7964_v53 }
  0xdb   : > { %2503 = vmatprep.subr.bf16.mxu0 %v7969_v54 }
  0xdd   : > { %2316 = vmatmul.mubr.bf16.gmra.mxu0 %v9129_v33  ;;  %v7978_v33 = vld [vmem:[%s11963_s2 + $0x44c] ss:$16 sps:$4 sm:$0xff]  }
  0xde   : > { %2429 = vmatmul.mubr.bf16.gmra.mxu1 %v9131_v34  ;;  %2504 = vmatpush1.bf16.msra.mxu0 %v7967_v58  ;;  %v7976_v34 = vld [vmem:[%s11963_s2 + $0x448] ss:$16 sps:$4 sm:$0xff]  }
  0xdf   : > { %2325 = vmatprep.mubr.bf16.mxu0 %v9136_v36  ;;  %2505 = vmatprep.subr.bf16.mxu0 %v7972_v15  ;;  %v7981_v36 = vld [vmem:[%s11963_s2 + $0x42c] ss:$16 sps:$4 sm:$0xff]  }
  0xe0   : > { %2438 = vmatprep.mubr.bf16.mxu1 %v9141_v38  ;;  %v7979_v38 = vld [vmem:[%s11963_s2 + $0x428] ss:$16 sps:$4 sm:$0xff]   ;;  %v8020_v15 = vld [vmem:[%s11965_s4 + $0x44] ss:$8 sps:$4 sm:$0xff]  }
  0xe2   : > { %2506 = vmatpush1.bf16.msra.mxu0 %v7970_v16 }
  0xe3   : > { %2507 = vmatprep.subr.bf16.mxu0 %v7975_v21 }
  0xe5   : > { %2326 = vmatmul.mubr.bf16.gmra.mxu0 %v9161_v49  ;;  %v7984_v49 = vld [vmem:[%s11963_s2 + $0x40c] ss:$16 sps:$4 sm:$0xff]  }
  0xe6   : > { %2439 = vmatmul.mubr.bf16.gmra.mxu1 %v9163_v50  ;;  %2508 = vmatpush1.bf16.msra.mxu0 %v7973_v23  ;;  %v7982_v50 = vld [vmem:[%s11963_s2 + $0x408] ss:$16 sps:$4 sm:$0xff]  }
  0xe7   : > { %2335 = vmatprep.mubr.bf16.mxu0 %v9168_v52  ;;  %2509 = vmatprep.subr.bf16.mxu0 %v7978_v33  ;;  %v7987_v52 = vld [vmem:[%s11963_s2 + $0x5ec] ss:$16 sps:$4 sm:$0xff]  }
  0xe8   : > { %2448 = vmatprep.mubr.bf16.mxu1 %v9173_v56  ;;  %v7985_v56 = vld [vmem:[%s11963_s2 + $0x5e8] ss:$16 sps:$4 sm:$0xff]  }
  0xea   : > { %2510 = vmatpush1.bf16.msra.mxu0 %v7976_v34  ;;  %v8018_v34 = vld [vmem:[%s11965_s4 + $0x40] ss:$8 sps:$4 sm:$0xff]  }
  0xeb   : > { %2511 = vmatprep.subr.bf16.mxu0 %v7981_v36 }
  0xed   : > { %2336 = vmatmul.mubr.bf16.gmra.mxu0 %v9193_v3  ;;  %v7990_v3 = vld [vmem:[%s11963_s2 + $0x5cc] ss:$16 sps:$4 sm:$0xff]  }
  0xee   : > { %2449 = vmatmul.mubr.bf16.gmra.mxu1 %v9195_v4  ;;  %2512 = vmatpush1.bf16.msra.mxu0 %v7979_v38  ;;  %v7988_v4 = vld [vmem:[%s11963_s2 + $0x5c8] ss:$16 sps:$4 sm:$0xff]   ;;  %v8023_v38 = vld [vmem:[%s11965_s4 + $0x34] ss:$8 sps:$4 sm:$0xff]  }
  0xef   : > { %2345 = vmatprep.mubr.bf16.mxu0 %v9200_v6  ;;  %2513 = vmatprep.subr.bf16.mxu0 %v7984_v49  ;;  %v7993_v6 = vld [vmem:[%s11963_s2 + $0x5ac] ss:$16 sps:$4 sm:$0xff]  }
  0xf0   : > { %2458 = vmatprep.mubr.bf16.mxu1 %v9205_v8  ;;  %v7991_v8 = vld [vmem:[%s11963_s2 + $0x5a8] ss:$16 sps:$4 sm:$0xff]  }
  0xf2   : > { %2514 = vmatpush1.bf16.msra.mxu0 %v7982_v50 }
  0xf3   : > { %2515 = vmatprep.subr.bf16.mxu0 %v7987_v52 }
  0xf5   : > { %2346 = vmatmul.mubr.bf16.gmra.mxu0 %v9228_v24  ;;  %v7996_v24 = vld [vmem:[%s11963_s2 + $0x58c] ss:$16 sps:$4 sm:$0xff]  }
  0xf6   : > { %2459 = vmatmul.mubr.bf16.gmra.mxu1 %v9230_v25  ;;  %2516 = vmatpush2.bf16.msra.mxu0 %v7985_v56  ;;  %v7994_v25 = vld [vmem:[%s11963_s2 + $0x588] ss:$16 sps:$4 sm:$0xff]  }
  0xf7   : > { %2355 = vmatprep.mubr.bf16.mxu0 %v9235_v27  ;;  %2517 = vmatprep.subr.bf16.mxu0 %v7990_v3  ;;  %v7999_v27 = vld [vmem:[%s11963_s2 + $0x56c] ss:$16 sps:$4 sm:$0xff]  }
  0xf8   : > { %2468 = vmatprep.mubr.bf16.mxu1 %v9240_v29  ;;  %v7997_v29 = vld [vmem:[%s11963_s2 + $0x568] ss:$16 sps:$4 sm:$0xff]  }
  0xfa   : > { %2518 = vmatpush2.bf16.msra.mxu0 %v7988_v4  ;;  %v8026_v4 = vld [vmem:[%s11965_s4 + $0x24] ss:$8 sps:$4 sm:$0xff]  }
  0xfb   : > { %2519 = vmatprep.subr.bf16.mxu0 %v7993_v6 }
  0xfd   : > { %2356 = vmatmul.mubr.bf16.gmra.mxu0 %v9260_v44  ;;  %v8002_v44 = vld [vmem:[%s11963_s2 + $0x54c] ss:$16 sps:$4 sm:$0xff]  }
  0xfe   : > { %2469 = vmatmul.mubr.bf16.gmra.mxu1 %v9262_v45  ;;  %2520 = vmatpush2.bf16.msra.mxu0 %v7991_v8  ;;  %v8000_v45 = vld [vmem:[%s11963_s2 + $0x548] ss:$16 sps:$4 sm:$0xff]  }
  0xff   : > { %2365 = vmatprep.mubr.bf16.mxu0 %v9267_v47  ;;  %2521 = vmatprep.subr.bf16.mxu0 %v7996_v24  ;;  %v8005_v47 = vld [vmem:[%s11963_s2 + $0x52c] ss:$16 sps:$4 sm:$0xff]  }
 0x100   : > { %2478 = vmatprep.mubr.bf16.mxu1 %v9272_v51  ;;  %v796_v51 = vlaneseq  ;;  %v8059_v24 = vld [vmem:[%s11965_s4 + $0x174] ss:$8 sps:$4 sm:$0xff]  }
 0x101   : > { %3330 = vmatprep.subr.bf16.mxu1 %v8059_v24  ;;  %v8069_v24 = vld [vmem:[%s11965_s4 + $0x130] ss:$8 sps:$4 sm:$0xff]  }
 0x102   : > { %2522 = vmatpush2.bf16.msra.mxu0 %v7994_v25  ;;  %v8057_v25 = vld [vmem:[%s11965_s4 + $0x170] ss:$8 sps:$4 sm:$0xff]  }
 0x103   : > { %2523 = vmatprep.subr.bf16.mxu0 %v7999_v27 }
 0x105   : > { %2366 = vmatmul.mubr.bf16.gmra.mxu0 %v9292_v2  ;;  %v8008_v2 = vld [vmem:[%s11963_s2 + $0x50c] ss:$16 sps:$4 sm:$0xff]  }
 0x106   : > { %2479 = vmatmul.mubr.bf16.gmra.mxu1 %v9294_v5  ;;  %2524 = vmatpush2.bf16.msra.mxu0 %v7997_v29  ;;  %v9789_v5 = vshrl.u32 %v796_v51, 7 }
 0x107   : > { %2375 = vmatprep.mubr.bf16.mxu0 %v9299_v9  ;;  %2525 = vmatprep.subr.bf16.mxu0 %v8002_v44  ;;  %v8006_v9 = vld [vmem:[%s11963_s2 + $0x508] ss:$16 sps:$4 sm:$0xff]  }
 0x108   : > { %2488 = vmatprep.mubr.bf16.mxu1 %v9304_v11  ;;  %12007 = vst [vmem:[#allocation13_spill] sm:$0xff] %v9789_v5  ;;  %v794_v11 = vld [vmem:[%s11964_s3] sm:$0xf]  ;;  %v9804_v41 = vsub.s32 0, %v9789_v5 }
 0x109   : > { %v8024_v44 = vld [vmem:[%s11965_s4 + $0x20] ss:$8 sps:$4 sm:$0xff]  }
 0x10a   : > { %2526 = vmatpush2.bf16.msra.mxu0 %v8000_v45  ;;  %12008 = vst [vmem:[#allocation14_spill] sm:$0xff] %v9804_v41  ;;  %v9814_v32 = vrot.slane %v794_v11, %v9804_v41 }
 0x10b   : > { %2527 = vmatprep.subr.bf16.mxu0 %v8005_v47  ;;  %v8029_v47 = vld [vmem:[%s11965_s4 + $0x14] ss:$8 sps:$4 sm:$0xff]  }
 0x10d   : > { %2376 = vmatmul.mubr.bf16.gmra.mxu0 %v9322_v26  ;;  %v9808_v26 = vsub.s32 1, %v9789_v5 }
 0x10e   : > { %2489 = vmatmul.mubr.bf16.gmra.mxu1 %v9324_v28  ;;  %2528 = vmatpush2.bf16.msra.mxu0 %v8003_v60  ;;  %v8009_v28 = vld [vmem:[%s11965_s4 + $0x70] ss:$8 sps:$4 sm:$0xff]  }
 0x10f   : > { %2531 = vmatprep.mubr.bf16.mxu0 %v9329_v31  ;;  %2529 = vmatprep.subr.bf16.mxu0 %v8008_v2  ;;  %12009 = vst [vmem:[#allocation15_spill] sm:$0xff] %v9808_v26  ;;  %v8014_v31 = vld [vmem:[%s11965_s4 + $0x64] ss:$8 sps:$4 sm:$0xff]   ;;  %v9820_v42 = vrot.slane %v794_v11, %v9808_v26 }
 0x110   : > { %2644 = vmatprep.mubr.bf16.mxu1 %v12006_v48 }
 0x112   : > { %2530 = vmatpush2.bf16.msra.mxu0 %v8006_v9 }
 0x113   : > { %3217 = vmatprep.subr.bf16.mxu0 %v8011_v39  ;;  %v8027_v39 = vld [vmem:[%s11965_s4 + $0x10] ss:$8 sps:$4 sm:$0xff]  }
 0x115   : > { %v1855_v12 = vpop.f32.mrf.mxu0  ;;  %2532 = vmatmul.mubr.bf16.vlgmr.msra.gmra.mxu0 %v9354_v55 }
 0x116   : > { %v1968_v14 = vpop.f32.mrf.mxu1  ;;  %7214 = vmatmul.mubr.msk.bf16.vlgmr.msra.gmra.mxu1 %vm1796_vm0, %v9356_v57  ;;  %v1856_v13 = vadd.f32 %v1855_v12, %v9814_v32  ;;  %2541 = vmatprep.mubr.bf16.mxu0 %v9369_v63  ;;  %v8015_v63 = vld [vmem:[%s11965_s4 + $0x50] ss:$8 sps:$4 sm:$0xff]  }
 0x117   : > { %2654 = vmatprep.mubr.bf16.mxu1 %v12006_v48  ;;  %v1857_v20 = vpop.f32.mrf.mxu0  ;;  %3218 = vmatpush1.bf16.msra.mxu0 %v8009_v28 }
 0x118   : > { %v1970_v1 = vpop.f32.mrf.mxu1  ;;  %v9834_v55 = vadd.f32 %v1968_v14, %v1856_v13  ;;  %v1858_v57 = vadd.f32 %v1857_v20, %v9820_v42  ;;  %3219 = vmatprep.subr.bf16.mxu0 %v8014_v31  ;;  %3331 = vmatpush1.bf16.msra.mxu1 %v8057_v25  ;;  %v8032_v31 = vld [vmem:[%s11965_s4 + $0x4] ss:$8 sps:$4 sm:$0xff]   ;;  %v8063_v13 = vld [vmem:[%s11965_s4 + $0x150] ss:$8 sps:$4 sm:$0xff]  }
 0x119   : > { %v9837_v53 = vpop.f32.mrf.mxu0 }
 0x11a   : > { %v9839_v54 = vpop.f32.mrf.mxu1  ;;  %v9844_v58 = vadd.f32 %v1970_v1, %v1858_v57  ;;  %v8030_v1 = vld [vmem:[%s11965_s4] ss:$8 sps:$4 sm:$0xff]  }
 0x11b   : > { %v9849_v16 = vpop.f32.mrf.mxu0  ;;  %3220 = vmatpush1.bf16.msra.mxu0 %v8012_v30  ;;  %v8065_v30 = vld [vmem:[%s11965_s4 + $0x154] ss:$8 sps:$4 sm:$0xff]  }
 0x11c   : > { %v9851_v21 = vpop.f32.mrf.mxu1  ;;  %3221 = vmatprep.subr.bf16.mxu0 %v8017_v59 }
 0x11d   : > { %v1865_v23 = vpop.f32.mrf.mxu0  ;;  %2542 = vmatmul.mubr.bf16.gmra.mxu0 %v9390_v18 }
 0x11e   : > { %v1978_v33 = vpop.f32.mrf.mxu1  ;;  %7215 = vmatmul.mubr.msk.bf16.gmra.mxu1 %vm1796_vm0, %v9392_v19  ;;  %v1866_v36 = vadd.f32 %v1865_v23, %v9814_v32  ;;  %2551 = vmatprep.mubr.bf16.mxu0 %v9413_v40  ;;  %v8021_v40 = vld [vmem:[%s11965_s4 + $0x30] ss:$8 sps:$4 sm:$0xff]  }
 0x11f   : > { %2664 = vmatprep.mubr.bf16.mxu1 %v12006_v48  ;;  %v1867_v49 = vpop.f32.mrf.mxu0  ;;  %3222 = vmatpush1.bf16.msra.mxu0 %v8015_v63  ;;  %v8035_v63 = vld [vmem:[%s11965_s4 + $0xf4] ss:$8 sps:$4 sm:$0xff]  }
 0x120   : > { %v1980_v50 = vpop.f32.mrf.mxu1  ;;  %v9865_v18 = vadd.f32 %v1978_v33, %v1866_v36  ;;  %v1868_v19 = vadd.f32 %v1867_v49, %v9820_v42  ;;  %3223 = vmatprep.subr.bf16.mxu0 %v8020_v15 }
 0x121   : > { %v9868_v52 = vpop.f32.mrf.mxu0 }
 0x122   : > { %v9870_v56 = vpop.f32.mrf.mxu1  ;;  %v9875_v3 = vadd.f32 %v1980_v50, %v1868_v19 }
 0x123   : > { %v9880_v6 = vpop.f32.mrf.mxu0  ;;  %3224 = vmatpush1.bf16.msra.mxu0 %v8018_v34 }
 0x124   : > { %v9882_v8 = vpop.f32.mrf.mxu1  ;;  %3225 = vmatprep.subr.bf16.mxu0 %v8023_v38  ;;  %v8033_v38 = vld [vmem:[%s11965_s4 + $0xf0] ss:$8 sps:$4 sm:$0xff]  }
 0x125   : > { %v1875_v27 = vpop.f32.mrf.mxu0  ;;  %2552 = vmatmul.mubr.bf16.gmra.mxu0 %v9436_v62  ;;  %v8062_v62 = vld [vmem:[%s11965_s4 + $0x164] ss:$8 sps:$4 sm:$0xff]  }
 0x126   : > { %v1988_v29 = vpop.f32.mrf.mxu1  ;;  %7216 = vmatmul.mubr.msk.bf16.gmra.mxu1 %vm1796_vm0, %v9438_v0  ;;  %v1876_v45 = vadd.f32 %v1875_v27, %v9814_v32  ;;  %2561 = vmatprep.mubr.bf16.mxu0 %v9454_v17  ;;  %v8060_v17 = vld [vmem:[%s11965_s4 + $0x160] ss:$8 sps:$4 sm:$0xff]  }
 0x127   : > { %2674 = vmatprep.mubr.bf16.mxu1 %v12006_v48  ;;  %v1877_v51 = vpop.f32.mrf.mxu0  ;;  %3226 = vmatpush1.bf16.msra.mxu0 %v8021_v40  ;;  %v8071_v40 = vld [vmem:[%s11965_s4 + $0x134] ss:$8 sps:$4 sm:$0xff]  }
 0x128   : > { %v1990_v60 = vpop.f32.mrf.mxu1  ;;  %v9905_v0 = vadd.f32 %v1988_v29, %v1876_v45  ;;  %v1878_v2 = vadd.f32 %v1877_v51, %v9820_v42  ;;  %3227 = vmatprep.subr.bf16.mxu0 %v8026_v4  ;;  %3332 = vmatprep.subr.bf16.mxu1 %v8062_v62  ;;  %v8038_v4 = vld [vmem:[%s11965_s4 + $0xe4] ss:$8 sps:$4 sm:$0xff]  }
 0x129   : > { %v9911_v9 = vpop.f32.mrf.mxu0  ;;  %3333 = vmatpush1.bf16.msra.mxu1 %v8060_v17 }
 0x12a   : > { %v9913_v11 = vpop.f32.mrf.mxu1  ;;  %v9918_v28 = vadd.f32 %v1990_v60, %v1878_v2  ;;  %3334 = vmatprep.subr.bf16.mxu1 %v8065_v30  ;;  %v8072_v60 = vld [vmem:[%s11965_s4 + $0x120] ss:$8 sps:$4 sm:$0xff]   ;;  %v8039_v30 = vld [vmem:[%s11965_s4 + $0xd0] ss:$8 sps:$4 sm:$0xff]  }
 0x12b   : > { %v9923_v12 = vpop.f32.mrf.mxu0  ;;  %3228 = vmatpush1.bf16.msra.mxu0 %v8024_v44 }
 0x12c   : > { %v9925_v14 = vpop.f32.mrf.mxu1  ;;  %3229 = vmatprep.subr.bf16.mxu0 %v8029_v47  ;;  %v8036_v47 = vld [vmem:[%s11965_s4 + $0xe0] ss:$8 sps:$4 sm:$0xff]  }
 0x12d   : > { %v1885_v59 = vpop.f32.mrf.mxu0  ;;  %2562 = vmatmul.mubr.bf16.gmra.mxu0 %v9477_v43  ;;  %v8068_v43 = vld [vmem:[%s11965_s4 + $0x144] ss:$8 sps:$4 sm:$0xff]   ;;  %3335 = vmatpush1.bf16.msra.mxu1 %v8063_v13  ;;  %v8077_v13 = vld [vmem:[%s11965_s4 + $0x114] ss:$8 sps:$4 sm:$0xff]  }
 0x12e   : > { %v1998_v20 = vpop.f32.mrf.mxu1  ;;  %7217 = vmatmul.mubr.msk.bf16.gmra.mxu1 %vm1796_vm0, %v9479_v46  ;;  %v1886_v57 = vadd.f32 %v1885_v59, %v9814_v32  ;;  %2571 = vmatprep.mubr.bf16.mxu0 %v9495_v7  ;;  %v8066_v7 = vld [vmem:[%s11965_s4 + $0x140] ss:$8 sps:$4 sm:$0xff]   ;;  %v8044_v59 = vld [vmem:[%s11965_s4 + $0xc4] ss:$8 sps:$4 sm:$0xff]  }
 0x12f   : > { %2684 = vmatprep.mubr.bf16.mxu1 %v12006_v48  ;;  %v1887_v15 = vpop.f32.mrf.mxu0  ;;  %3230 = vmatpush1.bf16.msra.mxu0 %v8027_v39 }
 0x130   : > { %v2000_v23 = vpop.f32.mrf.mxu1  ;;  %v9948_v46 = vadd.f32 %v1998_v20, %v1886_v57  ;;  %v1888_v33 = vadd.f32 %v1887_v15, %v9820_v42  ;;  %3231 = vmatprep.subr.bf16.mxu0 %v8032_v31  ;;  %3336 = vmatprep.subr.bf16.mxu1 %v8068_v43  ;;  %v8075_v20 = vld [vmem:[%s11965_s4 + $0x110] ss:$8 sps:$4 sm:$0xff]   ;;  %v12011_v15 = vld [vmem:[#allocation8_spill] sm:$0xff] }
 0x131   : > { %v9954_v34 = vpop.f32.mrf.mxu0  ;;  %3337 = vmatpush1.bf16.msra.mxu1 %v8066_v7  ;;  %v12012_v43 = vld [vmem:[#allocation9_spill] sm:$0xff] }
 0x132   : > { %v9956_v36 = vpop.f32.mrf.mxu1  ;;  %v9961_v49 = vadd.f32 %v2000_v23, %v1888_v33  ;;  %3338 = vmatprep.subr.bf16.mxu1 %v8071_v40  ;;  %v8080_v40 = vld [vmem:[%s11965_s4 + $0x104] ss:$8 sps:$4 sm:$0xff]  }
 0x133   : > { %v9963_v50 = vpop.f32.mrf.mxu0  ;;  %3232 = vmatpush1.bf16.msra.mxu0 %v8030_v1 }
 0x134   : > { %v9965_v19 = vpop.f32.mrf.mxu1  ;;  %3233 = vmatprep.subr.bf16.mxu0 %v8035_v63  ;;  %v12010_v63 = vld [vmem:[#allocation7_spill] sm:$0xff] }
 0x135   : > { %v1895_v25 = vpop.f32.mrf.mxu0  ;;  %2572 = vmatmul.mubr.bf16.gmra.mxu0 %v9518_v35  ;;  %v8074_v35 = vld [vmem:[%s11965_s4 + $0x124] ss:$8 sps:$4 sm:$0xff]   ;;  %3339 = vmatpush1.bf16.msra.mxu1 %v8069_v24 }
 0x136   : > { %v2008_v27 = vpop.f32.mrf.mxu1  ;;  %7218 = vmatmul.mubr.msk.bf16.gmra.mxu1 %vm1796_vm0, %v9520_v37  ;;  %v1896_v29 = vadd.f32 %v1895_v25, %v9814_v32  ;;  %2581 = vmatprep.mubr.bf16.mxu0 %v9536_v61  ;;  %v8041_v61 = vld [vmem:[%s11965_s4 + $0xd4] ss:$8 sps:$4 sm:$0xff]  }
 0x137   : > { %2694 = vmatprep.mubr.bf16.mxu1 %v12006_v48  ;;  %v1897_v44 = vpop.f32.mrf.mxu0  ;;  %3234 = vmatpush2.bf16.msra.mxu0 %v8033_v38  ;;  %v8042_v38 = vld [vmem:[%s11965_s4 + $0xc0] ss:$8 sps:$4 sm:$0xff]   ;;  %v8047_v25 = vld [vmem:[%s11965_s4 + $0xb4] ss:$8 sps:$4 sm:$0xff]  }
 0x138   : > { %v2010_v45 = vpop.f32.mrf.mxu1  ;;  %v9988_v51 = vadd.f32 %v2008_v27, %v1896_v29  ;;  %v1898_v37 = vadd.f32 %v1897_v44, %v9820_v42  ;;  %3235 = vmatprep.subr.bf16.mxu0 %v8038_v4  ;;  %3340 = vmatprep.subr.bf16.mxu1 %v8074_v35  ;;  %v8078_v27 = vld [vmem:[%s11965_s4 + $0x100] ss:$8 sps:$4 sm:$0xff]  }
 0x139   : > { %v9997_v62 = vpop.f32.mrf.mxu0  ;;  %3341 = vmatpush1.bf16.msra.mxu1 %v8072_v60  ;;  %v8050_v60 = vld [vmem:[%s11965_s4 + $0xa4] ss:$8 sps:$4 sm:$0xff]  }
 0x13a   : > { %v9999_v2 = vpop.f32.mrf.mxu1  ;;  %v10001_v17 = vadd.f32 %v2010_v45, %v1898_v37  ;;  %3342 = vmatprep.subr.bf16.mxu1 %v8077_v13  ;;  %v8045_v37 = vld [vmem:[%s11965_s4 + $0xb0] ss:$8 sps:$4 sm:$0xff]  }
 0x13b   : > { %v10003_v39 = vpop.f32.mrf.mxu0  ;;  %3236 = vmatpush2.bf16.msra.mxu0 %v8036_v47 }
 0x13c   : > { %v10005_v31 = vpop.f32.mrf.mxu1  ;;  %3237 = vmatprep.subr.bf16.mxu0 %v8041_v61  ;;  %v8083_v61 = vld [vmem:[%s11965_s4 + $0x1f4] ss:$8 sps:$4 sm:$0xff]  }
 0x13d   : > { %v1905_v1 = vpop.f32.mrf.mxu0  ;;  %2582 = vmatmul.mubr.bf16.gmra.mxu0 %v12010_v63  ;;  %3343 = vmatpush1.bf16.msra.mxu1 %v8075_v20  ;;  %v12013_v20 = vld [vmem:[#allocation10_spill] sm:$0xff]  ;;  %v12015_v63 = vld [vmem:[#allocation12_spill] sm:$0xff] }
 0x13e   : > { %v2018_v57 = vpop.f32.mrf.mxu1  ;;  %7219 = vmatmul.mubr.msk.bf16.gmra.mxu1 %vm1796_vm0, %v12011_v15  ;;  %v1906_v23 = vadd.f32 %v1905_v1, %v9814_v32  ;;  %2591 = vmatprep.mubr.bf16.mxu0 %v12012_v43  ;;  %v12014_v1 = vld [vmem:[#allocation11_spill] sm:$0xff] }
 0x13f   : > { %2704 = vmatprep.mubr.bf16.mxu1 %v12006_v48  ;;  %v1907_v33 = vpop.f32.mrf.mxu0  ;;  %3238 = vmatpush2.bf16.msra.mxu0 %v8039_v30  ;;  %v8081_v30 = vld [vmem:[%s11965_s4 + $0x1f0] ss:$8 sps:$4 sm:$0xff]   ;;  %v8048_v43 = vld [vmem:[%s11965_s4 + $0xa0] ss:$8 sps:$4 sm:$0xff]  }
 0x140   : > { %v2020_v7 = vpop.f32.mrf.mxu1  ;;  %v10031_v4 = vadd.f32 %v2018_v57, %v1906_v23  ;;  %v1908_v24 = vadd.f32 %v1907_v33, %v9820_v42  ;;  %3239 = vmatprep.subr.bf16.mxu0 %v8044_v59  ;;  %3344 = vmatprep.subr.bf16.mxu1 %v8080_v40  ;;  %v8086_v33 = vld [vmem:[%s11965_s4 + $0x1e4] ss:$8 sps:$4 sm:$0xff]   ;;  %v8053_v40 = vld [vmem:[%s11965_s4 + $0x94] ss:$8 sps:$4 sm:$0xff]  }
 0x141   : > { %v10040_v29 = vpop.f32.mrf.mxu0  ;;  %3345 = vmatpush1.bf16.msra.mxu1 %v8078_v27 }
 0x142   : > { %v10042_v44 = vpop.f32.mrf.mxu1  ;;  %v10044_v45 = vadd.f32 %v2020_v7, %v1908_v24  ;;  %3346 = vmatprep.subr.bf16.mxu1 %v8083_v61  ;;  %v8084_v24 = vld [vmem:[%s11965_s4 + $0x1e0] ss:$8 sps:$4 sm:$0xff]  }
 0x143   : > { %v10046_v47 = vpop.f32.mrf.mxu0  ;;  %3240 = vmatpush2.bf16.msra.mxu0 %v8042_v38 }
 0x144   : > { %v10048_v35 = vpop.f32.mrf.mxu1  ;;  %3241 = vmatprep.subr.bf16.mxu0 %v8047_v25 }
 0x145   : > { %v1915_v13 = vpop.f32.mrf.mxu0  ;;  %2592 = vmatmul.mubr.bf16.gmra.mxu0 %v12013_v20  ;;  %3347 = vmatpush2.bf16.msra.mxu1 %v8081_v30  ;;  %v8089_v30 = vld [vmem:[%s11965_s4 + $0x1d4] ss:$8 sps:$4 sm:$0xff]   ;;  %v8087_v20 = vld [vmem:[%s11965_s4 + $0x1d0] ss:$8 sps:$4 sm:$0xff]  }
 0x146   : > { %v2028_v59 = vpop.f32.mrf.mxu1  ;;  %7220 = vmatmul.mubr.msk.bf16.gmra.mxu1 %vm1796_vm0, %v12014_v1  ;;  %v1916_v57 = vadd.f32 %v1915_v13, %v9814_v32  ;;  %2601 = vmatprep.mubr.bf16.mxu0 %v12015_v63 }
 0x147   : > { %2714 = vmatprep.mubr.bf16.mxu1 %v12006_v48  ;;  %v1917_v15 = vpop.f32.mrf.mxu0  ;;  %3242 = vmatpush2.bf16.msra.mxu0 %v8045_v37 }
 0x148   : > { %v2030_v23 = vpop.f32.mrf.mxu1  ;;  %v10074_v7 = vadd.f32 %v2028_v59, %v1916_v57  ;;  %v1918_v38 = vadd.f32 %v1917_v15, %v9820_v42  ;;  %3243 = vmatprep.subr.bf16.mxu0 %v8050_v60  ;;  %3348 = vmatprep.subr.bf16.mxu1 %v8086_v33  ;;  %v8051_v60 = vld [vmem:[%s11965_s4 + $0x90] ss:$8 sps:$4 sm:$0xff]   ;;  %v8056_v59 = vld [vmem:[%s11965_s4 + $0x84] ss:$8 sps:$4 sm:$0xff]  }
 0x149   : > { %v10083_v25 = vpop.f32.mrf.mxu0  ;;  %3349 = vmatpush2.bf16.msra.mxu1 %v8084_v24  ;;  %v8092_v33 = vld [vmem:[%s11965_s4 + $0x1c4] ss:$8 sps:$4 sm:$0xff]  }
 0x14a   : > { %v10085_v27 = vpop.f32.mrf.mxu1  ;;  %v10087_v37 = vadd.f32 %v2030_v23, %v1918_v38  ;;  %3350 = vmatprep.subr.bf16.mxu1 %v8089_v30 }
 0x14b   : > { %v10089_v61 = vpop.f32.mrf.mxu0  ;;  %3244 = vmatpush2.bf16.msra.mxu0 %v8048_v43  ;;  %v8054_v43 = vld [vmem:[%s11965_s4 + $0x80] ss:$8 sps:$4 sm:$0xff]  }
 0x14c   : > { %v10091_v13 = vpop.f32.mrf.mxu1  ;;  %3245 = vmatprep.subr.bf16.mxu0 %v8053_v40 }
 0x14d   : > { %v1925_v1 = vpop.f32.mrf.mxu0  ;;  %2602 = vmatmul.mubr.bf16.gmra.mxu0 %v9641_v22  ;;  %3351 = vmatpush2.bf16.msra.mxu1 %v8087_v20  ;;  %v1860_v20 = vadd.f32 %v9837_v53, %v9814_v32 }
 0x14e   : > { %v2038_v57 = vpop.f32.mrf.mxu1  ;;  %7221 = vmatmul.mubr.msk.bf16.gmra.mxu1 %vm1796_vm0, %v9643_v10  ;;  %v1926_v63 = vadd.f32 %v1925_v1, %v9814_v32  ;;  %v8090_v10 = vld [vmem:[%s11965_s4 + $0x1c0] ss:$8 sps:$4 sm:$0xff]   ;;  %3352 = vmatprep.subr.bf16.mxu1 %v8092_v33 }
 0x14f   : > { %v1927_v15 = vpop.f32.mrf.mxu0  ;;  %3246 = vmatpush2.bf16.msra.mxu0 %v8051_v60  ;;  %v1973_v26 = vadd.f32 %v9839_v54, %v1860_v20  ;;  %v8101_v54 = vld [vmem:[%s11965_s4 + $0x194] ss:$8 sps:$4 sm:$0xff]  }
 0x150   : > { %v2040_v23 = vpop.f32.mrf.mxu1  ;;  %v10115_v38 = vadd.f32 %v2038_v57, %v1926_v63  ;;  %v1928_v22 = vadd.f32 %v1927_v15, %v9820_v42  ;;  %3247 = vmatprep.subr.bf16.mxu0 %v8056_v59  ;;  %v8095_v59 = vld [vmem:[%s11965_s4 + $0x1b4] ss:$8 sps:$4 sm:$0xff]   ;;  %v8093_v57 = vld [vmem:[%s11965_s4 + $0x1b0] ss:$8 sps:$4 sm:$0xff]  }
 0x151   : > { %v10121_v40 = vpop.f32.mrf.mxu0  ;;  %3353 = vmatpush2.bf16.msra.mxu1 %v8090_v10  ;;  %v8096_v10 = vld [vmem:[%s11965_s4 + $0x1a0] ss:$8 sps:$4 sm:$0xff]  }
 0x152   : > { %12016 = vst [vmem:[#allocation7_spill] sm:$0xff] %v10115_v38  ;;  %v10123_v24 = vpop.f32.mrf.mxu1  ;;  %v10125_v60 = vadd.f32 %v2040_v23, %v1928_v22  ;;  %3354 = vmatprep.subr.bf16.mxu1 %v8095_v59  ;;  %v1862_v23 = vadd.f32 %v9849_v16, %v9820_v42  ;;  %v8098_v22 = vld [vmem:[%s11965_s4 + $0x1a4] ss:$8 sps:$4 sm:$0xff]  }
 0x153   : > { %12017 = vst [vmem:[#allocation8_spill] sm:$0xff] %v10123_v24  ;;  %v10127_v30 = vpop.f32.mrf.mxu0  ;;  %3248 = vmatpush2.bf16.msra.mxu0 %v8054_v43 }
 0x154   : > { %12018 = vst [vmem:[#allocation9_spill] sm:$0xff] %v10125_v60  ;;  %v10129_v1 = vpop.f32.mrf.mxu1  ;;  %v1975_v16 = vadd.f32 %v9851_v21, %v1862_v23 }
 0x155   : > { %12019 = vst [vmem:[#allocation10_spill] sm:$0xff] %v10129_v1  ;;  %v2081_v63 = vpop.f32.mrf.mxu0  ;;  %3355 = vmatpush2.bf16.msra.mxu1 %v8093_v57 }
 0x156   : > { %v2194_v15 = vpop.f32.mrf.mxu1  ;;  %v2082_v59 = vadd.f32 %v2081_v63, %v9834_v55  ;;  %3356 = vmatprep.subr.bf16.mxu1 %v8098_v22  ;;  %v8099_v55 = vld [vmem:[%s11965_s4 + $0x190] ss:$8 sps:$4 sm:$0xff]  }
 0x157   : > { %v2083_v33 = vpop.f32.mrf.mxu0 }
 0x158   : > { %v2196_v43 = vpop.f32.mrf.mxu1  ;;  %v2084_v53 = vadd.f32 %v2083_v33, %v9844_v58  ;;  %v1870_v58 = vadd.f32 %v9868_v52, %v9814_v32  ;;  %v2195_v63 = vadd.f32 %v2194_v15, %v2082_v59 }
 0x159   : > { %v2085_v41 = vpop.f32.mrf.mxu0  ;;  %3357 = vmatpush2.bf16.msra.mxu1 %v8096_v10 }
 0x15a   : > { %v2198_v48 = vpop.f32.mrf.mxu1  ;;  %v2086_v1 = vadd.f32 %v2085_v41, %v1973_v26  ;;  %v2197_v20 = vadd.f32 %v2196_v43, %v2084_v53  ;;  %3358 = vmatprep.subr.bf16.mxu1 %v8101_v54  ;;  %v1872_v26 = vadd.f32 %v9880_v6, %v9820_v42  ;;  %v1983_v52 = vadd.f32 %v9870_v56, %v1870_v58  ;;  %v8102_v43 = vld [vmem:[%s11965_s4 + $0x180] ss:$8 sps:$4 sm:$0xff]  }
 0x15b   : > { %v2087_v38 = vpop.f32.mrf.mxu0  ;;  %v2725_v6 = vmax.f32 %v2195_v63, 0.0  ;;  %v1880_v56 = vadd.f32 %v9911_v9, %v9814_v32 }
 0x15c   : > { %v2200_v60 = vpop.f32.mrf.mxu1  ;;  %v2199_v57 = vadd.f32 %v2198_v48, %v2086_v1  ;;  %v2088_v33 = vadd.f32 %v2087_v38, %v1975_v16  ;;  %v8104_v48 = vld [vmem:[%s11965_s4 + $0x184] ss:$8 sps:$4 sm:$0xff]   ;;  %v2726_v38 = vmax.f32 %v2197_v20, 0.0  ;;  %v1985_v59 = vadd.f32 %v9882_v8, %v1872_v26 }
 0x15d   : > { %v2091_v21 = vpop.f32.mrf.mxu0  ;;  %3359 = vmatpush2.bf16.msra.mxu1 %v8099_v55  ;;  %v1882_v8 = vadd.f32 %v9923_v12, %v9820_v42  ;;  %v1993_v9 = vadd.f32 %v9913_v11, %v1880_v56 }
 0x15e   : > { %v2204_v41 = vpop.f32.mrf.mxu1  ;;  %v2201_v23 = vadd.f32 %v2200_v60, %v2088_v33  ;;  %v2729_v22 = vmax.f32 %v2199_v57, 0.0  ;;  %v2092_v60 = vadd.f32 %v2091_v21, %v9865_v18  ;;  %3360 = vmatprep.subr.bf16.mxu1 %v8104_v48 }
 0x15f   : > { %v2093_v24 = vpop.f32.mrf.mxu0 }
 0x160   : > { %v2206_v5 = vpop.f32.mrf.mxu1  ;;  %v2730_v1 = vmax.f32 %v2201_v23, 0.0  ;;  %v2094_v15 = vadd.f32 %v2093_v24, %v9875_v3  ;;  %v2789_v58 = vpack.c.bf16 %v2729_v22, %v2725_v6  ;;  %v2205_v55 = vadd.f32 %v2204_v41, %v2092_v60 }
 0x161   : > { %v2095_v53 = vpop.f32.mrf.mxu0  ;;  %3361 = vmatpush2.bf16.msra.mxu1 %v8102_v43  ;;  %v1995_v43 = vadd.f32 %v9925_v14, %v1882_v8 }
 0x162   : > { %v2208_v10 = vpop.f32.mrf.mxu1  ;;  %v2096_v16 = vadd.f32 %v2095_v53, %v1983_v52  ;;  %v2790_v54 = vpack.c.bf16 %v2730_v1, %v2726_v38  ;;  %v2207_v20 = vadd.f32 %v2206_v5, %v2094_v15  ;;  %v2733_v38 = vmax.f32 %v2205_v55, 0.0 }
 0x163   : > { %v2097_v3 = vpop.f32.mrf.mxu0 }
 0x164   : > { %v2210_v24 = vpop.f32.mrf.mxu1  ;;  %v2209_v57 = vadd.f32 %v2208_v10, %v2096_v16  ;;  %v2098_v33 = vadd.f32 %v2097_v3, %v1985_v59  ;;  %3249 = vmatprep.mubr.bf16.mxu0 %v2790_v54  ;;  %v2734_v22 = vmax.f32 %v2207_v20, 0.0  ;;  %v1890_v59 = vadd.f32 %v9954_v34, %v9814_v32 }
 0x165   : > { %v2101_v18 = vpop.f32.mrf.mxu0  ;;  %3250 = vmatmul.mubr.bf16.vlgmr.msra.gmra.mxu0 %v2789_v58 }
 0x166   : > { %v2214_v63 = vpop.f32.mrf.mxu1  ;;  %v2211_v21 = vadd.f32 %v2210_v24, %v2098_v33  ;;  %v2737_v26 = vmax.f32 %v2209_v57, 0.0  ;;  %v2102_v1 = vadd.f32 %v2101_v18, %v9905_v0  ;;  %v1892_v0 = vadd.f32 %v9963_v50, %v9820_v42 }
 0x167   : > { %v2103_v23 = vpop.f32.mrf.mxu0  ;;  %v2003_v57 = vadd.f32 %v9956_v36, %v1890_v59 }
 0x168   : > { %v2216_v48 = vpop.f32.mrf.mxu1  ;;  %v2738_v52 = vmax.f32 %v2211_v21, 0.0  ;;  %v2104_v5 = vadd.f32 %v2103_v23, %v9918_v28  ;;  %v2793_v12 = vpack.c.bf16 %v2737_v26, %v2733_v38  ;;  %v2215_v28 = vadd.f32 %v2214_v63, %v2102_v1 }
 0x169   : > { %v2105_v41 = vpop.f32.mrf.mxu0  ;;  %v2005_v26 = vadd.f32 %v9965_v19, %v1892_v0 }
 0x16a   : > { %v2218_v15 = vpop.f32.mrf.mxu1  ;;  %v2106_v6 = vadd.f32 %v2105_v41, %v1993_v9  ;;  %v2794_v60 = vpack.c.bf16 %v2738_v52, %v2734_v22  ;;  %v2217_v11 = vadd.f32 %v2216_v48, %v2104_v5  ;;  %v2741_v18 = vmax.f32 %v2215_v28, 0.0 }
 0x16b   : > { %v2107_v53 = vpop.f32.mrf.mxu0  ;;  %v1900_v52 = vadd.f32 %v9997_v62, %v9814_v32 }
 0x16c   : > { %v2220_v10 = vpop.f32.mrf.mxu1  ;;  %v2219_v16 = vadd.f32 %v2218_v15, %v2106_v6  ;;  %v2108_v54 = vadd.f32 %v2107_v53, %v1995_v43  ;;  %3259 = vmatprep.mubr.bf16.mxu0 %v2794_v60  ;;  %v2742_v33 = vmax.f32 %v2217_v11, 0.0 }
 0x16d   : > { %v2111_v56 = vpop.f32.mrf.mxu0  ;;  %3260 = vmatmul.mubr.bf16.gmra.mxu0 %v2793_v12  ;;  %v2013_v60 = vadd.f32 %v9999_v2, %v1900_v52 }
 0x16e   : > { %v2224_v58 = vpop.f32.mrf.mxu1  ;;  %v2221_v14 = vadd.f32 %v2220_v10, %v2108_v54  ;;  %v2745_v3 = vmax.f32 %v2219_v16, 0.0  ;;  %v2112_v8 = vadd.f32 %v2111_v56, %v9948_v46  ;;  %v1902_v46 = vadd.f32 %v10003_v39, %v9820_v42 }
 0x16f   : > { %v2113_v24 = vpop.f32.mrf.mxu0 }
 0x170   : > { %v2226_v20 = vpop.f32.mrf.mxu1  ;;  %v2746_v55 = vmax.f32 %v2221_v14, 0.0  ;;  %v2114_v34 = vadd.f32 %v2113_v24, %v9961_v49  ;;  %v2797_v50 = vpack.c.bf16 %v2745_v3, %v2741_v18  ;;  %v2225_v49 = vadd.f32 %v2224_v58, %v2112_v8 }
 0x171   : > { %v2115_v63 = vpop.f32.mrf.mxu0  ;;  %v2015_v54 = vadd.f32 %v10005_v31, %v1902_v46  ;;  %v1910_v14 = vadd.f32 %v10040_v29, %v9814_v32 }
 0x172   : > { %v2228_v21 = vpop.f32.mrf.mxu1  ;;  %v2116_v23 = vadd.f32 %v2115_v63, %v2003_v57  ;;  %v2798_v48 = vpack.c.bf16 %v2746_v55, %v2742_v33  ;;  %v2227_v36 = vadd.f32 %v2226_v20, %v2114_v34  ;;  %v2749_v10 = vmax.f32 %v2225_v49, 0.0 }
 0x173   : > { %v2117_v9 = vpop.f32.mrf.mxu0  ;;  %v2023_v18 = vadd.f32 %v10042_v44, %v1910_v14 }
 0x174   : > { %v2230_v22 = vpop.f32.mrf.mxu1  ;;  %v2229_v5 = vadd.f32 %v2228_v21, %v2116_v23  ;;  %v2118_v38 = vadd.f32 %v2117_v9, %v2005_v26  ;;  %3269 = vmatprep.mubr.bf16.mxu0 %v2798_v48  ;;  %v2750_v12 = vmax.f32 %v2227_v36, 0.0 }
 0x175   : > { %v2121_v1 = vpop.f32.mrf.mxu0  ;;  %3270 = vmatmul.mubr.bf16.gmra.mxu0 %v2797_v50 }
 0x176   : > { %v2234_v41 = vpop.f32.mrf.mxu1  ;;  %v2231_v19 = vadd.f32 %v2230_v22, %v2118_v38  ;;  %v2753_v15 = vmax.f32 %v2229_v5, 0.0  ;;  %v2122_v59 = vadd.f32 %v2121_v1, %v9988_v51  ;;  %v1912_v51 = vadd.f32 %v10046_v47, %v9820_v42 }
 0x177   : > { %v2123_v43 = vpop.f32.mrf.mxu0  ;;  %v1920_v5 = vadd.f32 %v10083_v25, %v9814_v32 }
 0x178   : > { %v2236_v6 = vpop.f32.mrf.mxu1  ;;  %v2754_v53 = vmax.f32 %v2231_v19, 0.0  ;;  %v2124_v62 = vadd.f32 %v2123_v43, %v10001_v17  ;;  %v2801_v39 = vpack.c.bf16 %v2753_v15, %v2749_v10  ;;  %v2235_v17 = vadd.f32 %v2234_v41, %v2122_v59 }
 0x179   : > { %v2125_v11 = vpop.f32.mrf.mxu0  ;;  %v2025_v50 = vadd.f32 %v10048_v35, %v1912_v51  ;;  %v2033_v43 = vadd.f32 %v10085_v27, %v1920_v5 }
 0x17a   : > { %v2238_v16 = vpop.f32.mrf.mxu1  ;;  %v2126_v28 = vadd.f32 %v2125_v11, %v2013_v60  ;;  %v2802_v56 = vpack.c.bf16 %v2754_v53, %v2750_v12  ;;  %v2237_v2 = vadd.f32 %v2236_v6, %v2124_v62  ;;  %v2757_v21 = vmax.f32 %v2235_v17, 0.0 }
 0x17b   : > { %v2127_v58 = vpop.f32.mrf.mxu0 }
 0x17c   : > { %v2240_v0 = vpop.f32.mrf.mxu1  ;;  %v2239_v3 = vadd.f32 %v2238_v16, %v2126_v28  ;;  %v2128_v24 = vadd.f32 %v2127_v58, %v2015_v54  ;;  %3279 = vmatprep.mubr.bf16.mxu0 %v2802_v56  ;;  %v2758_v8 = vmax.f32 %v2237_v2, 0.0  ;;  %v1930_v56 = vadd.f32 %v10121_v40, %v9814_v32  ;;  %v12020_v2 = vld [vmem:[#allocation13_spill] sm:$0xff]  ;;  %v12023_v40 = vld [vmem:[#allocation8_spill] sm:$0xff] }
 0x17d   : > { %v2131_v20 = vpop.f32.mrf.mxu0  ;;  %3280 = vmatmul.mubr.bf16.gmra.mxu0 %v2801_v39  ;;  %v10219_v32 = vsub.s32 3, %v12020_v2 }
 0x17e   : > { %v2244_v57 = vpop.f32.mrf.mxu1  ;;  %v2241_v31 = vadd.f32 %v2240_v0, %v2128_v24  ;;  %v2761_v33 = vmax.f32 %v2239_v3, 0.0  ;;  %v2132_v26 = vadd.f32 %v2131_v20, %v10031_v4  ;;  %v1922_v4 = vadd.f32 %v10089_v61, %v9820_v42 }
 0x17f   : > { %v2133_v55 = vpop.f32.mrf.mxu0  ;;  %v10216_v3 = vsub.s32 2, %v12020_v2  ;;  %12022 = vst [vmem:[#allocation12_spill] sm:$0xff] %v10219_v32 }
 0x180   : > { %v2246_v34 = vpop.f32.mrf.mxu1  ;;  %v2762_v63 = vmax.f32 %v2241_v31, 0.0  ;;  %v2134_v29 = vadd.f32 %v2133_v55, %v10044_v45  ;;  %v2805_v47 = vpack.c.bf16 %v2761_v33, %v2757_v21  ;;  %v2245_v45 = vadd.f32 %v2244_v57, %v2132_v26  ;;  %v12024_v33 = vld [vmem:[#allocation9_spill] sm:$0xff] }
 0x181   : > { %v2135_v23 = vpop.f32.mrf.mxu0  ;;  %v2035_v59 = vadd.f32 %v10091_v13, %v1922_v4  ;;  %12021 = vst [vmem:[#allocation11_spill] sm:$0xff] %v10216_v3  ;;  %v2043_v57 = vadd.f32 %v12023_v40, %v1930_v56 }
 0x182   : > { %v2248_v48 = vpop.f32.mrf.mxu1  ;;  %v2136_v9 = vadd.f32 %v2135_v23, %v2023_v18  ;;  %v2806_v22 = vpack.c.bf16 %v2762_v63, %v2758_v8  ;;  %v2247_v44 = vadd.f32 %v2246_v34, %v2134_v29  ;;  %v2765_v12 = vmax.f32 %v2245_v45, 0.0  ;;  %v12025_v18 = vld [vmem:[#allocation7_spill] sm:$0xff]  ;;  %v12026_v63 = vld [vmem:[#allocation10_spill] sm:$0xff] }
 0x183   : > { %v2137_v52 = vpop.f32.mrf.mxu0  ;;  %v8691_v23 = vld [vmem:[%s11964_s3] sm:$0xf] }
 0x184   : > { %v2250_v36 = vpop.f32.mrf.mxu1  ;;  %v2249_v38 = vadd.f32 %v2248_v48, %v2136_v9  ;;  %v2138_v49 = vadd.f32 %v2137_v52, %v2025_v50  ;;  %3289 = vmatprep.mubr.bf16.mxu0 %v2806_v22  ;;  %v2766_v6 = vmax.f32 %v2247_v44, 0.0  ;;  %v10229_v48 = vrot.slane %v8691_v23, %v10216_v3 }
 0x185   : > { %v2141_v1 = vpop.f32.mrf.mxu0  ;;  %3290 = vmatmul.mubr.bf16.gmra.mxu0 %v2805_v47  ;;  %v10232_v5 = vrot.slane %v8691_v23, %v10219_v32 }
 0x186   : > { %v2254_v41 = vpop.f32.mrf.mxu1  ;;  %v2251_v35 = vadd.f32 %v2250_v36, %v2138_v49  ;;  %v2769_v46 = vmax.f32 %v2249_v38, 0.0  ;;  %v2142_v53 = vadd.f32 %v2141_v1, %v10074_v7  ;;  %v1932_v7 = vadd.f32 %v10127_v30, %v9820_v42 }
 0x187   : > { %v2143_v19 = vpop.f32.mrf.mxu0 }
 0x188   : > { %v2256_v15 = vpop.f32.mrf.mxu1  ;;  %v2770_v60 = vmax.f32 %v2251_v35, 0.0  ;;  %v2144_v25 = vadd.f32 %v2143_v19, %v10087_v37  ;;  %v2809_v61 = vpack.c.bf16 %v2769_v46, %v2765_v12  ;;  %v2255_v37 = vadd.f32 %v2254_v41, %v2142_v53 }
 0x189   : > { %v2145_v62 = vpop.f32.mrf.mxu0  ;;  %v2045_v29 = vadd.f32 %v12026_v63, %v1932_v7 }
 0x18a   : > { %v2258_v10 = vpop.f32.mrf.mxu1  ;;  %v2146_v11 = vadd.f32 %v2145_v62, %v2033_v43  ;;  %v2810_v16 = vpack.c.bf16 %v2770_v60, %v2766_v6  ;;  %v2257_v27 = vadd.f32 %v2256_v15, %v2144_v25  ;;  %v2773_v34 = vmax.f32 %v2255_v37, 0.0 }
 0x18b   : > { %v2147_v54 = vpop.f32.mrf.mxu0 }
 0x18c   : > { %v2260_v28 = vpop.f32.mrf.mxu1  ;;  %v2259_v39 = vadd.f32 %v2258_v10, %v2146_v11  ;;  %v2148_v58 = vadd.f32 %v2147_v54, %v2035_v59  ;;  %3299 = vmatprep.mubr.bf16.mxu0 %v2810_v16  ;;  %v2774_v51 = vmax.f32 %v2257_v27, 0.0  ;;  %v12027_v54 = vmov 0  }
 0x18d   : > { %v2151_v0 = vpop.f32.mrf.mxu0  ;;  %3300 = vmatmul.mubr.bf16.gmra.mxu0 %v2809_v61 }
 0x18e   : > { %v2264_v14 = vpop.f32.mrf.mxu1  ;;  %v2261_v13 = vadd.f32 %v2260_v28, %v2148_v58  ;;  %v2777_v24 = vmax.f32 %v2259_v39, 0.0  ;;  %v2152_v8 = vadd.f32 %v2151_v0, %v12025_v18 }
 0x18f   : > { %v2153_v17 = vpop.f32.mrf.mxu0 }
 0x190   : > { %v2266_v20 = vpop.f32.mrf.mxu1  ;;  %v2778_v31 = vmax.f32 %v2261_v13, 0.0  ;;  %v2154_v55 = vadd.f32 %v2153_v17, %v12024_v33  ;;  %v2813_v50 = vpack.c.bf16 %v2777_v24, %v2773_v34  ;;  %v2265_v44 = vadd.f32 %v2264_v14, %v2152_v8 }
 0x191   : > { %v2155_v42 = vpop.f32.mrf.mxu0 }
 0x192   : > { %v2268_v30 = vpop.f32.mrf.mxu1  ;;  %v2156_v21 = vadd.f32 %v2155_v42, %v2043_v57  ;;  %v2814_v26 = vpack.c.bf16 %v2778_v31, %v2774_v51  ;;  %v2267_v47 = vadd.f32 %v2266_v20, %v2154_v55  ;;  %v2781_v6 = vmax.f32 %v2265_v44, 0.0 }
 0x193   : > { %v2157_v9 = vpop.f32.mrf.mxu0 }
 0x194   : > { %v2270_v22 = vpop.f32.mrf.mxu1  ;;  %v2269_v52 = vadd.f32 %v2268_v30, %v2156_v21  ;;  %v2158_v36 = vadd.f32 %v2157_v9, %v2045_v29  ;;  %3309 = vmatprep.mubr.bf16.mxu0 %v2814_v26  ;;  %v2782_v46 = vmax.f32 %v2267_v47, 0.0 }
 0x195   : > { %v2307_v38 = vpop.f32.mrf.mxu0  ;;  %3310 = vmatmul.mubr.bf16.gmra.mxu0 %v2813_v50 }
 0x196   : > { %v2420_v49 = vpop.f32.mrf.mxu1  ;;  %v2271_v45 = vadd.f32 %v2270_v22, %v2158_v36  ;;  %v2308_v1 = vadd.f32 %v2307_v38, %v10229_v48  ;;  %v2785_v41 = vmax.f32 %v2269_v52, 0.0 }
 0x197   : > { %v2309_v4 = vpop.f32.mrf.mxu0 }
 0x198   : > { %v2422_v35 = vpop.f32.mrf.mxu1  ;;  %v2786_v19 = vmax.f32 %v2271_v45, 0.0  ;;  %v10235_v15 = vadd.f32 %v2420_v49, %v2308_v1  ;;  %v2310_v43 = vadd.f32 %v2309_v4, %v10232_v5  ;;  %v2817_v62 = vpack.c.bf16 %v2785_v41, %v2781_v6 }
 0x199   : > { %v10238_v60 = vpop.f32.mrf.mxu0 }
 0x19a   : > { %v10240_v25 = vpop.f32.mrf.mxu1  ;;  %v10242_v12 = vadd.f32 %v2422_v35, %v2310_v43  ;;  %v2818_v53 = vpack.c.bf16 %v2786_v19, %v2782_v46 }
 0x19b   : > { %v10244_v10 = vpop.f32.mrf.mxu0 }
 0x19c   : > { %v10246_v59 = vpop.f32.mrf.mxu1  ;;  %3319 = vmatprep.mubr.bf16.mxu0 %v2818_v53 }
 0x19d   : > { %v2317_v11 = vpop.f32.mrf.mxu0  ;;  %3320 = vmatmul.mubr.bf16.gmra.mxu0 %v2817_v62 }
 0x19e   : > { %v2430_v16 = vpop.f32.mrf.mxu1  ;;  %v2318_v61 = vadd.f32 %v2317_v11, %v10229_v48  ;;  %3707 = vmatprep.mubr.bf16.mxu0 %v12027_v54 }
 0x19f   : > { %v2319_v28 = vpop.f32.mrf.mxu0 }
 0x1a0   : > { %v2432_v56 = vpop.f32.mrf.mxu1  ;;  %v10250_v27 = vadd.f32 %v2430_v16, %v2318_v61  ;;  %v2320_v39 = vadd.f32 %v2319_v28, %v10232_v5 }
 0x1a1   : > { %v10253_v58 = vpop.f32.mrf.mxu0 }
 0x1a2   : > { %v10255_v37 = vpop.f32.mrf.mxu1  ;;  %v10257_v0 = vadd.f32 %v2432_v56, %v2320_v39 }
 0x1a3   : > { %v10259_v14 = vpop.f32.mrf.mxu0 }
 0x1a4   : > { %v10261_v7 = vpop.f32.mrf.mxu1 }
 0x1a5   : > { %v2327_v13 = vpop.f32.mrf.mxu0 }
 0x1a6   : > { %v2440_v24 = vpop.f32.mrf.mxu1  ;;  %v2328_v17 = vadd.f32 %v2327_v13, %v10229_v48 }
 0x1a7   : > { %v2329_v20 = vpop.f32.mrf.mxu0 }
 0x1a8   : > { %v2442_v40 = vpop.f32.mrf.mxu1  ;;  %v10264_v57 = vadd.f32 %v2440_v24, %v2328_v17  ;;  %v2330_v51 = vadd.f32 %v2329_v20, %v10232_v5 }
 0x1a9   : > { %v10267_v31 = vpop.f32.mrf.mxu0 }
 0x1aa   : > { %v10269_v33 = vpop.f32.mrf.mxu1  ;;  %v10271_v55 = vadd.f32 %v2442_v40, %v2330_v51 }
 0x1ab   : > { %v10273_v34 = vpop.f32.mrf.mxu0 }
 0x1ac   : > { %v10275_v18 = vpop.f32.mrf.mxu1 }
 0x1ad   : > { %v2337_v8 = vpop.f32.mrf.mxu0 }
 0x1ae   : > { %v2450_v42 = vpop.f32.mrf.mxu1  ;;  %v2338_v30 = vadd.f32 %v2337_v8, %v10229_v48 }
 0x1af   : > { %v2339_v63 = vpop.f32.mrf.mxu0 }
 0x1b0   : > { %v2452_v29 = vpop.f32.mrf.mxu1  ;;  %v10278_v21 = vadd.f32 %v2450_v42, %v2338_v30  ;;  %v2340_v26 = vadd.f32 %v2339_v63, %v10232_v5 }
 0x1b1   : > { %v10281_v23 = vpop.f32.mrf.mxu0 }
 0x1b2   : > { %v10283_v50 = vpop.f32.mrf.mxu1  ;;  %v10285_v9 = vadd.f32 %v2452_v29, %v2340_v26 }
 0x1b3   : > { %v10287_v22 = vpop.f32.mrf.mxu0 }
 0x1b4   : > { %v10289_v47 = vpop.f32.mrf.mxu1 }
 0x1b5   : > { %v2347_v52 = vpop.f32.mrf.mxu0 }
 0x1b6   : > { %v2460_v36 = vpop.f32.mrf.mxu1  ;;  %v2348_v44 = vadd.f32 %v2347_v52, %v10229_v48 }
 0x1b7   : > { %v2349_v38 = vpop.f32.mrf.mxu0 }
 0x1b8   : > { %v2462_v49 = vpop.f32.mrf.mxu1  ;;  %v10292_v45 = vadd.f32 %v2460_v36, %v2348_v44  ;;  %v2350_v1 = vadd.f32 %v2349_v38, %v10232_v5 }
 0x1b9   : > { %v10295_v41 = vpop.f32.mrf.mxu0 }
 0x1ba   : > { %v10297_v4 = vpop.f32.mrf.mxu1  ;;  %v10299_v35 = vadd.f32 %v2462_v49, %v2350_v1 }
 0x1bb   : > { %v10301_v46 = vpop.f32.mrf.mxu0 }
 0x1bc   : > { %v10303_v19 = vpop.f32.mrf.mxu1 }
 0x1bd   : > { %v2357_v43 = vpop.f32.mrf.mxu0 }
 0x1be   : > { %v2470_v6 = vpop.f32.mrf.mxu1  ;;  %v2358_v53 = vadd.f32 %v2357_v43, %v10229_v48 }
 0x1bf   : > { %v2359_v62 = vpop.f32.mrf.mxu0 }
 0x1c0   : > { %v2472_v11 = vpop.f32.mrf.mxu1  ;;  %v10306_v16 = vadd.f32 %v2470_v6, %v2358_v53  ;;  %v2360_v61 = vadd.f32 %v2359_v62, %v10232_v5 }
 0x1c1   : > { %v10309_v28 = vpop.f32.mrf.mxu0 }
 0x1c2   : > { %v10311_v56 = vpop.f32.mrf.mxu1  ;;  %v10313_v39 = vadd.f32 %v2472_v11, %v2360_v61 }
 0x1c3   : > { %v10315_v13 = vpop.f32.mrf.mxu0 }
 0x1c4   : > { %v10317_v24 = vpop.f32.mrf.mxu1 }
 0x1c5   : > { %v2367_v17 = vpop.f32.mrf.mxu0 }
 0x1c6   : > { %v2480_v20 = vpop.f32.mrf.mxu1  ;;  %v2368_v40 = vadd.f32 %v2367_v17, %v10229_v48 }
 0x1c7   : > { %v2369_v51 = vpop.f32.mrf.mxu0 }
 0x1c8   : > { %v2482_v8 = vpop.f32.mrf.mxu1  ;;  %v10320_v42 = vadd.f32 %v2480_v20, %v2368_v40  ;;  %v2370_v30 = vadd.f32 %v2369_v51, %v10232_v5  ;;  %v2312_v40 = vadd.f32 %v10238_v60, %v10229_v48 }
 0x1c9   : > { %v10323_v63 = vpop.f32.mrf.mxu0 }
 0x1ca   : > { %v10325_v29 = vpop.f32.mrf.mxu1  ;;  %v10327_v26 = vadd.f32 %v2482_v8, %v2370_v30  ;;  %v2314_v30 = vadd.f32 %v10244_v10, %v10232_v5 }
 0x1cb   : > { %v10329_v52 = vpop.f32.mrf.mxu0 }
 0x1cc   : > { %v10331_v36 = vpop.f32.mrf.mxu1  ;;  %v2427_v3 = vadd.f32 %v10246_v59, %v2314_v30 }
 0x1cd   : > { %v2377_v44 = vpop.f32.mrf.mxu0 }
 0x1ce   : > { %v2490_v38 = vpop.f32.mrf.mxu1  ;;  %v2378_v49 = vadd.f32 %v2377_v44, %v10229_v48 }
 0x1cf   : > { %v2379_v1 = vpop.f32.mrf.mxu0 }
 0x1d0   : > { %v2492_v43 = vpop.f32.mrf.mxu1  ;;  %v10334_v6 = vadd.f32 %v2490_v38, %v2378_v49  ;;  %v2380_v53 = vadd.f32 %v2379_v1, %v10232_v5  ;;  %v2425_v49 = vadd.f32 %v10240_v25, %v2312_v40 }
 0x1d1   : > { %v10337_v62 = vpop.f32.mrf.mxu0 }
 0x1d2   : > { %12028 = vst [vmem:[#allocation8_spill] sm:$0xff] %v10334_v6  ;;  %v10339_v11 = vpop.f32.mrf.mxu1  ;;  %v10341_v61 = vadd.f32 %v2492_v43, %v2380_v53 }
 0x1d3   : > { %12029 = vst [vmem:[#allocation9_spill] sm:$0xff] %v10339_v11  ;;  %v10343_v17 = vpop.f32.mrf.mxu0 }
 0x1d4   : > { %12030 = vst [vmem:[#allocation7_spill] sm:$0xff] %v10341_v61  ;;  %12031 = vst [vmem:[#allocation10_spill] sm:$0xff] %v10343_v17  ;;  %v10345_v20 = vpop.f32.mrf.mxu1 }
 0x1d5   : > { %12032 = vst [vmem:[#allocation16_spill] sm:$0xff] %v10345_v20  ;;  %v2533_v51 = vpop.f32.mrf.mxu0  ;;  %v2322_v20 = vadd.f32 %v10253_v58, %v10229_v48 }
 0x1d6   : > { %v2646_v8 = vpop.f32.mrf.mxu1  ;;  %v2534_v43 = vadd.f32 %v2533_v51, %v10235_v15 }
 0x1d7   : > { %v2535_v44 = vpop.f32.mrf.mxu0 }
 0x1d8   : > { %v2648_v38 = vpop.f32.mrf.mxu1  ;;  %v2536_v1 = vadd.f32 %v2535_v44, %v10242_v12  ;;  %v2647_v11 = vadd.f32 %v2646_v8, %v2534_v43  ;;  %v2324_v12 = vadd.f32 %v10259_v14, %v10232_v5  ;;  %v2435_v44 = vadd.f32 %v10255_v37, %v2322_v20 }
 0x1d9   : > { %v2537_v53 = vpop.f32.mrf.mxu0  ;;  %v2332_v14 = vadd.f32 %v10267_v31, %v10229_v48 }
 0x1da   : > { %v2650_v2 = vpop.f32.mrf.mxu1  ;;  %v2538_v32 = vadd.f32 %v2537_v53, %v2425_v49  ;;  %v2649_v6 = vadd.f32 %v2648_v38, %v2536_v1 }
 0x1db   : > { %v2539_v54 = vpop.f32.mrf.mxu0 }
 0x1dc   : > { %v2652_v60 = vpop.f32.mrf.mxu1  ;;  %v2651_v10 = vadd.f32 %v2650_v2, %v2538_v32  ;;  %v2540_v61 = vadd.f32 %v2539_v54, %v2427_v3  ;;  %v2728_v49 = vmax.f32 %v2649_v6, 0.0  ;;  %v2727_v2 = vmax.f32 %v2647_v11, 0.0 }
 0x1dd   : > { %v2543_v17 = vpop.f32.mrf.mxu0  ;;  %v2437_v54 = vadd.f32 %v10261_v7, %v2324_v12  ;;  %v3584_v7 = vld [vmem:[%s11967_s6 + $0x28] sm:$0x33]  ;;  %v2334_v12 = vadd.f32 %v10273_v34, %v10232_v5 }
 0x1de   : > { %v2656_v25 = vpop.f32.mrf.mxu1  ;;  %v2653_v15 = vadd.f32 %v2652_v60, %v2540_v61  ;;  %v2731_v40 = vmax.f32 %v2651_v10, 0.0  ;;  %v2544_v51 = vadd.f32 %v2543_v17, %v10250_v27  ;;  %v7293_v10 = vcombine.high %v3584_v7, %v3584_v7 }
 0x1df   : > { %v2545_v59 = vpop.f32.mrf.mxu0 }
 0x1e0   : > { %v2658_v30 = vpop.f32.mrf.mxu1  ;;  %v2732_v53 = vmax.f32 %v2653_v15, 0.0  ;;  %v2546_v58 = vadd.f32 %v2545_v59, %v10257_v0  ;;  %v2791_v61 = vpack.c.bf16 %v2731_v40, %v2727_v2  ;;  %v2657_v27 = vadd.f32 %v2656_v25, %v2544_v51  ;;  %v3583_v0 = vld [vmem:[%s11967_s6 + $0x20] sm:$0x33]  ;;  %7303 = vmatprep.subr.msk.bf16.mxu1 %vm3662_vm1, %v7293_v10 }
 0x1e1   : > { %v2547_v3 = vpop.f32.mrf.mxu0  ;;  %v7291_v31 = vcombine.high %v3583_v0, %v3583_v0  ;;  %v7290_v60 = vcombine.low %v3583_v0, %v3583_v0  ;;  %v7292_v25 = vcombine.low %v3584_v7, %v3584_v7 }
 0x1e2   : > { %v2660_v32 = vpop.f32.mrf.mxu1  ;;  %v2548_v8 = vadd.f32 %v2547_v3, %v2435_v44  ;;  %v2792_v38 = vpack.c.bf16 %v2732_v53, %v2728_v49  ;;  %v2659_v43 = vadd.f32 %v2658_v30, %v2546_v58  ;;  %v2445_v49 = vadd.f32 %v10269_v33, %v2332_v14 }
 0x1e3   : > { %v2549_v17 = vpop.f32.mrf.mxu0  ;;  %7294 = vmatprep.subr.msk.bf16.mxu0 %vm3662_vm1, %v7291_v31  ;;  %v3664_v30 = vsel %vm3662_vm1, %v7290_v60, 0  ;;  %v3670_v44 = vsel %vm3662_vm1, %v7292_v25, 0  ;;  %v2735_v34 = vmax.f32 %v2657_v27, 0.0  ;;  %v2342_v33 = vadd.f32 %v10281_v23, %v10229_v48 }
 0x1e4   : > { %v2662_v1 = vpop.f32.mrf.mxu1  ;;  %v2661_v37 = vadd.f32 %v2660_v32, %v2548_v8  ;;  %v2550_v6 = vadd.f32 %v2549_v17, %v2437_v54  ;;  %3362 = vmatprep.mubr.bf16.mxu1 %v2792_v38  ;;  %v2736_v53 = vmax.f32 %v2659_v43, 0.0  ;;  %3688 = vmatpush1.bf16.msra.mxu0 %v3664_v30  ;;  %v2447_v8 = vadd.f32 %v10275_v18, %v2334_v12 }
 0x1e5   : > { %v2553_v11 = vpop.f32.mrf.mxu0  ;;  %3363 = vmatmul.mubr.bf16.vlgmr.msra.gmra.mxu1 %v2791_v61  ;;  %v2455_v60 = vadd.f32 %v10283_v50, %v2342_v33 }
 0x1e6   : > { %v2666_v20 = vpop.f32.mrf.mxu1  ;;  %v2663_v15 = vadd.f32 %v2662_v1, %v2550_v6  ;;  %v2739_v40 = vmax.f32 %v2661_v37, 0.0  ;;  %3801 = vmatpush1.bf16.msra.mxu1 %v3670_v44  ;;  %v2554_v3 = vadd.f32 %v2553_v11, %v10264_v57  ;;  %v2344_v57 = vadd.f32 %v10287_v22, %v10232_v5 }
 0x1e7   : > { %v2555_v51 = vpop.f32.mrf.mxu0 }
 0x1e8   : > { %v2668_v59 = vpop.f32.mrf.mxu1  ;;  %v2740_v58 = vmax.f32 %v2663_v15, 0.0  ;;  %v2556_v2 = vadd.f32 %v2555_v51, %v10271_v55  ;;  %v2795_v17 = vpack.c.bf16 %v2739_v40, %v2735_v34  ;;  %v2667_v6 = vadd.f32 %v2666_v20, %v2554_v3 }
 0x1e9   : > { %v2557_v32 = vpop.f32.mrf.mxu0  ;;  %v2457_v51 = vadd.f32 %v10289_v47, %v2344_v57  ;;  %v2362_v57 = vadd.f32 %v10309_v28, %v10229_v48 }
 0x1ea   : > { %v2670_v54 = vpop.f32.mrf.mxu1  ;;  %v2558_v38 = vadd.f32 %v2557_v32, %v2445_v49  ;;  %v2796_v61 = vpack.c.bf16 %v2740_v58, %v2736_v53  ;;  %v2669_v14 = vadd.f32 %v2668_v59, %v2556_v2  ;;  %v2743_v12 = vmax.f32 %v2667_v6, 0.0 }
 0x1eb   : > { %v2559_v1 = vpop.f32.mrf.mxu0  ;;  %v2352_v53 = vadd.f32 %v10295_v41, %v10229_v48 }
 0x1ec   : > { %v2672_v37 = vpop.f32.mrf.mxu1  ;;  %v2671_v43 = vadd.f32 %v2670_v54, %v2558_v38  ;;  %v2560_v55 = vadd.f32 %v2559_v1, %v2447_v8  ;;  %3372 = vmatprep.mubr.bf16.mxu1 %v2796_v61  ;;  %v2744_v10 = vmax.f32 %v2669_v14, 0.0 }
 0x1ed   : > { %v2563_v27 = vpop.f32.mrf.mxu0  ;;  %3373 = vmatmul.mubr.bf16.gmra.mxu1 %v2795_v17  ;;  %v2465_v38 = vadd.f32 %v10297_v4, %v2352_v53 }
 0x1ee   : > { %v2676_v0 = vpop.f32.mrf.mxu1  ;;  %v2673_v18 = vadd.f32 %v2672_v37, %v2560_v55  ;;  %v2747_v7 = vmax.f32 %v2671_v43, 0.0  ;;  %v2564_v15 = vadd.f32 %v2563_v27, %v10278_v21  ;;  %v2354_v21 = vadd.f32 %v10301_v46, %v10232_v5 }
 0x1ef   : > { %v2565_v11 = vpop.f32.mrf.mxu0 }
 0x1f0   : > { %v2678_v31 = vpop.f32.mrf.mxu1  ;;  %v2748_v25 = vmax.f32 %v2673_v18, 0.0  ;;  %v2566_v23 = vadd.f32 %v2565_v11, %v10285_v9  ;;  %v2799_v22 = vpack.c.bf16 %v2747_v7, %v2743_v12  ;;  %v2677_v9 = vadd.f32 %v2676_v0, %v2564_v15 }
 0x1f1   : > { %v2567_v20 = vpop.f32.mrf.mxu0  ;;  %v2467_v43 = vadd.f32 %v10303_v19, %v2354_v21 }
 0x1f2   : > { %v2680_v40 = vpop.f32.mrf.mxu1  ;;  %v2568_v59 = vadd.f32 %v2567_v20, %v2455_v60  ;;  %v2800_v30 = vpack.c.bf16 %v2748_v25, %v2744_v10  ;;  %v2679_v50 = vadd.f32 %v2678_v31, %v2566_v23  ;;  %v2751_v1 = vmax.f32 %v2677_v9, 0.0 }
 0x1f3   : > { %v2569_v44 = vpop.f32.mrf.mxu0  ;;  %v2475_v23 = vadd.f32 %v10311_v56, %v2362_v57 }
 0x1f4   : > { %v2682_v49 = vpop.f32.mrf.mxu1  ;;  %v2681_v58 = vadd.f32 %v2680_v40, %v2568_v59  ;;  %v2570_v2 = vadd.f32 %v2569_v44, %v2457_v51  ;;  %3382 = vmatprep.mubr.bf16.mxu1 %v2800_v30  ;;  %v2752_v61 = vmax.f32 %v2679_v50, 0.0  ;;  %v2372_v50 = vadd.f32 %v10323_v63, %v10229_v48 }
 0x1f5   : > { %v2573_v34 = vpop.f32.mrf.mxu0  ;;  %3383 = vmatmul.mubr.bf16.gmra.mxu1 %v2799_v22 }
 0x1f6   : > { %v2686_v3 = vpop.f32.mrf.mxu1  ;;  %v2683_v47 = vadd.f32 %v2682_v49, %v2570_v2  ;;  %v2755_v32 = vmax.f32 %v2681_v58, 0.0  ;;  %v2574_v37 = vadd.f32 %v2573_v34, %v10292_v45  ;;  %v2364_v45 = vadd.f32 %v10315_v13, %v10232_v5 }
 0x1f7   : > { %v2575_v54 = vpop.f32.mrf.mxu0 }
 0x1f8   : > { %v2688_v8 = vpop.f32.mrf.mxu1  ;;  %v2756_v17 = vmax.f32 %v2683_v47, 0.0  ;;  %v2576_v41 = vadd.f32 %v2575_v54, %v10299_v35  ;;  %v2803_v46 = vpack.c.bf16 %v2755_v32, %v2751_v1  ;;  %v2687_v35 = vadd.f32 %v2686_v3, %v2574_v37 }
 0x1f9   : > { %v2577_v33 = vpop.f32.mrf.mxu0  ;;  %v2477_v30 = vadd.f32 %v10317_v24, %v2364_v45  ;;  %v2485_v32 = vadd.f32 %v10325_v29, %v2372_v50 }
 0x1fa   : > { %v2690_v14 = vpop.f32.mrf.mxu1  ;;  %v2578_v55 = vadd.f32 %v2577_v33, %v2465_v38  ;;  %v2804_v6 = vpack.c.bf16 %v2756_v17, %v2752_v61  ;;  %v2689_v4 = vadd.f32 %v2688_v8, %v2576_v41  ;;  %v2759_v20 = vmax.f32 %v2687_v35, 0.0  ;;  %v12034_v35 = vld [vmem:[#allocation9_spill] sm:$0xff] }
 0x1fb   : > { %v2579_v27 = vpop.f32.mrf.mxu0 }
 0x1fc   : > { %v2692_v0 = vpop.f32.mrf.mxu1  ;;  %v2691_v18 = vadd.f32 %v2690_v14, %v2578_v55  ;;  %v2580_v7 = vadd.f32 %v2579_v27, %v2467_v43  ;;  %3392 = vmatprep.mubr.bf16.mxu1 %v2804_v6  ;;  %v2760_v12 = vmax.f32 %v2689_v4, 0.0  ;;  %v2382_v55 = vadd.f32 %v10337_v62, %v10229_v48  ;;  %v12035_v48 = vld [vmem:[#allocation7_spill] sm:$0xff] }
 0x1fd   : > { %v2583_v11 = vpop.f32.mrf.mxu0  ;;  %3393 = vmatmul.mubr.bf16.gmra.mxu1 %v2803_v46 }
 0x1fe   : > { %v2696_v31 = vpop.f32.mrf.mxu1  ;;  %v2693_v19 = vadd.f32 %v2692_v0, %v2580_v7  ;;  %v2763_v60 = vmax.f32 %v2691_v18, 0.0  ;;  %v2584_v40 = vadd.f32 %v2583_v11, %v10306_v16  ;;  %v2374_v16 = vadd.f32 %v10329_v52, %v10232_v5 }
 0x1ff   : > { %v2585_v10 = vpop.f32.mrf.mxu0  ;;  %v2495_v11 = vadd.f32 %v12034_v35, %v2382_v55  ;;  %v2885_v55 = vld [vmem:[%s11966_s5] sm:$0x3] }
 0x200   : > { %v2698_v25 = vpop.f32.mrf.mxu1  ;;  %v2764_v15 = vmax.f32 %v2693_v19, 0.0  ;;  %v2586_v28 = vadd.f32 %v2585_v10, %v10313_v39  ;;  %v2807_v13 = vpack.c.bf16 %v2763_v60, %v2759_v20  ;;  %v2697_v39 = vadd.f32 %v2696_v31, %v2584_v40  ;;  %v12036_v60 = vld [vmem:[#allocation8_spill] sm:$0xff] }
 0x201   : > { %v2587_v51 = vpop.f32.mrf.mxu0  ;;  %v2487_v1 = vadd.f32 %v10331_v36, %v2374_v16  ;;  %v8112_v16 = vld [vmem:[%s11967_s6 + $0x8] ss:$16 sps:$4 sm:$0xff]  }
 0x202   : > { %v2700_v59 = vpop.f32.mrf.mxu1  ;;  %v2588_v22 = vadd.f32 %v2587_v51, %v2475_v23  ;;  %v2808_v44 = vpack.c.bf16 %v2764_v15, %v2760_v12  ;;  %v2699_v56 = vadd.f32 %v2698_v25, %v2586_v28  ;;  %v2767_v38 = vmax.f32 %v2697_v39, 0.0  ;;  %v12037_v12 = vld [vmem:[#allocation16_spill] sm:$0xff] }
 0x203   : > { %v2589_v49 = vpop.f32.mrf.mxu0  ;;  %v12038_v39 = vmov 0  }
 0x204   : > { %v2702_v53 = vpop.f32.mrf.mxu1  ;;  %v2701_v58 = vadd.f32 %v2700_v59, %v2588_v22  ;;  %v2590_v2 = vadd.f32 %v2589_v49, %v2477_v30  ;;  %3402 = vmatprep.mubr.bf16.mxu1 %v2808_v44  ;;  %v2768_v54 = vmax.f32 %v2699_v56, 0.0 }
 0x205   : > { %v2593_v9 = vpop.f32.mrf.mxu0  ;;  %3403 = vmatmul.mubr.bf16.gmra.mxu1 %v2807_v13 }
 0x206   : > { %v2706_v34 = vpop.f32.mrf.mxu1  ;;  %v2703_v24 = vadd.f32 %v2702_v53, %v2590_v2  ;;  %v2771_v3 = vmax.f32 %v2701_v58, 0.0  ;;  %v2594_v61 = vadd.f32 %v2593_v9, %v10320_v42  ;;  %v12033_v42 = vld [vmem:[#allocation10_spill] sm:$0xff]  ;;  %v8109_v9 = vld [vmem:[%s11967_s6] ss:$16 sps:$4 sm:$0xff]  }
 0x207   : > { %v2595_v21 = vpop.f32.mrf.mxu0  ;;  %v2384_v57 = vadd.f32 %v12033_v42, %v10232_v5 }
 0x208   : > { %v2708_v47 = vpop.f32.mrf.mxu1  ;;  %v2772_v8 = vmax.f32 %v2703_v24, 0.0  ;;  %v2596_v63 = vadd.f32 %v2595_v21, %v10327_v26  ;;  %v2811_v52 = vpack.c.bf16 %v2771_v3, %v2767_v38  ;;  %v2707_v26 = vadd.f32 %v2706_v34, %v2594_v61  ;;  %v8111_v34 = vld [vmem:[%s11967_s6 + $0x4] ss:$16 sps:$4 sm:$0xff]   ;;  %v8114_v24 = vld [vmem:[%s11967_s6 + $0xc] ss:$16 sps:$4 sm:$0xff]  }
 0x209   : > { %v2597_v17 = vpop.f32.mrf.mxu0  ;;  %v2497_v15 = vadd.f32 %v12037_v12, %v2384_v57  ;;  %3689 = vmatprep.subr.bf16.mxu0 %v8111_v34  ;;  %3802 = vmatprep.subr.bf16.mxu1 %v8114_v24  ;;  %v8117_v61 = vld [vmem:[%s11969_s8 + $0x18c] ss:$28 sps:$4 sm:$0xff]  }
 0x20a   : > { %v2710_v41 = vpop.f32.mrf.mxu1  ;;  %v2598_v37 = vadd.f32 %v2597_v17, %v2485_v32  ;;  %v2812_v33 = vpack.c.bf16 %v2772_v8, %v2768_v54  ;;  %v2709_v29 = vadd.f32 %v2708_v47, %v2596_v63  ;;  %v2775_v19 = vmax.f32 %v2707_v26, 0.0  ;;  %3690 = vmatpush1.bf16.msra.mxu0 %v8109_v9  ;;  %3803 = vmatpush1.bf16.msra.mxu1 %v8112_v16  ;;  %v8120_v17 = vld [vmem:[%s11969_s8 + $0x50c] ss:$28 sps:$4 sm:$0xff]   ;;  %v12040_v26 = vld [vmem:[#allocation15_spill] sm:$0xff] }
 0x20b   : > { %v2599_v14 = vpop.f32.mrf.mxu0  ;;  %5442 = vmatprep.subr.bf16.mxu0 %v8117_v61  ;;  %5555 = vmatprep.subr.bf16.mxu1 %v8120_v17  ;;  %v3523_v61 = vld [vmem:[%s10514_s29] sm:$0xff] }
 0x20c   : > { %v2712_v43 = vpop.f32.mrf.mxu1  ;;  %v2711_v6 = vadd.f32 %v2710_v41, %v2598_v37  ;;  %v2600_v46 = vadd.f32 %v2599_v14, %v2487_v1  ;;  %3412 = vmatprep.mubr.bf16.mxu1 %v2812_v33  ;;  %v2776_v31 = vmax.f32 %v2709_v29, 0.0 }
 0x20d   : > { %v2603_v27 = vpop.f32.mrf.mxu0  ;;  %3413 = vmatmul.mubr.bf16.gmra.mxu1 %v2811_v52 }
 0x20e   : > { %v2716_v0 = vpop.f32.mrf.mxu1  ;;  %v2713_v36 = vadd.f32 %v2712_v43, %v2600_v46  ;;  %v2779_v4 = vmax.f32 %v2711_v6, 0.0  ;;  %v2604_v10 = vadd.f32 %v2603_v27, %v12036_v60  ;;  %v12039_v6 = vld [vmem:[#allocation14_spill] sm:$0xff]  ;;  %v10460_v27 = vrot.slane %v2885_v55, %v12040_v26 }
 0x20f   : > { %v2605_v18 = vpop.f32.mrf.mxu0  ;;  %v10457_v46 = vrot.slane %v2885_v55, %v12039_v6 }
 0x210   : > { %v2718_v7 = vpop.f32.mrf.mxu1  ;;  %v2780_v45 = vmax.f32 %v2713_v36, 0.0  ;;  %v2606_v62 = vadd.f32 %v2605_v18, %v12035_v48  ;;  %v2815_v5 = vpack.c.bf16 %v2779_v4, %v2775_v19  ;;  %v2717_v22 = vadd.f32 %v2716_v0, %v2604_v10 }
 0x211   : > { %v2607_v25 = vpop.f32.mrf.mxu0 }
 0x212   : > { %v2720_v23 = vpop.f32.mrf.mxu1  ;;  %v2608_v28 = vadd.f32 %v2607_v25, %v2495_v11  ;;  %v2816_v20 = vpack.c.bf16 %v2780_v45, %v2776_v31  ;;  %v2719_v51 = vadd.f32 %v2718_v7, %v2606_v62  ;;  %v2783_v56 = vmax.f32 %v2717_v22, 0.0 }
 0x213   : > { %v2609_v40 = vpop.f32.mrf.mxu0 }
 0x214   : > { %v2721_v59 = vadd.f32 %v2720_v23, %v2608_v28  ;;  %v2610_v30 = vadd.f32 %v2609_v40, %v2497_v15  ;;  %3422 = vmatprep.mubr.bf16.mxu1 %v2816_v20  ;;  %v2722_v44 = vpop.f32.mrf.mxu1  ;;  %v2784_v53 = vmax.f32 %v2719_v51, 0.0 }
 0x215   : > { %3423 = vmatmul.mubr.bf16.gmra.mxu1 %v2815_v5 }
 0x216   : > { %v2723_v13 = vadd.f32 %v2722_v44, %v2610_v30  ;;  %v2787_v49 = vmax.f32 %v2721_v59, 0.0 }
 0x218   : > { %v2788_v50 = vmax.f32 %v2723_v13, 0.0  ;;  %v2819_v2 = vpack.c.bf16 %v2787_v49, %v2783_v56 }
 0x21a   : > { %v2820_v58 = vpack.c.bf16 %v2788_v50, %v2784_v53 }
 0x21c   : > { %3432 = vmatprep.mubr.bf16.mxu1 %v2820_v58 }
 0x21d   : > { %3433 = vmatmul.mubr.bf16.gmra.mxu1 %v2819_v2 }
 0x21e   : > { %3820 = vmatprep.mubr.bf16.mxu1 %v12038_v39 }
 0x225   : > { %v3251_v3 = vpop.f32.mrf.mxu0 }
 0x226   : > { %v3252_v42 = vadd.f32 %v3251_v3, %v10457_v46 }
 0x227   : > { %v3253_v21 = vpop.f32.mrf.mxu0 }
 0x228   : > { %v3254_v36 = vadd.f32 %v3253_v21, %v10460_v27 }
 0x229   : > { %v3255_v47 = vpop.f32.mrf.mxu0 }
 0x22a   : > { %v3256_v35 = vadd.f32 %v3255_v47, %v10457_v46 }
 0x22b   : > { %v3257_v32 = vpop.f32.mrf.mxu0 }
 0x22c   : > { %v3258_v45 = vadd.f32 %v3257_v32, %v10460_v27 }
 0x22d   : > { %v3261_v54 = vpop.f32.mrf.mxu0 }
 0x22e   : > { %v3262_v10 = vadd.f32 %v3261_v54, %v10457_v46 }
 0x22f   : > { %v3263_v8 = vpop.f32.mrf.mxu0 }
 0x230   : > { %v3264_v15 = vadd.f32 %v3263_v8, %v10460_v27 }
 0x231   : > { %v3265_v63 = vpop.f32.mrf.mxu0 }
 0x232   : > { %v3266_v51 = vadd.f32 %v3265_v63, %v10457_v46 }
 0x233   : > { %v3267_v38 = vpop.f32.mrf.mxu0 }
 0x234   : > { %v3268_v44 = vadd.f32 %v3267_v38, %v10460_v27 }
 0x235   : > { %v3271_v41 = vpop.f32.mrf.mxu0 }
 0x236   : > { %v3272_v56 = vadd.f32 %v3271_v41, %v10457_v46 }
 0x237   : > { %v3273_v1 = vpop.f32.mrf.mxu0 }
 0x238   : > { %v3274_v34 = vadd.f32 %v3273_v1, %v10460_v27 }
 0x239   : > { %v10440_v37 = vpop.f32.mrf.mxu0 }
 0x23a   : > { %v3276_v47 = vadd.f32 %v10440_v37, %v10457_v46 }
 0x23b   : > { %v10442_v33 = vpop.f32.mrf.mxu0 }
 0x23c   : > { %v3278_v63 = vadd.f32 %v10442_v33, %v10460_v27 }
 0x23d   : > { %v10444_v52 = vpop.f32.mrf.mxu0 }
 0x23e   : > { %v3282_v55 = vadd.f32 %v10444_v52, %v10457_v46 }
 0x23f   : > { %v10446_v14 = vpop.f32.mrf.mxu0 }
 0x241   : > { %v10448_v43 = vpop.f32.mrf.mxu0 }
 0x243   : > { %v10453_v29 = vpop.f32.mrf.mxu0 }
 0x245   : > { %v10462_v0 = vpop.f32.mrf.mxu0 }
 0x247   : > { %v10468_v4 = vpop.f32.mrf.mxu0 }
 0x249   : > { %v10478_v48 = vpop.f32.mrf.mxu0 }
 0x24b   : > { %v10487_v28 = vpop.f32.mrf.mxu0 }
 0x24d   : > { %v10496_v13 = vpop.f32.mrf.mxu0 }
 0x24f   : > { %v10506_v16 = vpop.f32.mrf.mxu0 }
 0x251   : > { %v10522_v38 = vpop.f32.mrf.mxu0 }
 0x2a5   : > { %v3364_v57 = vpop.f32.mrf.mxu1 }
 0x2a6   : > { %v10470_v18 = vadd.f32 %v3364_v57, %v3252_v42 }
 0x2a7   : > { %v3366_v7 = vpop.f32.mrf.mxu1 }
 0x2a8   : > { %3443 = vst [vmem:[%s10473_s16] sm:$0xff] %v10470_v18  ;;  %v3367_v11 = vadd.f32 %v3366_v7, %v3254_v36  ;;  %v3524_v36 = vld [vmem:[%s10514_s29 + $0x8] sm:$0xff] }
 0x2a9   : > { %v3368_v31 = vpop.f32.mrf.mxu1 }
 0x2aa   : > { %3444 = vst [vmem:[%s10473_s16 + $0x8] sm:$0xff] %v3367_v11  ;;  %v3475_v62 = vmul.f32 0.5, %v3367_v11  ;;  %v10481_v19 = vadd.f32 %v3368_v31, %v3256_v35  ;;  %v3284_v35 = vadd.f32 %v10446_v14, %v10460_v27  ;;  %v10535_v11 = vpop.f32.mrf.mxu0  ;;  %v3288_v14 = vadd.f32 %v10453_v29, %v10460_v27 }
 0x2ab   : > { %v3370_v60 = vpop.f32.mrf.mxu1  ;;  %v3292_v29 = vadd.f32 %v10462_v0, %v10457_v46  ;;  %v8123_v0 = vld [vmem:[%s11969_s8 + $0x154] ss:$28 sps:$4 sm:$0xff]  }
 0x2ac   : > { %v3491_v25 = vmul.f32 1.442695, %v3475_v62  ;;  %3445 = vst [vmem:[%s10473_s16 + $0x10] sm:$0xff] %v10481_v19  ;;  %v3371_v23 = vadd.f32 %v3370_v60, %v3258_v45  ;;  %v3286_v60 = vadd.f32 %v10448_v43, %v10457_v46 }
 0x2ad   : > { %v3374_v12 = vpop.f32.mrf.mxu1 }
 0x2ae   : > { %8435 = vpow2.f32 %v3491_v25  ;;  %3446 = vst [vmem:[%s10473_s16 + $0x18] sm:$0xff] %v3371_v23  ;;  %v3476_v20 = vmul.f32 0.5, %v3371_v23  ;;  %v10490_v5 = vadd.f32 %v3374_v12, %v3262_v10 }
 0x2af   : > { %v3376_v40 = vpop.f32.mrf.mxu1 }
 0x2b0   : > { %v3493_v59 = vmul.f32 1.442695, %v3476_v20  ;;  %3447 = vst [vmem:[%s10473_s16 + $0x20] sm:$0xff] %v10490_v5  ;;  %v3377_v30 = vadd.f32 %v3376_v40, %v3264_v15  ;;  %v10547_v20 = vpop.f32.mrf.mxu0 }
 0x2b1   : > { %v3378_v22 = vpop.f32.mrf.mxu1 }
 0x2b2   : > { %8437 = vpow2.f32 %v3493_v59  ;;  %3448 = vst [vmem:[%s10473_s16 + $0x28] sm:$0xff] %v3377_v30  ;;  %v3477_v49 = vmul.f32 0.5, %v3377_v30  ;;  %v10499_v53 = vadd.f32 %v3378_v22, %v3266_v51  ;;  %v3525_v59 = vld [vmem:[%s10514_s29 + $0x10] sm:$0xff] }
 0x2b3   : > { %v3380_v50 = vpop.f32.mrf.mxu1 }
 0x2b4   : > { %v3495_v58 = vmul.f32 1.442695, %v3477_v49  ;;  %3449 = vst [vmem:[%s10473_s16 + $0x30] sm:$0xff] %v10499_v53  ;;  %v3381_v2 = vadd.f32 %v3380_v50, %v3268_v44  ;;  %v8118_v50 = vld [vmem:[%s11969_s8 + $0x508] ss:$28 sps:$4 sm:$0xff]  }
 0x2b5   : > { %v3384_v9 = vpop.f32.mrf.mxu1 }
 0x2b6   : > { %8439 = vpow2.f32 %v3495_v58  ;;  %3450 = vst [vmem:[%s10473_s16 + $0x38] sm:$0xff] %v3381_v2  ;;  %v3478_v24 = vmul.f32 0.5, %v3381_v2  ;;  %v10509_v3 = vadd.f32 %v3384_v9, %v3272_v56  ;;  %v3526_v58 = vld [vmem:[%s10514_s29 + $0x18] sm:$0xff]  ;;  %v8126_v9 = vld [vmem:[%s11969_s8 + $0x4d4] ss:$28 sps:$4 sm:$0xff]  }
 0x2b7   : > { %v3386_v21 = vpop.f32.mrf.mxu1 }
 0x2b8   : > { %v3497_v32 = vmul.f32 1.442695, %v3478_v24  ;;  %3451 = vst [vmem:[%s10473_s16 + $0x40] sm:$0xff] %v10509_v3  ;;  %v3387_v54 = vadd.f32 %v3386_v21, %v3274_v34  ;;  %v3294_v34 = vadd.f32 %v10468_v4, %v10460_v27  ;;  %v10573_v24 = vpop.f32.mrf.mxu0  ;;  %v3296_v4 = vadd.f32 %v10478_v48, %v10457_v46 }
 0x2b9   : > { %v3388_v8 = vpop.f32.mrf.mxu1  ;;  %v3298_v48 = vadd.f32 %v10487_v28, %v10460_v27 }
 0x2ba   : > { %8441 = vpow2.f32 %v3497_v32  ;;  %3452 = vst [vmem:[%s10473_s16 + $0x48] sm:$0xff] %v3387_v54  ;;  %v3479_v17 = vmul.f32 0.5, %v3387_v54  ;;  %v10526_v41 = vadd.f32 %v3388_v8, %v3276_v47 }
 0x2bb   : > { %v8436_v1 = vpop.eup %8435  ;;  %v3390_v37 = vpop.f32.mrf.mxu1 }
 0x2bc   : > { %v3499_v42 = vmul.f32 1.442695, %v3479_v17  ;;  %3453 = vst [vmem:[%s10473_s16 + $0x50] sm:$0xff] %v10526_v41  ;;  %v3391_v57 = vadd.f32 %v3390_v37, %v3278_v63  ;;  %v3539_v33 = vmul.f32 %v8436_v1, %v3523_v61  ;;  %v8121_v17 = vld [vmem:[%s11969_s8 + $0x150] ss:$28 sps:$4 sm:$0xff]  }
 0x2bd   : > { %v3394_v7 = vpop.f32.mrf.mxu1  ;;  %v8124_v1 = vld [vmem:[%s11969_s8 + $0x4d0] ss:$28 sps:$4 sm:$0xff]  }
 0x2be   : > { %8443 = vpow2.f32 %v3499_v42  ;;  %3454 = vst [vmem:[%s10473_s16 + $0x58] sm:$0xff] %v3391_v57  ;;  %v3480_v31 = vmul.f32 0.5, %v3391_v57  ;;  %v10538_v45 = vadd.f32 %v3394_v7, %v3282_v55  ;;  %v3555_v12 = vadd.f32 %v3539_v33, %v10470_v18  ;;  %v8129_v42 = vld [vmem:[%s11969_s8 + $0x11c] ss:$28 sps:$4 sm:$0xff]   ;;  %v10601_v33 = vpop.f32.mrf.mxu0  ;;  %v3527_v7 = vld [vmem:[%s10514_s29 + $0x20] sm:$0xff] }
 0x2bf   : > { %v8438_v52 = vpop.eup %8437  ;;  %v3396_v62 = vpop.f32.mrf.mxu1  ;;  %v8132_v57 = vld [vmem:[%s11969_s8 + $0x49c] ss:$28 sps:$4 sm:$0xff]  }
 0x2c0   : > { %v3540_v10 = vmul.f32 %v8438_v52, %v3524_v36  ;;  %v3501_v25 = vmul.f32 1.442695, %v3480_v31  ;;  %3455 = vst [vmem:[%s10473_s16 + $0x60] sm:$0xff] %v10538_v45  ;;  %v3397_v23 = vadd.f32 %v3396_v62, %v3284_v35  ;;  %v3302_v52 = vadd.f32 %v10496_v13, %v10457_v46  ;;  %v8135_v13 = vld [vmem:[%s11969_s8 + $0xe4] ss:$28 sps:$4 sm:$0xff]  }
 0x2c1   : > { %v3398_v15 = vpop.f32.mrf.mxu1 }
 0x2c2   : > { %v3556_v40 = vadd.f32 %v3540_v10, %v10481_v19  ;;  %8445 = vpow2.f32 %v3501_v25  ;;  %3456 = vst [vmem:[%s10473_s16 + $0x68] sm:$0xff] %v3397_v23  ;;  %v3481_v43 = vmul.f32 0.5, %v3397_v23  ;;  %v10551_v51 = vadd.f32 %v3398_v15, %v3286_v60  ;;  %v8115_v19 = vld [vmem:[%s11969_s8 + $0x188] ss:$28 sps:$4 sm:$0xff]   ;;  %v8127_v25 = vld [vmem:[%s11969_s8 + $0x118] ss:$28 sps:$4 sm:$0xff]  }
 0x2c3   : > { %v8440_v30 = vpop.eup %8439  ;;  %v3400_v22 = vpop.f32.mrf.mxu1  ;;  %v8138_v15 = vld [vmem:[%s11969_s8 + $0x464] ss:$28 sps:$4 sm:$0xff]  }
 0x2c4   : > { %v3571_v18 = vpack.c.bf16 %v3556_v40, %v3555_v12  ;;  %v3503_v44 = vmul.f32 1.442695, %v3481_v43  ;;  %3457 = vst [vmem:[%s10473_s16 + $0x70] sm:$0xff] %v10551_v51  ;;  %v3401_v49 = vadd.f32 %v3400_v22, %v3288_v14  ;;  %v3541_v2 = vmul.f32 %v8440_v30, %v3525_v59  ;;  %v3528_v14 = vld [vmem:[%s10514_s29 + $0x28] sm:$0xff]  ;;  %v10627_v43 = vpop.f32.mrf.mxu0 }
 0x2c5   : > { %v3404_v56 = vpop.f32.mrf.mxu1  ;;  %v3304_v40 = vadd.f32 %v10506_v16, %v10460_v27  ;;  %v3306_v16 = vadd.f32 %v10522_v38, %v10457_v46  ;;  %v3308_v38 = vadd.f32 %v10535_v11, %v10460_v27 }
 0x2c6   : > { %8447 = vpow2.f32 %v3503_v44  ;;  %3458 = vst [vmem:[%s10473_s16 + $0x78] sm:$0xff] %v3401_v49  ;;  %v3482_v21 = vmul.f32 0.5, %v3401_v49  ;;  %v10576_v47 = vadd.f32 %v3404_v56, %v3292_v29  ;;  %7295 = vmatmul.mubr.msk.bf16.vlgmr.msra.gmra.mxu0 %vm3637_vm2, %v3571_v18  ;;  %7304 = vmatmul.mubr.msk.bf16.vlgmr.msra.gmra.mxu1 %vm3637_vm2, %v3571_v18  ;;  %v3557_v55 = vadd.f32 %v3541_v2, %v10490_v5  ;;  %v8141_v2 = vld [vmem:[%s11969_s8 + $0xac] ss:$28 sps:$4 sm:$0xff]  }
 0x2c7   : > { %v8442_v32 = vpop.eup %8441  ;;  %v3406_v54 = vpop.f32.mrf.mxu1  ;;  %3717 = vmatprep.mubr.bf16.mxu0 %v12038_v39  ;;  %3830 = vmatprep.mubr.bf16.mxu1 %v12038_v39 }
 0x2c8   : > { %v3505_v8 = vmul.f32 1.442695, %v3482_v21  ;;  %3459 = vst [vmem:[%s10473_s16 + $0x80] sm:$0xff] %v10576_v47  ;;  %v3407_v63 = vadd.f32 %v3406_v54, %v3294_v34  ;;  %v3542_v61 = vmul.f32 %v8442_v32, %v3526_v58  ;;  %5443 = vmatpush1.bf16.msra.mxu0 %v8115_v19  ;;  %5556 = vmatpush1.bf16.msra.mxu1 %v8118_v50  ;;  %v8133_v19 = vld [vmem:[%s11969_s8 + $0xe0] ss:$28 sps:$4 sm:$0xff]   ;;  %v3529_v21 = vld [vmem:[%s10514_s29 + $0x30] sm:$0xff] }
 0x2c9   : > { %v3408_v37 = vpop.f32.mrf.mxu1  ;;  %5444 = vmatprep.subr.bf16.mxu0 %v8123_v0  ;;  %5557 = vmatprep.subr.bf16.mxu1 %v8126_v9  ;;  %v8136_v50 = vld [vmem:[%s11969_s8 + $0x460] ss:$28 sps:$4 sm:$0xff]   ;;  %v8144_v0 = vld [vmem:[%s11969_s8 + $0x42c] ss:$28 sps:$4 sm:$0xff]   ;;  %v3321_v9 = vpop.f32.mrf.mxu0 }
 0x2ca   : > { %8449 = vpow2.f32 %v3505_v8  ;;  %3460 = vst [vmem:[%s10473_s16 + $0x88] sm:$0xff] %v3407_v63  ;;  %v3483_v36 = vmul.f32 0.5, %v3407_v63  ;;  %v10604_v28 = vadd.f32 %v3408_v37, %v3296_v4  ;;  %v3558_v5 = vadd.f32 %v3542_v61, %v10499_v53  ;;  %v8130_v53 = vld [vmem:[%s11969_s8 + $0x498] ss:$28 sps:$4 sm:$0xff]  }
 0x2cb   : > { %v8444_v35 = vpop.eup %8443  ;;  %v3410_v31 = vpop.f32.mrf.mxu1  ;;  %v3312_v4 = vadd.f32 %v10547_v20, %v10457_v46  ;;  %v8147_v20 = vld [vmem:[%s11969_s8 + $0x74] ss:$28 sps:$4 sm:$0xff]  }
 0x2cc   : > { %v3507_v62 = vmul.f32 1.442695, %v3483_v36  ;;  %3461 = vst [vmem:[%s10473_s16 + $0x90] sm:$0xff] %v10604_v28  ;;  %v3411_v60 = vadd.f32 %v3410_v31, %v3298_v48  ;;  %v3572_v10 = vpack.c.bf16 %v3558_v5, %v3557_v55  ;;  %5445 = vmatpush1.bf16.msra.mxu0 %v8121_v17  ;;  %5558 = vmatpush1.bf16.msra.mxu1 %v8124_v1  ;;  %v8139_v17 = vld [vmem:[%s11969_s8 + $0xa8] ss:$28 sps:$4 sm:$0xff]   ;;  %v3530_v48 = vld [vmem:[%s10514_s29 + $0x38] sm:$0xff] }
 0x2cd   : > { %v3414_v23 = vpop.f32.mrf.mxu1  ;;  %v3543_v12 = vmul.f32 %v8444_v35, %v3527_v7  ;;  %5446 = vmatprep.subr.bf16.mxu0 %v8129_v42  ;;  %5559 = vmatprep.subr.bf16.mxu1 %v8132_v57  ;;  %v8150_v55 = vld [vmem:[%s11969_s8 + $0x3f4] ss:$28 sps:$4 sm:$0xff]   ;;  %v3314_v42 = vadd.f32 %v10573_v24, %v10460_v27  ;;  %v3323_v57 = vpop.f32.mrf.mxu0  ;;  %v3316_v31 = vadd.f32 %v10601_v33, %v10457_v46 }
 0x2ce   : > { %8451 = vpow2.f32 %v3507_v62  ;;  %3462 = vst [vmem:[%s10473_s16 + $0x98] sm:$0xff] %v3411_v60  ;;  %v3484_v59 = vmul.f32 0.5, %v3411_v60  ;;  %v10630_v30 = vadd.f32 %v3414_v23, %v3302_v52  ;;  %7296 = vmatmul.mubr.msk.bf16.gmra.mxu0 %vm3637_vm2, %v3572_v10  ;;  %7305 = vmatmul.mubr.msk.bf16.gmra.mxu1 %vm3637_vm2, %v3572_v10  ;;  %v8145_v60 = vld [vmem:[%s11969_s8 + $0x70] ss:$28 sps:$4 sm:$0xff]   ;;  %v3318_v33 = vadd.f32 %v10627_v43, %v10460_v27  ;;  %v8153_v23 = vld [vmem:[%s11969_s8 + $0x3c] ss:$28 sps:$4 sm:$0xff]  }
 0x2cf   : > { %v8446_v22 = vpop.eup %8445  ;;  %v3416_v29 = vpop.f32.mrf.mxu1  ;;  %3727 = vmatprep.mubr.bf16.mxu0 %v12038_v39  ;;  %3840 = vmatprep.mubr.bf16.mxu1 %v12038_v39  ;;  %v3559_v58 = vadd.f32 %v3543_v12, %v10509_v3  ;;  %v8148_v10 = vld [vmem:[%s11969_s8 + $0x3f0] ss:$28 sps:$4 sm:$0xff]  }
 0x2d0   : > { %v3509_v18 = vmul.f32 1.442695, %v3484_v59  ;;  %3463 = vst [vmem:[%s10473_s16 + $0xa0] sm:$0xff] %v10630_v30  ;;  %v3417_v44 = vadd.f32 %v3416_v29, %v3304_v40  ;;  %v3544_v49 = vmul.f32 %v8446_v22, %v3528_v14  ;;  %5447 = vmatpush1.bf16.msra.mxu0 %v8127_v25  ;;  %5560 = vmatpush1.bf16.msra.mxu1 %v8130_v53  ;;  %v8156_v14 = vld [vmem:[%s11969_s8 + $0x3bc] ss:$28 sps:$4 sm:$0xff]   ;;  %v3325_v12 = vpop.f32.mrf.mxu0  ;;  %v3531_v40 = vld [vmem:[%s10514_s29 + $0x40] sm:$0xff] }
 0x2d1   : > { %v3418_v56 = vpop.f32.mrf.mxu1  ;;  %5448 = vmatprep.subr.bf16.mxu0 %v8135_v13  ;;  %5561 = vmatprep.subr.bf16.mxu1 %v8138_v15  ;;  %v3322_v22 = vadd.f32 %v3321_v9, %v10457_v46 }
 0x2d2   : > { %8453 = vpow2.f32 %v3509_v18  ;;  %3464 = vst [vmem:[%s10473_s16 + $0xa8] sm:$0xff] %v3417_v44  ;;  %v3485_v34 = vmul.f32 0.5, %v3417_v44  ;;  %v10656_v11 = vadd.f32 %v3418_v56, %v3306_v16  ;;  %v3560_v3 = vadd.f32 %v3544_v49, %v10526_v41  ;;  %v8142_v41 = vld [vmem:[%s11969_s8 + $0x428] ss:$28 sps:$4 sm:$0xff]   ;;  %v8151_v44 = vld [vmem:[%s11969_s8 + $0x38] ss:$28 sps:$4 sm:$0xff]  }
 0x2d3   : > { %v8448_v32 = vpop.eup %8447  ;;  %v3420_v54 = vpop.f32.mrf.mxu1  ;;  %v8162_v56 = vld [vmem:[%s11969_s8 + $0x384] ss:$28 sps:$4 sm:$0xff]  }
 0x2d4   : > { %v3511_v8 = vmul.f32 1.442695, %v3485_v34  ;;  %3465 = vst [vmem:[%s10473_s16 + $0xb0] sm:$0xff] %v10656_v11  ;;  %v3421_v63 = vadd.f32 %v3420_v54, %v3308_v38  ;;  %v3573_v61 = vpack.c.bf16 %v3560_v3, %v3559_v58  ;;  %5449 = vmatpush1.bf16.msra.mxu0 %v8133_v19  ;;  %5562 = vmatpush1.bf16.msra.mxu1 %v8136_v50  ;;  %v3532_v19 = vld [vmem:[%s10514_s29 + $0x48] sm:$0xff]  ;;  %v8159_v38 = vld [vmem:[%s11969_s8 + $0x4] ss:$28 sps:$4 sm:$0xff]  }
 0x2d5   : > { %v3424_v1 = vpop.f32.mrf.mxu1  ;;  %v3545_v37 = vmul.f32 %v8448_v32, %v3529_v21  ;;  %5450 = vmatprep.subr.bf16.mxu0 %v8141_v2  ;;  %5563 = vmatprep.subr.bf16.mxu1 %v8144_v0  ;;  %v3324_v58 = vadd.f32 %v3323_v57, %v10460_v27  ;;  %v3327_v2 = vpop.f32.mrf.mxu0  ;;  %v3326_v21 = vadd.f32 %v3325_v12, %v10457_v46 }
 0x2d6   : > { %8455 = vpow2.f32 %v3511_v8  ;;  %3466 = vst [vmem:[%s10473_s16 + $0xb8] sm:$0xff] %v3421_v63  ;;  %v3486_v36 = vmul.f32 0.5, %v3421_v63  ;;  %v10680_v5 = vadd.f32 %v3424_v1, %v3312_v4  ;;  %7297 = vmatmul.mubr.msk.bf16.gmra.mxu0 %vm3637_vm2, %v3573_v61  ;;  %7306 = vmatmul.mubr.msk.bf16.gmra.mxu1 %vm3637_vm2, %v3573_v61  ;;  %v8157_v8 = vld [vmem:[%s11969_s8] ss:$28 sps:$4 sm:$0xff]   ;;  %v3328_v61 = vadd.f32 %v3327_v2, %v10460_v27  ;;  %v8168_v1 = vld [vmem:[%s11969_s8 + $0x6cc] ss:$28 sps:$4 sm:$0xff]  }
 0x2d7   : > { %v8450_v7 = vpop.eup %8449  ;;  %v3426_v35 = vpop.f32.mrf.mxu1  ;;  %3737 = vmatprep.mubr.bf16.mxu0 %v12038_v39  ;;  %3850 = vmatprep.mubr.bf16.mxu1 %v12038_v39  ;;  %v3561_v53 = vadd.f32 %v3545_v37, %v10538_v45  ;;  %v8160_v63 = vld [vmem:[%s11969_s8 + $0x380] ss:$28 sps:$4 sm:$0xff]   ;;  %v3537_v2 = vld [vmem:[%s10514_s29 + $0x70] sm:$0xff] }
 0x2d8   : > { %v3513_v24 = vmul.f32 1.442695, %v3486_v36  ;;  %3467 = vst [vmem:[%s10473_s16 + $0xc0] sm:$0xff] %v10680_v5  ;;  %v3427_v52 = vadd.f32 %v3426_v35, %v3314_v42  ;;  %v3546_v62 = vmul.f32 %v8450_v7, %v3530_v48  ;;  %5451 = vmatpush1.bf16.msra.mxu0 %v8139_v17  ;;  %5564 = vmatpush1.bf16.msra.mxu1 %v8142_v41  ;;  %v8165_v41 = vld [vmem:[%s11969_s8 + $0x34c] ss:$28 sps:$4 sm:$0xff]  }
 0x2d9   : > { %v3428_v25 = vpop.f32.mrf.mxu1  ;;  %5452 = vmatprep.subr.bf16.mxu0 %v8147_v20  ;;  %5565 = vmatprep.subr.bf16.mxu1 %v8150_v55  ;;  %v3533_v55 = vld [vmem:[%s10514_s29 + $0x50] sm:$0xff]  ;;  %v8163_v7 = vld [vmem:[%s11969_s8 + $0x348] ss:$28 sps:$4 sm:$0xff]  }
 0x2da   : > { %8457 = vpow2.f32 %v3513_v24  ;;  %3468 = vst [vmem:[%s10473_s16 + $0xc8] sm:$0xff] %v3427_v52  ;;  %v3487_v13 = vmul.f32 0.5, %v3427_v52  ;;  %v10706_v15 = vadd.f32 %v3428_v25, %v3316_v31  ;;  %v3562_v45 = vadd.f32 %v3546_v62, %v10551_v51  ;;  %v8154_v51 = vld [vmem:[%s11969_s8 + $0x3b8] ss:$28 sps:$4 sm:$0xff]   ;;  %v8166_v35 = vld [vmem:[%s11969_s8 + $0x6c8] ss:$28 sps:$4 sm:$0xff]  }
 0x2db   : > { %v8452_v43 = vpop.eup %8451  ;;  %v3430_v59 = vpop.f32.mrf.mxu1  ;;  %v8171_v31 = vld [vmem:[%s11969_s8 + $0x314] ss:$28 sps:$4 sm:$0xff]  }
 0x2dc   : > { %v3515_v29 = vmul.f32 1.442695, %v3487_v13  ;;  %3469 = vst [vmem:[%s10473_s16 + $0xd0] sm:$0xff] %v10706_v15  ;;  %v3431_v16 = vadd.f32 %v3430_v59, %v3318_v33  ;;  %v3574_v18 = vpack.c.bf16 %v3562_v45, %v3561_v53  ;;  %5453 = vmatpush1.bf16.msra.mxu0 %v8145_v60  ;;  %5566 = vmatpush1.bf16.msra.mxu1 %v8148_v10  ;;  %v8174_v24 = vld [vmem:[%s11969_s8 + $0x694] ss:$28 sps:$4 sm:$0xff]  }
 0x2dd   : > { %v3434_v49 = vpop.f32.mrf.mxu1  ;;  %v3547_v50 = vmul.f32 %v8452_v43, %v3531_v40  ;;  %5454 = vmatprep.subr.bf16.mxu0 %v8153_v23  ;;  %5567 = vmatprep.subr.bf16.mxu1 %v8156_v14  ;;  %v8169_v25 = vld [vmem:[%s11969_s8 + $0x310] ss:$28 sps:$4 sm:$0xff]   ;;  %v8177_v23 = vld [vmem:[%s11969_s8 + $0x2dc] ss:$28 sps:$4 sm:$0xff]   ;;  %v3535_v40 = vld [vmem:[%s10514_s29 + $0x60] sm:$0xff] }
 0x2de   : > { %8459 = vpow2.f32 %v3515_v29  ;;  %3470 = vst [vmem:[%s10473_s16 + $0xd8] sm:$0xff] %v3431_v16  ;;  %v3488_v0 = vmul.f32 0.5, %v3431_v16  ;;  %v10728_v9 = vadd.f32 %v3434_v49, %v3322_v22  ;;  %7298 = vmatmul.mubr.msk.bf16.gmra.mxu0 %vm3637_vm2, %v3574_v18  ;;  %7307 = vmatmul.mubr.msk.bf16.gmra.mxu1 %vm3637_vm2, %v3574_v18  ;;  %v8172_v53 = vld [vmem:[%s11969_s8 + $0x690] ss:$28 sps:$4 sm:$0xff]   ;;  %v8180_v14 = vld [vmem:[%s11969_s8 + $0x65c] ss:$28 sps:$4 sm:$0xff]  }
 0x2df   : > { %v8454_v34 = vpop.eup %8453  ;;  %v3436_v3 = vpop.f32.mrf.mxu1  ;;  %3747 = vmatprep.mubr.bf16.mxu0 %v12038_v39  ;;  %3860 = vmatprep.mubr.bf16.mxu1 %v12038_v39  ;;  %v3563_v17 = vadd.f32 %v3547_v50, %v10576_v47  ;;  %v8175_v59 = vld [vmem:[%s11969_s8 + $0x2d8] ss:$28 sps:$4 sm:$0xff]   ;;  %v3536_v29 = vld [vmem:[%s10514_s29 + $0x68] sm:$0xff]  ;;  %v8184_v49 = vld [vmem:[%s11969_s8 + $0x620] ss:$28 sps:$4 sm:$0xff]  }
 0x2e0   : > { %v3517_v32 = vmul.f32 1.442695, %v3488_v0  ;;  %3471 = vst [vmem:[%s10473_s16 + $0xe0] sm:$0xff] %v10728_v9  ;;  %v3437_v54 = vadd.f32 %v3436_v3, %v3324_v58  ;;  %v3548_v4 = vmul.f32 %v8454_v34, %v3532_v19  ;;  %5455 = vmatpush1.bf16.msra.mxu0 %v8151_v44  ;;  %5568 = vmatpush1.bf16.msra.mxu1 %v8154_v51  ;;  %v8178_v22 = vld [vmem:[%s11969_s8 + $0x658] ss:$28 sps:$4 sm:$0xff]  }
 0x2e1   : > { %v3438_v46 = vpop.f32.mrf.mxu1  ;;  %5456 = vmatprep.subr.bf16.mxu0 %v8159_v38  ;;  %5569 = vmatprep.subr.bf16.mxu1 %v8162_v56  ;;  %v8181_v51 = vld [vmem:[%s11969_s8 + $0x2a0] ss:$28 sps:$4 sm:$0xff]   ;;  %v8189_v19 = vld [vmem:[%s11969_s8 + $0x26c] ss:$28 sps:$4 sm:$0xff]  }
 0x2e2   : > { %8461 = vpow2.f32 %v3517_v32  ;;  %3472 = vst [vmem:[%s10473_s16 + $0xe8] sm:$0xff] %v3437_v54  ;;  %v3489_v48 = vmul.f32 0.5, %v3437_v54  ;;  %v10752_v37 = vadd.f32 %v3438_v46, %v3326_v21  ;;  %v3564_v27 = vadd.f32 %v3548_v4, %v10604_v28  ;;  %v3534_v28 = vld [vmem:[%s10514_s29 + $0x58] sm:$0xff]  ;;  %v8192_v50 = vld [vmem:[%s11969_s8 + $0x5ec] ss:$28 sps:$4 sm:$0xff]  }
 0x2e3   : > { %v8456_v20 = vpop.eup %8455  ;;  %v3440_v47 = vpop.f32.mrf.mxu1  ;;  %v8187_v34 = vld [vmem:[%s11969_s8 + $0x268] ss:$28 sps:$4 sm:$0xff]   ;;  %v3538_v21 = vld [vmem:[%s10514_s29 + $0x78] sm:$0xff]  ;;  %s8697_s29 = sshll.u32 %s8756_s26, 4  ;;  %s8698_s29 = int_to_ptr.vmem [resolvable:$false] %s8697_s29 }
 0x2e4   : > { %v3519_v42 = vmul.f32 1.442695, %v3489_v48  ;;  %3473 = vst [vmem:[%s10473_s16 + $0xf0] sm:$0xff] %v10752_v37  ;;  %v3441_v57 = vadd.f32 %v3440_v47, %v3328_v61  ;;  %v3575_v36 = vpack.c.bf16 %v3564_v27, %v3563_v17  ;;  %5457 = vmatpush1.bf16.msra.mxu0 %v8157_v8  ;;  %5570 = vmatpush1.bf16.msra.mxu1 %v8160_v63  ;;  %v8190_v3 = vld [vmem:[%s11969_s8 + $0x5e8] ss:$28 sps:$4 sm:$0xff]   ;;  %s8699_s24 = scalar_lea.vmem %s8698_s29, 8192  ;;  %p8700_p0 = scmp.lt.s32.totalorder %s11815_s25, %s8698_s29 }
 0x2e5   : > { %5458 = vmatprep.subr.bf16.mxu0 %v8165_v41  ;;  %5571 = vmatprep.subr.bf16.mxu1 %v8168_v1  ;;  %v3549_v62 = vmul.f32 %v8456_v20, %v3533_v55  ;;  %v8195_v63 = vld [vmem:[%s11969_s8 + $0x234] ss:$28 sps:$4 sm:$0xff]   ;;  %v8201_v46 = vld [vmem:[%s11969_s8 + $0x1fc] ss:$28 sps:$4 sm:$0xff]   ;;  %v8207_v48 = vld [vmem:[%s11969_s8 + $0x1c4] ss:$28 sps:$4 sm:$0xff]   ;;  %p8701_p1 = scmp.lt.s32.totalorder %s8699_s24, %s8693_s15 }
 0x2e6   : > { %8463 = vpow2.f32 %v3519_v42  ;;  %3474 = vst [vmem:[%s10473_s16 + $0xf8] sm:$0xff] %v3441_v57  ;;  %v3490_v52 = vmul.f32 0.5, %v3441_v57  ;;  %7299 = vmatmul.mubr.msk.bf16.gmra.mxu0 %vm3637_vm2, %v3575_v36  ;;  %7308 = vmatmul.mubr.msk.bf16.gmra.mxu1 %vm3637_vm2, %v3575_v36  ;;  %v8193_v61 = vld [vmem:[%s11969_s8 + $0x230] ss:$28 sps:$4 sm:$0xff]   ;;  %v8204_v17 = vld [vmem:[%s11969_s8 + $0x57c] ss:$28 sps:$4 sm:$0xff]  }
 0x2e7   : > { %v8458_v60 = vpop.eup %8457  ;;  %3757 = vmatprep.mubr.bf16.mxu0 %v12038_v39  ;;  %3870 = vmatprep.mubr.bf16.mxu1 %v12038_v39  ;;  %v3565_v12 = vadd.f32 %v3549_v62, %v10630_v30  ;;  %v8183_v30 = vld [vmem:[%s11969_s8 + $0x2a4] ss:$28 sps:$4 sm:$0xff]   ;;  %v8199_v41 = vld [vmem:[%s11969_s8 + $0x1f8] ss:$28 sps:$4 sm:$0xff]   ;;  %s11821_s16 = scalar_lea.sflag [#allocation3], %s12045_s21  ;;  %p8702_p2 = por %p8701_p1, %p8700_p0 }
 0x2e8   : > { %v3521_v10 = vmul.f32 1.442695, %v3490_v52  ;;  %v3550_v33 = vmul.f32 %v8458_v60, %v3534_v28  ;;  %5459 = vmatpush2.bf16.msra.mxu0 %v8163_v7  ;;  %5572 = vmatpush2.bf16.msra.mxu1 %v8166_v35  ;;  %v8202_v1 = vld [vmem:[%s11969_s8 + $0x578] ss:$28 sps:$4 sm:$0xff]   ;;  %v8205_v27 = vld [vmem:[%s11969_s8 + $0x1c0] ss:$28 sps:$4 sm:$0xff]  }
 0x2e9   : > { %5460 = vmatprep.subr.bf16.mxu0 %v8171_v31  ;;  %5573 = vmatprep.subr.bf16.mxu1 %v8174_v24  ;;  %v8208_v20 = vld [vmem:[%s11969_s8 + $0x540] ss:$28 sps:$4 sm:$0xff]   ;;  %v8213_v47 = vld [vmem:[%s11969_s8 + $0x194] ss:$28 sps:$4 sm:$0xff]   ;;  %v12041_v35 = vld [vmem:[#allocation12_spill] sm:$0xff]  ;;  %p8703_p3 = pnand %p8702_p2, %p8696_p13 }
 0x2ea   : > { %8465 = vpow2.f32 %v3521_v10  ;;  %v3566_v13 = vadd.f32 %v3550_v33, %v10656_v11  ;;  %v8186_v11 = vld [vmem:[%s11969_s8 + $0x624] ss:$28 sps:$4 sm:$0xff]   ;;  %v8216_v55 = vld [vmem:[%s11969_s8 + $0x514] ss:$28 sps:$4 sm:$0xff]  }
 0x2eb   : > { %v8460_v45 = vpop.eup %8459  ;;  %v3585_v42 = vld [vmem:[%s11968_s7] sm:$0xf] }
 0x2ec   : > { %v3576_v43 = vpack.c.bf16 %v3566_v13, %v3565_v12  ;;  %5461 = vmatpush2.bf16.msra.mxu0 %v8169_v25  ;;  %5574 = vmatpush2.bf16.msra.mxu1 %v8172_v53  ;;  %v3551_v16 = vmul.f32 %v8460_v45, %v3535_v40  ;;  %v10884_v7 = vrot.slane %v3585_v42, %v12040_v26  ;;  %v12042_v24 = vld [vmem:[#allocation11_spill] sm:$0xff] }
 0x2ed   : > { %5462 = vmatprep.subr.bf16.mxu0 %v8177_v23  ;;  %5575 = vmatprep.subr.bf16.mxu1 %v8180_v14  ;;  %v10887_v28 = vrot.slane %v3585_v42, %v12041_v35  ;;  %v10890_v31 = vrot.slane %v3585_v42, %v12039_v6  ;;  %v10893_v52 = vrot.slane %v3585_v42, %v12042_v24 }
 0x2ee   : > { %7300 = vmatmul.mubr.msk.bf16.gmra.mxu0 %vm3637_vm2, %v3576_v43  ;;  %7309 = vmatmul.mubr.msk.bf16.gmra.mxu1 %vm3637_vm2, %v3576_v43  ;;  %v3567_v38 = vadd.f32 %v3551_v16, %v10680_v5 }
 0x2ef   : > { %v8462_v18 = vpop.eup %8461  ;;  %3767 = vmatprep.mubr.bf16.mxu0 %v12038_v39  ;;  %3880 = vmatprep.mubr.bf16.mxu1 %v12038_v39 }
 0x2f0   : > { %v3552_v44 = vmul.f32 %v8462_v18, %v3536_v29  ;;  %5463 = vmatpush2.bf16.msra.mxu0 %v8175_v59  ;;  %5576 = vmatpush2.bf16.msra.mxu1 %v8178_v22 }
 0x2f1   : > { %5464 = vmatprep.subr.bf16.mxu0 %v8183_v30  ;;  %5577 = vmatprep.subr.bf16.mxu1 %v8186_v11 }
 0x2f2   : > { %v3568_v56 = vadd.f32 %v3552_v44, %v10706_v15 }
 0x2f3   : > { %v8464_v58 = vpop.eup %8463 }
 0x2f4   : > { %v3577_v0 = vpack.c.bf16 %v3568_v56, %v3567_v38  ;;  %5465 = vmatpush2.bf16.msra.mxu0 %v8181_v51  ;;  %5578 = vmatpush2.bf16.msra.mxu1 %v8184_v49  ;;  %v3553_v5 = vmul.f32 %v8464_v58, %v3537_v2  ;;  %v8211_v2 = vld [vmem:[%s11969_s8 + $0x190] ss:$28 sps:$4 sm:$0xff]  }
 0x2f5   : > { %5466 = vmatprep.subr.bf16.mxu0 %v8189_v19  ;;  %5579 = vmatprep.subr.bf16.mxu1 %v8192_v50 }
 0x2f6   : > { %7301 = vmatmul.mubr.msk.bf16.gmra.mxu0 %vm3637_vm2, %v3577_v0  ;;  %7310 = vmatmul.mubr.msk.bf16.gmra.mxu1 %vm3637_vm2, %v3577_v0  ;;  %v3569_v54 = vadd.f32 %v3553_v5, %v10728_v9  ;;  %v8196_v9 = vld [vmem:[%s11969_s8 + $0x5b0] ss:$28 sps:$4 sm:$0xff]  }
 0x2f7   : > { %v8466_v15 = vpop.eup %8465  ;;  %3777 = vmatprep.mubr.bf16.mxu0 %v12038_v39  ;;  %3890 = vmatprep.mubr.bf16.mxu1 %v12038_v39  ;;  %v8198_v39 = vld [vmem:[%s11969_s8 + $0x5b4] ss:$28 sps:$4 sm:$0xff]  }
 0x2f8   : > { %v3554_v32 = vmul.f32 %v8466_v15, %v3538_v21  ;;  %5467 = vmatpush2.bf16.msra.mxu0 %v8187_v34  ;;  %5580 = vmatpush2.bf16.msra.mxu1 %v8190_v3  ;;  %v8214_v0 = vld [vmem:[%s11969_s8 + $0x510] ss:$28 sps:$4 sm:$0xff]  }
 0x2f9   : > { %5468 = vmatprep.subr.bf16.mxu0 %v8195_v63  ;;  %5581 = vmatprep.subr.bf16.mxu1 %v8198_v39 }
 0x2fa   : > { %v3570_v4 = vadd.f32 %v3554_v32, %v10752_v37  ;;  %v8210_v37 = vld [vmem:[%s11969_s8 + $0x544] ss:$28 sps:$4 sm:$0xff]   ;;  %v8219_v32 = vld [vmem:[%s11969_s8 + $0x15c] ss:$28 sps:$4 sm:$0xff]  }
 0x2fc   : > { %v3578_v8 = vpack.c.bf16 %v3570_v4, %v3569_v54  ;;  %5469 = vmatpush2.bf16.msra.mxu0 %v8193_v61  ;;  %5582 = vmatpush2.bf16.msra.mxu1 %v8196_v9  ;;  %v8222_v54 = vld [vmem:[%s11969_s8 + $0x4dc] ss:$28 sps:$4 sm:$0xff]  }
 0x2fd   : > { %5470 = vmatprep.subr.bf16.mxu0 %v8201_v46  ;;  %5583 = vmatprep.subr.bf16.mxu1 %v8204_v17 }
 0x2fe   : > { %7302 = vmatmul.mubr.msk.bf16.gmra.mxu0 %vm3637_vm2, %v3578_v8  ;;  %7311 = vmatmul.mubr.msk.bf16.gmra.mxu1 %vm3637_vm2, %v3578_v8 }
 0x300   : > { %5471 = vmatpush2.bf16.msra.mxu0 %v8199_v41  ;;  %5584 = vmatpush2.bf16.msra.mxu1 %v8202_v1  ;;  %v8217_v1 = vld [vmem:[%s11969_s8 + $0x158] ss:$28 sps:$4 sm:$0xff]  }
 0x301   : > { %5472 = vmatprep.subr.bf16.mxu0 %v8207_v48  ;;  %5585 = vmatprep.subr.bf16.mxu1 %v8210_v37 }
 0x304   : > { %5473 = vmatpush2.bf16.msra.mxu0 %v8205_v27  ;;  %5586 = vmatpush2.bf16.msra.mxu1 %v8208_v20 }
 0x305   : > { %5668 = vmatprep.subr.bf16.mxu0 %v8213_v47  ;;  %5781 = vmatprep.subr.bf16.mxu1 %v8216_v55  ;;  %v8220_v47 = vld [vmem:[%s11969_s8 + $0x4d8] ss:$28 sps:$4 sm:$0xff]   ;;  %v8225_v55 = vld [vmem:[%s11969_s8 + $0x124] ss:$28 sps:$4 sm:$0xff]  }
 0x386   : > { %v3709_v57 = vpop.f32.mrf.mxu0  ;;  %v3822_v36 = vpop.f32.mrf.mxu1 }
 0x387   : > { %v3710_v12 = vadd.f32 %v3709_v57, %v10890_v31  ;;  %v3823_v13 = vadd.f32 %v3822_v36, %v10893_v52 }
 0x388   : > { %v3711_v62 = vpop.f32.mrf.mxu0  ;;  %v3824_v60 = vpop.f32.mrf.mxu1 }
 0x389   : > { %v3712_v25 = vadd.f32 %v3711_v62, %v10884_v7  ;;  %v3825_v53 = vadd.f32 %v3824_v60, %v10887_v28  ;;  %v3901_v49 = vmax.f32 %v3710_v12, 0.0  ;;  %v3903_v19 = vmax.f32 %v3823_v13, 0.0  ;;  %v8228_v12 = vld [vmem:[%s11969_s8 + $0x4a4] ss:$28 sps:$4 sm:$0xff]  }
 0x38a   : > { %v3713_v10 = vpop.f32.mrf.mxu0  ;;  %v3826_v33 = vpop.f32.mrf.mxu1 }
 0x38b   : > { %v3714_v23 = vadd.f32 %v3713_v10, %v10890_v31  ;;  %v3827_v14 = vadd.f32 %v3826_v33, %v10893_v52  ;;  %v3902_v16 = vmax.f32 %v3712_v25, 0.0  ;;  %v3904_v18 = vmax.f32 %v3825_v53, 0.0 }
 0x38c   : > { %v3715_v45 = vpop.f32.mrf.mxu0  ;;  %v3828_v40 = vpop.f32.mrf.mxu1 }
 0x38d   : > { %v3716_v43 = vadd.f32 %v3715_v45, %v10884_v7  ;;  %v3829_v59 = vadd.f32 %v3828_v40, %v10887_v28  ;;  %v3905_v22 = vmax.f32 %v3714_v23, 0.0  ;;  %v3907_v29 = vmax.f32 %v3827_v14, 0.0  ;;  %v8223_v14 = vld [vmem:[%s11969_s8 + $0x120] ss:$28 sps:$4 sm:$0xff]  }
 0x38e   : > { %v3719_v30 = vpop.f32.mrf.mxu0  ;;  %v3832_v11 = vpop.f32.mrf.mxu1 }
 0x38f   : > { %v3906_v44 = vmax.f32 %v3716_v43, 0.0  ;;  %v3908_v51 = vmax.f32 %v3829_v59, 0.0  ;;  %v10913_v34 = vpack.c.bf16 %v3905_v22, %v3901_v49  ;;  %v10915_v3 = vpack.c.bf16 %v3907_v29, %v3903_v19  ;;  %v8226_v22 = vld [vmem:[%s11969_s8 + $0x4a0] ss:$28 sps:$4 sm:$0xff]   ;;  %v8231_v29 = vld [vmem:[%s11969_s8 + $0xec] ss:$28 sps:$4 sm:$0xff]  }
 0x390   : > { %v3721_v50 = vpop.f32.mrf.mxu0  ;;  %v3834_v38 = vpop.f32.mrf.mxu1  ;;  %v3720_v39 = vadd.f32 %v3719_v30, %v10890_v31  ;;  %v3833_v61 = vadd.f32 %v3832_v11, %v10893_v52 }
 0x391   : > { %v10903_v56 = vpack.c.bf16 %v3906_v44, %v3902_v16  ;;  %v10905_v58 = vpack.c.bf16 %v3908_v51, %v3904_v18  ;;  %v3722_v21 = vadd.f32 %v3721_v50, %v10884_v7  ;;  %v3835_v4 = vadd.f32 %v3834_v38, %v10887_v28  ;;  %v8234_v18 = vld [vmem:[%s11969_s8 + $0x46c] ss:$28 sps:$4 sm:$0xff]  }
 0x392   : > { %v3723_v5 = vpop.f32.mrf.mxu0  ;;  %v3836_v15 = vpop.f32.mrf.mxu1  ;;  %v3909_v60 = vmax.f32 %v3720_v39, 0.0  ;;  %v3911_v10 = vmax.f32 %v3833_v61, 0.0 }
 0x393   : > { %v3724_v8 = vadd.f32 %v3723_v5, %v10890_v31  ;;  %v3837_v63 = vadd.f32 %v3836_v15, %v10893_v52  ;;  %5474 = vmatprep.mubr.bf16.mxu0 %v10903_v56  ;;  %5587 = vmatprep.mubr.bf16.mxu1 %v10905_v58  ;;  %v3910_v42 = vmax.f32 %v3722_v21, 0.0  ;;  %v3912_v57 = vmax.f32 %v3835_v4, 0.0 }
 0x394   : > { %v3725_v9 = vpop.f32.mrf.mxu0  ;;  %v3838_v46 = vpop.f32.mrf.mxu1  ;;  %5475 = vmatmul.mubr.bf16.vlgmr.msra.gmra.mxu0 %v10913_v34  ;;  %5588 = vmatmul.mubr.bf16.vlgmr.msra.gmra.mxu1 %v10915_v3 }
 0x395   : > { %v3726_v17 = vadd.f32 %v3725_v9, %v10884_v7  ;;  %v3839_v41 = vadd.f32 %v3838_v46, %v10887_v28  ;;  %5669 = vmatpush1.bf16.msra.mxu0 %v8211_v2  ;;  %5782 = vmatpush1.bf16.msra.mxu1 %v8214_v0  ;;  %v3913_v48 = vmax.f32 %v3724_v8, 0.0  ;;  %v3915_v37 = vmax.f32 %v3837_v63, 0.0  ;;  %v8229_v2 = vld [vmem:[%s11969_s8 + $0xe8] ss:$28 sps:$4 sm:$0xff]  }
 0x396   : > { %v3729_v27 = vpop.f32.mrf.mxu0  ;;  %v3842_v20 = vpop.f32.mrf.mxu1  ;;  %5670 = vmatprep.subr.bf16.mxu0 %v8219_v32  ;;  %5783 = vmatprep.subr.bf16.mxu1 %v8222_v54  ;;  %v8232_v32 = vld [vmem:[%s11969_s8 + $0x468] ss:$28 sps:$4 sm:$0xff]   ;;  %v8237_v54 = vld [vmem:[%s11969_s8 + $0xb4] ss:$28 sps:$4 sm:$0xff]  }
 0x397   : > { %v3914_v36 = vmax.f32 %v3726_v17, 0.0  ;;  %v3916_v62 = vmax.f32 %v3839_v41, 0.0  ;;  %v10954_v13 = vpack.c.bf16 %v3913_v48, %v3909_v60  ;;  %v10956_v45 = vpack.c.bf16 %v3915_v37, %v3911_v10  ;;  %v8235_v48 = vld [vmem:[%s11969_s8 + $0xb0] ss:$28 sps:$4 sm:$0xff]  }
 0x398   : > { %v3731_v33 = vpop.f32.mrf.mxu0  ;;  %v3844_v25 = vpop.f32.mrf.mxu1  ;;  %v3730_v44 = vadd.f32 %v3729_v27, %v10890_v31  ;;  %v3843_v51 = vadd.f32 %v3842_v20, %v10893_v52  ;;  %v8240_v37 = vld [vmem:[%s11969_s8 + $0x434] ss:$28 sps:$4 sm:$0xff]  }
 0x399   : > { %v10944_v53 = vpack.c.bf16 %v3914_v36, %v3910_v42  ;;  %v10946_v23 = vpack.c.bf16 %v3916_v62, %v3912_v57  ;;  %5671 = vmatpush1.bf16.msra.mxu0 %v8217_v1  ;;  %v3732_v40 = vadd.f32 %v3731_v33, %v10884_v7  ;;  %5784 = vmatpush1.bf16.msra.mxu1 %v8220_v47  ;;  %v8238_v57 = vld [vmem:[%s11969_s8 + $0x430] ss:$28 sps:$4 sm:$0xff]   ;;  %v8243_v36 = vld [vmem:[%s11969_s8 + $0x7c] ss:$28 sps:$4 sm:$0xff]  }
 0x39a   : > { %v3733_v43 = vpop.f32.mrf.mxu0  ;;  %v3846_v59 = vpop.f32.mrf.mxu1  ;;  %5672 = vmatprep.subr.bf16.mxu0 %v8225_v55  ;;  %v3845_v30 = vadd.f32 %v3844_v25, %v10887_v28  ;;  %5785 = vmatprep.subr.bf16.mxu1 %v8228_v12  ;;  %v3917_v61 = vmax.f32 %v3730_v44, 0.0  ;;  %v3919_v9 = vmax.f32 %v3843_v51, 0.0  ;;  %v8246_v33 = vld [vmem:[%s11969_s8 + $0x3fc] ss:$28 sps:$4 sm:$0xff]   ;;  %v8249_v44 = vld [vmem:[%s11969_s8 + $0x44] ss:$28 sps:$4 sm:$0xff]  }
 0x39b   : > { %v3734_v11 = vadd.f32 %v3733_v43, %v10890_v31  ;;  %v3847_v16 = vadd.f32 %v3846_v59, %v10893_v52  ;;  %5484 = vmatprep.mubr.bf16.mxu0 %v10944_v53  ;;  %5597 = vmatprep.mubr.bf16.mxu1 %v10946_v23  ;;  %v3918_v4 = vmax.f32 %v3732_v40, 0.0 }
 0x39c   : > { %v3735_v49 = vpop.f32.mrf.mxu0  ;;  %v3848_v19 = vpop.f32.mrf.mxu1  ;;  %5485 = vmatmul.mubr.bf16.gmra.mxu0 %v10954_v13  ;;  %5598 = vmatmul.mubr.bf16.gmra.mxu1 %v10956_v45  ;;  %v3920_v8 = vmax.f32 %v3845_v30, 0.0 }
 0x39d   : > { %v3736_v50 = vadd.f32 %v3735_v49, %v10884_v7  ;;  %v3849_v38 = vadd.f32 %v3848_v19, %v10887_v28  ;;  %5673 = vmatpush1.bf16.msra.mxu0 %v8223_v14  ;;  %v3921_v0 = vmax.f32 %v3734_v11, 0.0  ;;  %v3923_v21 = vmax.f32 %v3847_v16, 0.0  ;;  %5786 = vmatpush1.bf16.msra.mxu1 %v8226_v22  ;;  %v8241_v22 = vld [vmem:[%s11969_s8 + $0x78] ss:$28 sps:$4 sm:$0xff]  }
 0x39e   : > { %v3739_v5 = vpop.f32.mrf.mxu0  ;;  %v3852_v15 = vpop.f32.mrf.mxu1  ;;  %5674 = vmatprep.subr.bf16.mxu0 %v8231_v29  ;;  %5787 = vmatprep.subr.bf16.mxu1 %v8234_v18  ;;  %v8244_v18 = vld [vmem:[%s11969_s8 + $0x3f8] ss:$28 sps:$4 sm:$0xff]  }
 0x39f   : > { %v3922_v63 = vmax.f32 %v3736_v50, 0.0  ;;  %v3924_v39 = vmax.f32 %v3849_v38, 0.0  ;;  %v10998_v27 = vpack.c.bf16 %v3921_v0, %v3917_v61  ;;  %v11000_v20 = vpack.c.bf16 %v3923_v21, %v3919_v9  ;;  %v8250_v9 = vld [vmem:[%s11969_s8 + $0x3c0] ss:$28 sps:$4 sm:$0xff]  }
 0x3a0   : > { %v3741_v46 = vpop.f32.mrf.mxu0  ;;  %v3854_v17 = vpop.f32.mrf.mxu1  ;;  %v3740_v25 = vadd.f32 %v3739_v5, %v10890_v31  ;;  %v3853_v14 = vadd.f32 %v3852_v15, %v10893_v52 }
 0x3a1   : > { %v10988_v41 = vpack.c.bf16 %v3922_v63, %v3918_v4  ;;  %v10990_v1 = vpack.c.bf16 %v3924_v39, %v3920_v8  ;;  %5675 = vmatpush1.bf16.msra.mxu0 %v8229_v2  ;;  %v3742_v47 = vadd.f32 %v3741_v46, %v10884_v7  ;;  %5788 = vmatpush1.bf16.msra.mxu1 %v8232_v32  ;;  %v8247_v32 = vld [vmem:[%s11969_s8 + $0x40] ss:$28 sps:$4 sm:$0xff]   ;;  %v8255_v46 = vld [vmem:[%s11969_s8 + $0xc] ss:$28 sps:$4 sm:$0xff]  }
 0x3a2   : > { %v3743_v55 = vpop.f32.mrf.mxu0  ;;  %v3856_v42 = vpop.f32.mrf.mxu1  ;;  %5676 = vmatprep.subr.bf16.mxu0 %v8237_v54  ;;  %v3855_v62 = vadd.f32 %v3854_v17, %v10887_v28  ;;  %5789 = vmatprep.subr.bf16.mxu1 %v8240_v37  ;;  %v3925_v38 = vmax.f32 %v3740_v25, 0.0  ;;  %v3927_v2 = vmax.f32 %v3853_v14, 0.0  ;;  %v8252_v54 = vld [vmem:[%s11969_s8 + $0x3c4] ss:$28 sps:$4 sm:$0xff]  }
 0x3a3   : > { %v3744_v60 = vadd.f32 %v3743_v55, %v10890_v31  ;;  %v3857_v10 = vadd.f32 %v3856_v42, %v10893_v52  ;;  %5494 = vmatprep.mubr.bf16.mxu0 %v10988_v41  ;;  %5607 = vmatprep.mubr.bf16.mxu1 %v10990_v1  ;;  %v3926_v51 = vmax.f32 %v3742_v47, 0.0  ;;  %v8258_v47 = vld [vmem:[%s11969_s8 + $0x38c] ss:$28 sps:$4 sm:$0xff]  }
 0x3a4   : > { %v3745_v12 = vpop.f32.mrf.mxu0  ;;  %v3858_v40 = vpop.f32.mrf.mxu1  ;;  %5495 = vmatmul.mubr.bf16.gmra.mxu0 %v10998_v27  ;;  %5608 = vmatmul.mubr.bf16.gmra.mxu1 %v11000_v20  ;;  %v3928_v49 = vmax.f32 %v3855_v62, 0.0 }
 0x3a5   : > { %v3746_v43 = vadd.f32 %v3745_v12, %v10884_v7  ;;  %v3859_v59 = vadd.f32 %v3858_v40, %v10887_v28  ;;  %5677 = vmatpush1.bf16.msra.mxu0 %v8235_v48  ;;  %v3929_v29 = vmax.f32 %v3744_v60, 0.0  ;;  %v3931_v30 = vmax.f32 %v3857_v10, 0.0  ;;  %5790 = vmatpush1.bf16.msra.mxu1 %v8238_v57  ;;  %v8253_v10 = vld [vmem:[%s11969_s8 + $0x8] ss:$28 sps:$4 sm:$0xff]  }
 0x3a6   : > { %v3749_v11 = vpop.f32.mrf.mxu0  ;;  %v3862_v16 = vpop.f32.mrf.mxu1  ;;  %5678 = vmatprep.subr.bf16.mxu0 %v8243_v36  ;;  %5791 = vmatprep.subr.bf16.mxu1 %v8246_v33  ;;  %v8256_v40 = vld [vmem:[%s11969_s8 + $0x388] ss:$28 sps:$4 sm:$0xff]  }
 0x3a7   : > { %v3930_v19 = vmax.f32 %v3746_v43, 0.0  ;;  %v3932_v50 = vmax.f32 %v3859_v59, 0.0  ;;  %v11042_v4 = vpack.c.bf16 %v3929_v29, %v3925_v38  ;;  %v11044_v8 = vpack.c.bf16 %v3931_v30, %v3927_v2  ;;  %v8261_v43 = vld [vmem:[%s11969_s8 + $0x354] ss:$28 sps:$4 sm:$0xff]  }
 0x3a8   : > { %v3751_v0 = vpop.f32.mrf.mxu0  ;;  %v3864_v21 = vpop.f32.mrf.mxu1  ;;  %v3750_v55 = vadd.f32 %v3749_v11, %v10890_v31  ;;  %v3863_v42 = vadd.f32 %v3862_v16, %v10893_v52 }
 0x3a9   : > { %v11032_v5 = vpack.c.bf16 %v3930_v19, %v3926_v51  ;;  %v11034_v15 = vpack.c.bf16 %v3932_v50, %v3928_v49  ;;  %5679 = vmatpush1.bf16.msra.mxu0 %v8241_v22  ;;  %v3752_v63 = vadd.f32 %v3751_v0, %v10884_v7  ;;  %5792 = vmatpush1.bf16.msra.mxu1 %v8244_v18  ;;  %v8259_v19 = vld [vmem:[%s11969_s8 + $0x350] ss:$28 sps:$4 sm:$0xff]  }
 0x3aa   : > { %v3753_v39 = vpop.f32.mrf.mxu0  ;;  %v3866_v61 = vpop.f32.mrf.mxu1  ;;  %5680 = vmatprep.subr.bf16.mxu0 %v8249_v44  ;;  %v3865_v17 = vadd.f32 %v3864_v21, %v10887_v28  ;;  %5793 = vmatprep.subr.bf16.mxu1 %v8252_v54  ;;  %v3933_v11 = vmax.f32 %v3750_v55, 0.0  ;;  %v3935_v16 = vmax.f32 %v3863_v42, 0.0  ;;  %v8264_v50 = vld [vmem:[%s11969_s8 + $0x6d4] ss:$28 sps:$4 sm:$0xff]  }
 0x3ab   : > { %v3754_v48 = vadd.f32 %v3753_v39, %v10890_v31  ;;  %v3867_v37 = vadd.f32 %v3866_v61, %v10893_v52  ;;  %5504 = vmatprep.mubr.bf16.mxu0 %v11032_v5  ;;  %5617 = vmatprep.mubr.bf16.mxu1 %v11034_v15  ;;  %v3934_v59 = vmax.f32 %v3752_v63, 0.0  ;;  %v8262_v54 = vld [vmem:[%s11969_s8 + $0x6d0] ss:$28 sps:$4 sm:$0xff]   ;;  %v8267_v63 = vld [vmem:[%s11969_s8 + $0x31c] ss:$28 sps:$4 sm:$0xff]  }
 0x3ac   : > { %v3755_v57 = vpop.f32.mrf.mxu0  ;;  %v3868_v36 = vpop.f32.mrf.mxu1  ;;  %5505 = vmatmul.mubr.bf16.gmra.mxu0 %v11042_v4  ;;  %5618 = vmatmul.mubr.bf16.gmra.mxu1 %v11044_v8  ;;  %v3936_v22 = vmax.f32 %v3865_v17, 0.0 }
 0x3ad   : > { %v3756_v62 = vadd.f32 %v3755_v57, %v10884_v7  ;;  %v3869_v60 = vadd.f32 %v3868_v36, %v10887_v28  ;;  %5681 = vmatpush1.bf16.msra.mxu0 %v8247_v32  ;;  %v3937_v33 = vmax.f32 %v3754_v48, 0.0  ;;  %v3939_v25 = vmax.f32 %v3867_v37, 0.0  ;;  %5794 = vmatpush1.bf16.msra.mxu1 %v8250_v9  ;;  %v8265_v57 = vld [vmem:[%s11969_s8 + $0x318] ss:$28 sps:$4 sm:$0xff]  }
 0x3ae   : > { %v3759_v14 = vpop.f32.mrf.mxu0  ;;  %v3872_v12 = vpop.f32.mrf.mxu1  ;;  %5682 = vmatprep.subr.bf16.mxu0 %v8255_v46  ;;  %5795 = vmatprep.subr.bf16.mxu1 %v8258_v47  ;;  %v8270_v46 = vld [vmem:[%s11969_s8 + $0x69c] ss:$28 sps:$4 sm:$0xff]  }
 0x3af   : > { %v3938_v29 = vmax.f32 %v3756_v62, 0.0  ;;  %v3940_v30 = vmax.f32 %v3869_v60, 0.0  ;;  %v11086_v38 = vpack.c.bf16 %v3937_v33, %v3933_v11  ;;  %v11088_v2 = vpack.c.bf16 %v3939_v25, %v3935_v16  ;;  %v8268_v33 = vld [vmem:[%s11969_s8 + $0x698] ss:$28 sps:$4 sm:$0xff]   ;;  %v8273_v25 = vld [vmem:[%s11969_s8 + $0x2e4] ss:$28 sps:$4 sm:$0xff]  }
 0x3b0   : > { %v3761_v18 = vpop.f32.mrf.mxu0  ;;  %v3874_v44 = vpop.f32.mrf.mxu1  ;;  %v3760_v17 = vadd.f32 %v3759_v14, %v10890_v31  ;;  %v3873_v48 = vadd.f32 %v3872_v12, %v10893_v52 }
 0x3b1   : > { %v11076_v51 = vpack.c.bf16 %v3938_v29, %v3934_v59  ;;  %v11078_v49 = vpack.c.bf16 %v3940_v30, %v3936_v22  ;;  %5683 = vmatpush1.bf16.msra.mxu0 %v8253_v10  ;;  %v3762_v0 = vadd.f32 %v3761_v18, %v10884_v7  ;;  %5796 = vmatpush1.bf16.msra.mxu1 %v8256_v40  ;;  %v8271_v18 = vld [vmem:[%s11969_s8 + $0x2e0] ss:$28 sps:$4 sm:$0xff]  }
 0x3b2   : > { %v3763_v21 = vpop.f32.mrf.mxu0  ;;  %v3876_v32 = vpop.f32.mrf.mxu1  ;;  %5684 = vmatprep.subr.bf16.mxu0 %v8261_v43  ;;  %v3875_v39 = vadd.f32 %v3874_v44, %v10887_v28  ;;  %5797 = vmatprep.subr.bf16.mxu1 %v8264_v50  ;;  %v3941_v59 = vmax.f32 %v3760_v17, 0.0  ;;  %v3943_v22 = vmax.f32 %v3873_v48, 0.0  ;;  %v8276_v44 = vld [vmem:[%s11969_s8 + $0x664] ss:$28 sps:$4 sm:$0xff]  }
 0x3b3   : > { %v3764_v61 = vadd.f32 %v3763_v21, %v10890_v31  ;;  %v3877_v9 = vadd.f32 %v3876_v32, %v10893_v52  ;;  %5514 = vmatprep.mubr.bf16.mxu0 %v11076_v51  ;;  %5627 = vmatprep.mubr.bf16.mxu1 %v11078_v49  ;;  %v3942_v14 = vmax.f32 %v3762_v0, 0.0 }
 0x3b4   : > { %v3765_v37 = vpop.f32.mrf.mxu0  ;;  %v3878_v47 = vpop.f32.mrf.mxu1  ;;  %5515 = vmatmul.mubr.bf16.gmra.mxu0 %v11086_v38  ;;  %5628 = vmatmul.mubr.bf16.gmra.mxu1 %v11088_v2  ;;  %v3944_v12 = vmax.f32 %v3875_v39, 0.0 }
 0x3b5   : > { %v3766_v55 = vadd.f32 %v3765_v37, %v10884_v7  ;;  %v3879_v42 = vadd.f32 %v3878_v47, %v10887_v28  ;;  %5685 = vmatpush2.bf16.msra.mxu0 %v8259_v19  ;;  %v3945_v36 = vmax.f32 %v3764_v61, 0.0  ;;  %v3947_v62 = vmax.f32 %v3877_v9, 0.0  ;;  %5798 = vmatpush2.bf16.msra.mxu1 %v8262_v54  ;;  %v8274_v54 = vld [vmem:[%s11969_s8 + $0x660] ss:$28 sps:$4 sm:$0xff]  }
 0x3b6   : > { %v3769_v60 = vpop.f32.mrf.mxu0  ;;  %v3882_v10 = vpop.f32.mrf.mxu1  ;;  %5686 = vmatprep.subr.bf16.mxu0 %v8267_v63  ;;  %5799 = vmatprep.subr.bf16.mxu1 %v8270_v46  ;;  %v8279_v63 = vld [vmem:[%s11969_s8 + $0x2ac] ss:$28 sps:$4 sm:$0xff]  }
 0x3b7   : > { %v3946_v40 = vmax.f32 %v3766_v55, 0.0  ;;  %v3948_v43 = vmax.f32 %v3879_v42, 0.0  ;;  %v11130_v19 = vpack.c.bf16 %v3945_v36, %v3941_v59  ;;  %v11132_v50 = vpack.c.bf16 %v3947_v62, %v3943_v22  ;;  %v8282_v46 = vld [vmem:[%s11969_s8 + $0x62c] ss:$28 sps:$4 sm:$0xff]  }
 0x3b8   : > { %v3771_v29 = vpop.f32.mrf.mxu0  ;;  %v3884_v30 = vpop.f32.mrf.mxu1  ;;  %v3770_v17 = vadd.f32 %v3769_v60, %v10890_v31  ;;  %v3883_v48 = vadd.f32 %v3882_v10, %v10893_v52 }
 0x3b9   : > { %v11120_v11 = vpack.c.bf16 %v3946_v40, %v3942_v14  ;;  %v11122_v16 = vpack.c.bf16 %v3948_v43, %v3944_v12  ;;  %5687 = vmatpush2.bf16.msra.mxu0 %v8265_v57  ;;  %v3772_v0 = vadd.f32 %v3771_v29, %v10884_v7  ;;  %5800 = vmatpush2.bf16.msra.mxu1 %v8268_v33  ;;  %v8277_v57 = vld [vmem:[%s11969_s8 + $0x2a8] ss:$28 sps:$4 sm:$0xff]  }
 0x3ba   : > { %v3773_v21 = vpop.f32.mrf.mxu0  ;;  %v3886_v32 = vpop.f32.mrf.mxu1  ;;  %5688 = vmatprep.subr.bf16.mxu0 %v8273_v25  ;;  %v3885_v39 = vadd.f32 %v3884_v30, %v10887_v28  ;;  %5801 = vmatprep.subr.bf16.mxu1 %v8276_v44  ;;  %v8280_v33 = vld [vmem:[%s11969_s8 + $0x628] ss:$28 sps:$4 sm:$0xff]   ;;  %v8285_v25 = vld [vmem:[%s11969_s8 + $0x274] ss:$28 sps:$4 sm:$0xff]   ;;  %v3949_v59 = vmax.f32 %v3770_v17, 0.0  ;;  %v3951_v22 = vmax.f32 %v3883_v48, 0.0 }
 0x3bb   : > { %v3774_v61 = vadd.f32 %v3773_v21, %v10890_v31  ;;  %v3887_v9 = vadd.f32 %v3886_v32, %v10893_v52  ;;  %5524 = vmatprep.mubr.bf16.mxu0 %v11120_v11  ;;  %5637 = vmatprep.mubr.bf16.mxu1 %v11122_v16  ;;  %v3950_v14 = vmax.f32 %v3772_v0, 0.0  ;;  %v8283_v21 = vld [vmem:[%s11969_s8 + $0x270] ss:$28 sps:$4 sm:$0xff]  }
 0x3bc   : > { %v3775_v37 = vpop.f32.mrf.mxu0  ;;  %v3888_v47 = vpop.f32.mrf.mxu1  ;;  %5525 = vmatmul.mubr.bf16.gmra.mxu0 %v11130_v19  ;;  %5638 = vmatmul.mubr.bf16.gmra.mxu1 %v11132_v50  ;;  %v3952_v12 = vmax.f32 %v3885_v39, 0.0  ;;  %v8288_v0 = vld [vmem:[%s11969_s8 + $0x5f4] ss:$28 sps:$4 sm:$0xff]  }
 0x3bd   : > { %v3776_v55 = vadd.f32 %v3775_v37, %v10884_v7  ;;  %v3889_v42 = vadd.f32 %v3888_v47, %v10887_v28  ;;  %5689 = vmatpush2.bf16.msra.mxu0 %v8271_v18  ;;  %v3953_v36 = vmax.f32 %v3774_v61, 0.0  ;;  %v3955_v62 = vmax.f32 %v3887_v9, 0.0  ;;  %5802 = vmatpush2.bf16.msra.mxu1 %v8274_v54  ;;  %v8286_v9 = vld [vmem:[%s11969_s8 + $0x5f0] ss:$28 sps:$4 sm:$0xff]   ;;  %v8294_v47 = vld [vmem:[%s11969_s8 + $0x5bc] ss:$28 sps:$4 sm:$0xff]  }
 0x3be   : > { %v3779_v60 = vpop.f32.mrf.mxu0  ;;  %v3892_v10 = vpop.f32.mrf.mxu1  ;;  %5690 = vmatprep.subr.bf16.mxu0 %v8279_v63  ;;  %5803 = vmatprep.subr.bf16.mxu1 %v8282_v46  ;;  %v8291_v46 = vld [vmem:[%s11969_s8 + $0x23c] ss:$28 sps:$4 sm:$0xff]  }
 0x3bf   : > { %v3954_v40 = vmax.f32 %v3776_v55, 0.0  ;;  %v3956_v43 = vmax.f32 %v3889_v42, 0.0  ;;  %v11174_v32 = vpack.c.bf16 %v3953_v36, %v3949_v59  ;;  %v11176_v54 = vpack.c.bf16 %v3955_v62, %v3951_v22 }
 0x3c0   : > { %v3781_v29 = vpop.f32.mrf.mxu0  ;;  %v3894_v30 = vpop.f32.mrf.mxu1  ;;  %v3780_v55 = vadd.f32 %v3779_v60, %v10890_v31  ;;  %v3893_v42 = vadd.f32 %v3892_v10, %v10893_v52 }
 0x3c1   : > { %v11164_v18 = vpack.c.bf16 %v3954_v40, %v3950_v14  ;;  %v11166_v44 = vpack.c.bf16 %v3956_v43, %v3952_v12  ;;  %5691 = vmatpush2.bf16.msra.mxu0 %v8277_v57  ;;  %v3782_v63 = vadd.f32 %v3781_v29, %v10884_v7  ;;  %5804 = vmatpush2.bf16.msra.mxu1 %v8280_v33  ;;  %v8295_v29 = vld [vmem:[%s11969_s8 + $0x200] ss:$28 sps:$4 sm:$0xff]  }
 0x3c2   : > { %v3783_v39 = vpop.f32.mrf.mxu0  ;;  %v3896_v61 = vpop.f32.mrf.mxu1  ;;  %5692 = vmatprep.subr.bf16.mxu0 %v8285_v25  ;;  %v3895_v17 = vadd.f32 %v3894_v30, %v10887_v28  ;;  %5805 = vmatprep.subr.bf16.mxu1 %v8288_v0  ;;  %v8289_v25 = vld [vmem:[%s11969_s8 + $0x238] ss:$28 sps:$4 sm:$0xff]   ;;  %v3957_v40 = vmax.f32 %v3780_v55, 0.0  ;;  %v3959_v43 = vmax.f32 %v3893_v42, 0.0  ;;  %v8300_v30 = vld [vmem:[%s11969_s8 + $0x584] ss:$28 sps:$4 sm:$0xff]  }
 0x3c3   : > { %v3784_v48 = vadd.f32 %v3783_v39, %v10890_v31  ;;  %v3897_v37 = vadd.f32 %v3896_v61, %v10893_v52  ;;  %5534 = vmatprep.mubr.bf16.mxu0 %v11164_v18  ;;  %5647 = vmatprep.mubr.bf16.mxu1 %v11166_v44  ;;  %v8292_v52 = vld [vmem:[%s11969_s8 + $0x5b8] ss:$28 sps:$4 sm:$0xff]   ;;  %v3958_v60 = vmax.f32 %v3782_v63, 0.0  ;;  %v8298_v63 = vld [vmem:[%s11969_s8 + $0x580] ss:$28 sps:$4 sm:$0xff]  }
 0x3c4   : > { %v3785_v57 = vpop.f32.mrf.mxu0  ;;  %v3898_v36 = vpop.f32.mrf.mxu1  ;;  %5535 = vmatmul.mubr.bf16.gmra.mxu0 %v11174_v32  ;;  %5648 = vmatmul.mubr.bf16.gmra.mxu1 %v11176_v54  ;;  %v8303_v39 = vld [vmem:[%s11969_s8 + $0x1cc] ss:$28 sps:$4 sm:$0xff]   ;;  %v8315_v55 = vld [vmem:[%s11969_s8 + $0x164] ss:$28 sps:$4 sm:$0xff]  }
 0x3c5   : > { %v3786_v62 = vadd.f32 %v3785_v57, %v10884_v7  ;;  %v3899_v33 = vadd.f32 %v3898_v36, %v10887_v28  ;;  %5693 = vmatpush2.bf16.msra.mxu0 %v8283_v21  ;;  %v3961_v14 = vmax.f32 %v3784_v48, 0.0  ;;  %v3963_v31 = vmax.f32 %v3897_v37, 0.0  ;;  %5806 = vmatpush2.bf16.msra.mxu1 %v8286_v9  ;;  %v8297_v7 = vld [vmem:[%s11969_s8 + $0x204] ss:$28 sps:$4 sm:$0xff]   ;;  %v8306_v61 = vld [vmem:[%s11969_s8 + $0x54c] ss:$28 sps:$4 sm:$0xff]  }
 0x3c6   : > { %5694 = vmatprep.subr.bf16.mxu0 %v8291_v46  ;;  %v3960_v28 = vmax.f32 %v3895_v17, 0.0  ;;  %5807 = vmatprep.subr.bf16.mxu1 %v8294_v47  ;;  %v8301_v9 = vld [vmem:[%s11969_s8 + $0x1c8] ss:$28 sps:$4 sm:$0xff]   ;;  %v8309_v17 = vld [vmem:[%s11969_s8 + $0x19c] ss:$28 sps:$4 sm:$0xff]  }
 0x3c7   : > { %v3962_v10 = vmax.f32 %v3786_v62, 0.0  ;;  %v3964_v12 = vmax.f32 %v3899_v33, 0.0  ;;  %v11218_v21 = vpack.c.bf16 %v3961_v14, %v3957_v40  ;;  %v11220_v0 = vpack.c.bf16 %v3963_v31, %v3959_v43  ;;  %v8304_v46 = vld [vmem:[%s11969_s8 + $0x548] ss:$28 sps:$4 sm:$0xff]   ;;  %v8312_v48 = vld [vmem:[%s11969_s8 + $0x51c] ss:$28 sps:$4 sm:$0xff]  }
 0x3c8   : > { %v8307_v37 = vld [vmem:[%s11969_s8 + $0x198] ss:$28 sps:$4 sm:$0xff]   ;;  %v8318_v42 = vld [vmem:[%s11969_s8 + $0x4e4] ss:$28 sps:$4 sm:$0xff]   ;;  %v8321_v62 = vld [vmem:[%s11969_s8 + $0x12c] ss:$28 sps:$4 sm:$0xff]  }
 0x3c9   : > { %v11208_v59 = vpack.c.bf16 %v3962_v10, %v3958_v60  ;;  %v11210_v22 = vpack.c.bf16 %v3964_v12, %v3960_v28  ;;  %5695 = vmatpush2.bf16.msra.mxu0 %v8289_v25  ;;  %5808 = vmatpush2.bf16.msra.mxu1 %v8292_v52  ;;  %v8310_v47 = vld [vmem:[%s11969_s8 + $0x518] ss:$28 sps:$4 sm:$0xff]   ;;  %v8313_v57 = vld [vmem:[%s11969_s8 + $0x160] ss:$28 sps:$4 sm:$0xff]   ;;  %v8324_v33 = vld [vmem:[%s11969_s8 + $0x4ac] ss:$28 sps:$4 sm:$0xff]  }
 0x3ca   : > { %5696 = vmatprep.subr.bf16.mxu0 %v8297_v7  ;;  %5809 = vmatprep.subr.bf16.mxu1 %v8300_v30  ;;  %v8316_v36 = vld [vmem:[%s11969_s8 + $0x4e0] ss:$28 sps:$4 sm:$0xff]   ;;  %v8319_v25 = vld [vmem:[%s11969_s8 + $0x128] ss:$28 sps:$4 sm:$0xff]   ;;  %v8327_v31 = vld [vmem:[%s11969_s8 + $0xf4] ss:$28 sps:$4 sm:$0xff]  }
 0x3cb   : > { %5544 = vmatprep.mubr.bf16.mxu0 %v11208_v59  ;;  %5657 = vmatprep.mubr.bf16.mxu1 %v11210_v22  ;;  %v8322_v14 = vld [vmem:[%s11969_s8 + $0x4a8] ss:$28 sps:$4 sm:$0xff]   ;;  %v8330_v52 = vld [vmem:[%s11969_s8 + $0x474] ss:$28 sps:$4 sm:$0xff]   ;;  %v8333_v28 = vld [vmem:[%s11969_s8 + $0xbc] ss:$28 sps:$4 sm:$0xff]  }
 0x3cc   : > { %5545 = vmatmul.mubr.bf16.gmra.mxu0 %v11218_v21  ;;  %5658 = vmatmul.mubr.bf16.gmra.mxu1 %v11220_v0  ;;  %v8325_v7 = vld [vmem:[%s11969_s8 + $0xf0] ss:$28 sps:$4 sm:$0xff]   ;;  %v8336_v10 = vld [vmem:[%s11969_s8 + $0x43c] ss:$28 sps:$4 sm:$0xff]   ;;  %v8339_v43 = vld [vmem:[%s11969_s8 + $0x84] ss:$28 sps:$4 sm:$0xff]  }
 0x3cd   : > { %5697 = vmatpush2.bf16.msra.mxu0 %v8295_v29  ;;  %5700 = vmatprep.mubr.bf16.mxu0 %v10903_v56  ;;  %v8328_v60 = vld [vmem:[%s11969_s8 + $0x470] ss:$28 sps:$4 sm:$0xff]   ;;  %v8331_v12 = vld [vmem:[%s11969_s8 + $0xb8] ss:$28 sps:$4 sm:$0xff]   ;;  %v8342_v29 = vld [vmem:[%s11969_s8 + $0x404] ss:$28 sps:$4 sm:$0xff]  }
 0x3ce   : > { %5810 = vmatpush2.bf16.msra.mxu1 %v8298_v63  ;;  %5813 = vmatprep.mubr.bf16.mxu1 %v10905_v58  ;;  %v8334_v40 = vld [vmem:[%s11969_s8 + $0x438] ss:$28 sps:$4 sm:$0xff]   ;;  %v8337_v30 = vld [vmem:[%s11969_s8 + $0x80] ss:$28 sps:$4 sm:$0xff]  }
 0x3cf   : > { %5698 = vmatprep.subr.bf16.mxu0 %v8303_v39  ;;  %5811 = vmatprep.subr.bf16.mxu1 %v8306_v61  ;;  %v8340_v63 = vld [vmem:[%s11969_s8 + $0x400] ss:$28 sps:$4 sm:$0xff]   ;;  %v8345_v39 = vld [vmem:[%s11969_s8 + $0x4c] ss:$28 sps:$4 sm:$0xff]  }
 0x3d0   : > { %v8348_v61 = vld [vmem:[%s11969_s8 + $0x3cc] ss:$28 sps:$4 sm:$0xff]  }
 0x3d1   : > { %5699 = vmatpush2.bf16.msra.mxu0 %v8301_v9  ;;  %v8343_v9 = vld [vmem:[%s11969_s8 + $0x48] ss:$28 sps:$4 sm:$0xff]  }
 0x3d2   : > { %5812 = vmatpush2.bf16.msra.mxu1 %v8304_v46  ;;  %5894 = vmatprep.subr.bf16.mxu0 %v8309_v17  ;;  %v8346_v46 = vld [vmem:[%s11969_s8 + $0x3c8] ss:$28 sps:$4 sm:$0xff]   ;;  %v8351_v17 = vld [vmem:[%s11969_s8 + $0x14] ss:$28 sps:$4 sm:$0xff]  }
 0x3d3   : > { %6007 = vmatprep.subr.bf16.mxu1 %v8312_v48  ;;  %v8354_v48 = vld [vmem:[%s11969_s8 + $0x394] ss:$28 sps:$4 sm:$0xff]  }
 0x3d4   : > { %5701 = vmatmul.mubr.bf16.vlgmr.msra.gmra.mxu0 %v10913_v34 }
 0x3d5   : > { %5814 = vmatmul.mubr.bf16.vlgmr.msra.gmra.mxu1 %v10915_v3  ;;  %5710 = vmatprep.mubr.bf16.mxu0 %v10944_v53 }
 0x3d6   : > { %5823 = vmatprep.mubr.bf16.mxu1 %v10946_v23  ;;  %5895 = vmatpush1.bf16.msra.mxu0 %v8307_v37  ;;  %v8349_v37 = vld [vmem:[%s11969_s8 + $0x10] ss:$28 sps:$4 sm:$0xff]  }
 0x3d7   : > { %6008 = vmatpush1.bf16.msra.mxu1 %v8310_v47  ;;  %5896 = vmatprep.subr.bf16.mxu0 %v8315_v55  ;;  %v8352_v47 = vld [vmem:[%s11969_s8 + $0x390] ss:$28 sps:$4 sm:$0xff]   ;;  %v8357_v55 = vld [vmem:[%s11969_s8 + $0x35c] ss:$28 sps:$4 sm:$0xff]  }
 0x3d8   : > { %6009 = vmatprep.subr.bf16.mxu1 %v8318_v42  ;;  %v8360_v42 = vld [vmem:[%s11969_s8 + $0x6dc] ss:$28 sps:$4 sm:$0xff]  }
 0x3da   : > { %5897 = vmatpush1.bf16.msra.mxu0 %v8313_v57  ;;  %v8355_v57 = vld [vmem:[%s11969_s8 + $0x358] ss:$28 sps:$4 sm:$0xff]  }
 0x3db   : > { %6010 = vmatpush1.bf16.msra.mxu1 %v8316_v36  ;;  %5898 = vmatprep.subr.bf16.mxu0 %v8321_v62  ;;  %v8358_v36 = vld [vmem:[%s11969_s8 + $0x6d8] ss:$28 sps:$4 sm:$0xff]   ;;  %v8363_v62 = vld [vmem:[%s11969_s8 + $0x324] ss:$28 sps:$4 sm:$0xff]  }
 0x3dc   : > { %5711 = vmatmul.mubr.bf16.gmra.mxu0 %v10954_v13  ;;  %6011 = vmatprep.subr.bf16.mxu1 %v8324_v33  ;;  %v8366_v33 = vld [vmem:[%s11969_s8 + $0x6a4] ss:$28 sps:$4 sm:$0xff]  }
 0x3dd   : > { %5824 = vmatmul.mubr.bf16.gmra.mxu1 %v10956_v45  ;;  %5720 = vmatprep.mubr.bf16.mxu0 %v10988_v41 }
 0x3de   : > { %5833 = vmatprep.mubr.bf16.mxu1 %v10990_v1  ;;  %5899 = vmatpush1.bf16.msra.mxu0 %v8319_v25  ;;  %v8361_v25 = vld [vmem:[%s11969_s8 + $0x320] ss:$28 sps:$4 sm:$0xff]  }
 0x3df   : > { %6012 = vmatpush1.bf16.msra.mxu1 %v8322_v14  ;;  %5900 = vmatprep.subr.bf16.mxu0 %v8327_v31  ;;  %v8364_v14 = vld [vmem:[%s11969_s8 + $0x6a0] ss:$28 sps:$4 sm:$0xff]   ;;  %v8369_v31 = vld [vmem:[%s11969_s8 + $0x2ec] ss:$28 sps:$4 sm:$0xff]  }
 0x3e0   : > { %6013 = vmatprep.subr.bf16.mxu1 %v8330_v52  ;;  %v8372_v52 = vld [vmem:[%s11969_s8 + $0x66c] ss:$28 sps:$4 sm:$0xff]  }
 0x3e2   : > { %5901 = vmatpush1.bf16.msra.mxu0 %v8325_v7  ;;  %v8367_v7 = vld [vmem:[%s11969_s8 + $0x2e8] ss:$28 sps:$4 sm:$0xff]  }
 0x3e3   : > { %6014 = vmatpush1.bf16.msra.mxu1 %v8328_v60  ;;  %5902 = vmatprep.subr.bf16.mxu0 %v8333_v28  ;;  %v8370_v60 = vld [vmem:[%s11969_s8 + $0x668] ss:$28 sps:$4 sm:$0xff]   ;;  %v8375_v28 = vld [vmem:[%s11969_s8 + $0x2b4] ss:$28 sps:$4 sm:$0xff]  }
 0x3e4   : > { %5721 = vmatmul.mubr.bf16.gmra.mxu0 %v10998_v27  ;;  %6015 = vmatprep.subr.bf16.mxu1 %v8336_v10  ;;  %v8378_v10 = vld [vmem:[%s11969_s8 + $0x634] ss:$28 sps:$4 sm:$0xff]  }
 0x3e5   : > { %5834 = vmatmul.mubr.bf16.gmra.mxu1 %v11000_v20  ;;  %5730 = vmatprep.mubr.bf16.mxu0 %v11032_v5 }
 0x3e6   : > { %5843 = vmatprep.mubr.bf16.mxu1 %v11034_v15  ;;  %5903 = vmatpush1.bf16.msra.mxu0 %v8331_v12  ;;  %v8373_v12 = vld [vmem:[%s11969_s8 + $0x2b0] ss:$28 sps:$4 sm:$0xff]  }
 0x3e7   : > { %6016 = vmatpush1.bf16.msra.mxu1 %v8334_v40  ;;  %5904 = vmatprep.subr.bf16.mxu0 %v8339_v43  ;;  %v8376_v40 = vld [vmem:[%s11969_s8 + $0x630] ss:$28 sps:$4 sm:$0xff]   ;;  %v8381_v43 = vld [vmem:[%s11969_s8 + $0x27c] ss:$28 sps:$4 sm:$0xff]  }
 0x3e8   : > { %6017 = vmatprep.subr.bf16.mxu1 %v8342_v29  ;;  %v8384_v29 = vld [vmem:[%s11969_s8 + $0x5fc] ss:$28 sps:$4 sm:$0xff]  }
 0x3ea   : > { %5905 = vmatpush1.bf16.msra.mxu0 %v8337_v30  ;;  %v8379_v30 = vld [vmem:[%s11969_s8 + $0x278] ss:$28 sps:$4 sm:$0xff]  }
 0x3eb   : > { %6018 = vmatpush1.bf16.msra.mxu1 %v8340_v63  ;;  %5906 = vmatprep.subr.bf16.mxu0 %v8345_v39  ;;  %v8382_v63 = vld [vmem:[%s11969_s8 + $0x5f8] ss:$28 sps:$4 sm:$0xff]   ;;  %v8387_v39 = vld [vmem:[%s11969_s8 + $0x244] ss:$28 sps:$4 sm:$0xff]  }
 0x3ec   : > { %5731 = vmatmul.mubr.bf16.gmra.mxu0 %v11042_v4  ;;  %6019 = vmatprep.subr.bf16.mxu1 %v8348_v61  ;;  %v8390_v61 = vld [vmem:[%s11969_s8 + $0x5c4] ss:$28 sps:$4 sm:$0xff]  }
 0x3ed   : > { %5844 = vmatmul.mubr.bf16.gmra.mxu1 %v11044_v8  ;;  %5740 = vmatprep.mubr.bf16.mxu0 %v11076_v51 }
 0x3ee   : > { %5853 = vmatprep.mubr.bf16.mxu1 %v11078_v49  ;;  %5907 = vmatpush1.bf16.msra.mxu0 %v8343_v9  ;;  %v8385_v9 = vld [vmem:[%s11969_s8 + $0x240] ss:$28 sps:$4 sm:$0xff]  }
 0x3ef   : > { %6020 = vmatpush1.bf16.msra.mxu1 %v8346_v46  ;;  %5908 = vmatprep.subr.bf16.mxu0 %v8351_v17  ;;  %v8388_v46 = vld [vmem:[%s11969_s8 + $0x5c0] ss:$28 sps:$4 sm:$0xff]   ;;  %v8393_v17 = vld [vmem:[%s11969_s8 + $0x20c] ss:$28 sps:$4 sm:$0xff]  }
 0x3f0   : > { %6021 = vmatprep.subr.bf16.mxu1 %v8354_v48  ;;  %v8396_v48 = vld [vmem:[%s11969_s8 + $0x58c] ss:$28 sps:$4 sm:$0xff]  }
 0x3f2   : > { %5909 = vmatpush1.bf16.msra.mxu0 %v8349_v37  ;;  %v8391_v37 = vld [vmem:[%s11969_s8 + $0x208] ss:$28 sps:$4 sm:$0xff]  }
 0x3f3   : > { %6022 = vmatpush1.bf16.msra.mxu1 %v8352_v47  ;;  %5910 = vmatprep.subr.bf16.mxu0 %v8357_v55  ;;  %v8394_v47 = vld [vmem:[%s11969_s8 + $0x588] ss:$28 sps:$4 sm:$0xff]   ;;  %v8399_v55 = vld [vmem:[%s11969_s8 + $0x1d4] ss:$28 sps:$4 sm:$0xff]  }
 0x3f4   : > { %5741 = vmatmul.mubr.bf16.gmra.mxu0 %v11086_v38  ;;  %6023 = vmatprep.subr.bf16.mxu1 %v8360_v42  ;;  %v8402_v42 = vld [vmem:[%s11969_s8 + $0x554] ss:$28 sps:$4 sm:$0xff]  }
 0x3f5   : > { %5854 = vmatmul.mubr.bf16.gmra.mxu1 %v11088_v2  ;;  %5750 = vmatprep.mubr.bf16.mxu0 %v11120_v11 }
 0x3f6   : > { %5863 = vmatprep.mubr.bf16.mxu1 %v11122_v16  ;;  %5911 = vmatpush2.bf16.msra.mxu0 %v8355_v57  ;;  %v8397_v57 = vld [vmem:[%s11969_s8 + $0x1d0] ss:$28 sps:$4 sm:$0xff]  }
 0x3f7   : > { %6024 = vmatpush2.bf16.msra.mxu1 %v8358_v36  ;;  %5912 = vmatprep.subr.bf16.mxu0 %v8363_v62  ;;  %v8400_v36 = vld [vmem:[%s11969_s8 + $0x550] ss:$28 sps:$4 sm:$0xff]   ;;  %v8403_v62 = vld [vmem:[%s11969_s8 + $0x360] ss:$28 sps:$4 sm:$0xff]  }
 0x3f8   : > { %6025 = vmatprep.subr.bf16.mxu1 %v8366_v33  ;;  %v8405_v33 = vld [vmem:[%s11969_s8 + $0x6e0] ss:$28 sps:$4 sm:$0xff]  }
 0x3fa   : > { %5913 = vmatpush2.bf16.msra.mxu0 %v8361_v25  ;;  %v8404_v25 = vld [vmem:[%s11969_s8 + $0x1a0] ss:$28 sps:$4 sm:$0xff]  }
 0x3fb   : > { %6026 = vmatpush2.bf16.msra.mxu1 %v8364_v14  ;;  %5914 = vmatprep.subr.bf16.mxu0 %v8369_v31  ;;  %v8406_v14 = vld [vmem:[%s11969_s8 + $0x520] ss:$28 sps:$4 sm:$0xff]   ;;  %v8407_v31 = vld [vmem:[%s11969_s8 + $0x328] ss:$28 sps:$4 sm:$0xff]  }
 0x3fc   : > { %5751 = vmatmul.mubr.bf16.gmra.mxu0 %v11130_v19  ;;  %6027 = vmatprep.subr.bf16.mxu1 %v8372_v52  ;;  %v8409_v52 = vld [vmem:[%s11969_s8 + $0x6a8] ss:$28 sps:$4 sm:$0xff]  }
 0x3fd   : > { %5864 = vmatmul.mubr.bf16.gmra.mxu1 %v11132_v50  ;;  %5760 = vmatprep.mubr.bf16.mxu0 %v11164_v18 }
 0x3fe   : > { %5873 = vmatprep.mubr.bf16.mxu1 %v11166_v44  ;;  %5915 = vmatpush2.bf16.msra.mxu0 %v8367_v7  ;;  %v8408_v7 = vld [vmem:[%s11969_s8 + $0x168] ss:$28 sps:$4 sm:$0xff]  }
 0x3ff   : > { %6028 = vmatpush2.bf16.msra.mxu1 %v8370_v60  ;;  %5916 = vmatprep.subr.bf16.mxu0 %v8375_v28  ;;  %v8410_v60 = vld [vmem:[%s11969_s8 + $0x4e8] ss:$28 sps:$4 sm:$0xff]   ;;  %v8411_v28 = vld [vmem:[%s11969_s8 + $0x2f0] ss:$28 sps:$4 sm:$0xff]  }
 0x400   : > { %6029 = vmatprep.subr.bf16.mxu1 %v8378_v10  ;;  %v8413_v10 = vld [vmem:[%s11969_s8 + $0x670] ss:$28 sps:$4 sm:$0xff]  }
 0x402   : > { %5917 = vmatpush2.bf16.msra.mxu0 %v8373_v12  ;;  %v8412_v12 = vld [vmem:[%s11969_s8 + $0x130] ss:$28 sps:$4 sm:$0xff]  }
 0x403   : > { %6030 = vmatpush2.bf16.msra.mxu1 %v8376_v40  ;;  %5918 = vmatprep.subr.bf16.mxu0 %v8381_v43  ;;  %v8414_v40 = vld [vmem:[%s11969_s8 + $0x4b0] ss:$28 sps:$4 sm:$0xff]   ;;  %v8415_v43 = vld [vmem:[%s11969_s8 + $0x2b8] ss:$28 sps:$4 sm:$0xff]  }
 0x404   : > { %5761 = vmatmul.mubr.bf16.gmra.mxu0 %v11174_v32  ;;  %6031 = vmatprep.subr.bf16.mxu1 %v8384_v29  ;;  %v8417_v29 = vld [vmem:[%s11969_s8 + $0x638] ss:$28 sps:$4 sm:$0xff]  }
 0x405   : > { %5874 = vmatmul.mubr.bf16.gmra.mxu1 %v11176_v54  ;;  %5770 = vmatprep.mubr.bf16.mxu0 %v11208_v59 }
 0x406   : > { %5883 = vmatprep.mubr.bf16.mxu1 %v11210_v22  ;;  %5919 = vmatpush2.bf16.msra.mxu0 %v8379_v30  ;;  %v8416_v30 = vld [vmem:[%s11969_s8 + $0xf8] ss:$28 sps:$4 sm:$0xff]  }
 0x407   : > { %6032 = vmatpush2.bf16.msra.mxu1 %v8382_v63  ;;  %5920 = vmatprep.subr.bf16.mxu0 %v8387_v39  ;;  %v8418_v63 = vld [vmem:[%s11969_s8 + $0x478] ss:$28 sps:$4 sm:$0xff]   ;;  %v8419_v39 = vld [vmem:[%s11969_s8 + $0x280] ss:$28 sps:$4 sm:$0xff]  }
 0x408   : > { %6033 = vmatprep.subr.bf16.mxu1 %v8390_v61  ;;  %v8421_v61 = vld [vmem:[%s11969_s8 + $0x600] ss:$28 sps:$4 sm:$0xff]  }
 0x40a   : > { %5921 = vmatpush2.bf16.msra.mxu0 %v8385_v9  ;;  %v8420_v9 = vld [vmem:[%s11969_s8 + $0xc0] ss:$28 sps:$4 sm:$0xff]  }
 0x40b   : > { %6034 = vmatpush2.bf16.msra.mxu1 %v8388_v46  ;;  %5922 = vmatprep.subr.bf16.mxu0 %v8393_v17  ;;  %v8422_v46 = vld [vmem:[%s11969_s8 + $0x440] ss:$28 sps:$4 sm:$0xff]   ;;  %v8423_v17 = vld [vmem:[%s11969_s8 + $0x248] ss:$28 sps:$4 sm:$0xff]  }
 0x40c   : > { %5771 = vmatmul.mubr.bf16.gmra.mxu0 %v11218_v21  ;;  %6035 = vmatprep.subr.bf16.mxu1 %v8396_v48  ;;  %v8425_v48 = vld [vmem:[%s11969_s8 + $0x5c8] ss:$28 sps:$4 sm:$0xff]  }
 0x40d   : > { %5884 = vmatmul.mubr.bf16.gmra.mxu1 %v11220_v0  ;;  %5926 = vmatprep.mubr.bf16.mxu0 %v10903_v56 }
 0x40e   : > { %5923 = vmatpush2.bf16.msra.mxu0 %v8391_v37  ;;  %6039 = vmatprep.mubr.bf16.mxu1 %v10905_v58  ;;  %v8424_v37 = vld [vmem:[%s11969_s8 + $0x88] ss:$28 sps:$4 sm:$0xff]  }
 0x40f   : > { %6036 = vmatpush2.bf16.msra.mxu1 %v8394_v47  ;;  %5924 = vmatprep.subr.bf16.mxu0 %v8399_v55  ;;  %v8426_v47 = vld [vmem:[%s11969_s8 + $0x408] ss:$28 sps:$4 sm:$0xff]   ;;  %v8427_v55 = vld [vmem:[%s11969_s8 + $0x210] ss:$28 sps:$4 sm:$0xff]  }
 0x410   : > { %6037 = vmatprep.subr.bf16.mxu1 %v8402_v42  ;;  %v8429_v42 = vld [vmem:[%s11969_s8 + $0x590] ss:$28 sps:$4 sm:$0xff]  }
 0x412   : > { %5925 = vmatpush2.bf16.msra.mxu0 %v8397_v57  ;;  %v8428_v57 = vld [vmem:[%s11969_s8 + $0x50] ss:$28 sps:$4 sm:$0xff]  }
 0x413   : > { %6038 = vmatpush2.bf16.msra.mxu1 %v8400_v36  ;;  %7544 = vmatprep.subr.bf16.mxu0 %v8403_v62  ;;  %v8430_v36 = vld [vmem:[%s11969_s8 + $0x3d0] ss:$28 sps:$4 sm:$0xff]   ;;  %v8431_v62 = vld [vmem:[%s11969_s8 + $0x1d8] ss:$28 sps:$4 sm:$0xff]  }
 0x414   : > { %7608 = vmatprep.subr.bf16.mxu1 %v8405_v33  ;;  %v8433_v33 = vld [vmem:[%s11969_s8 + $0x558] ss:$28 sps:$4 sm:$0xff]  }
 0x415   : > { %5927 = vmatmul.mubr.bf16.vlgmr.msra.gmra.mxu0 %v10913_v34 }
 0x416   : > { %6040 = vmatmul.mubr.bf16.vlgmr.msra.gmra.mxu1 %v10915_v3  ;;  %5936 = vmatprep.mubr.bf16.mxu0 %v10944_v53 }
 0x417   : > { %6049 = vmatprep.mubr.bf16.mxu1 %v10946_v23  ;;  %7545 = vmatpush3.bf16.msra.mxu0 %v8404_v25  ;;  %v8432_v25 = vld [vmem:[%s11969_s8 + $0x18] ss:$28 sps:$4 sm:$0xff]  }
 0x418   : > { %7609 = vmatpush3.bf16.msra.mxu1 %v8406_v14  ;;  %7546 = vmatprep.subr.bf16.mxu0 %v8407_v31  ;;  %v8434_v14 = vld [vmem:[%s11969_s8 + $0x398] ss:$28 sps:$4 sm:$0xff]   ;;  %v11597_v31 = vld [vmem:[%s11970_s9] sm:$0x7f] }
 0x419   : > { %7610 = vmatprep.subr.bf16.mxu1 %v8409_v52  ;;  %v11602_v52 = vrot.slane %v11597_v31, %v12039_v6 }
 0x41b   : > { %7547 = vmatpush3.bf16.msra.mxu0 %v8408_v7  ;;  %v11606_v7 = vrot.slane %v11597_v31, %v12040_v26 }
 0x41c   : > { %7611 = vmatpush3.bf16.msra.mxu1 %v8410_v60  ;;  %7548 = vmatprep.subr.bf16.mxu0 %v8411_v28 }
 0x41d   : > { %5937 = vmatmul.mubr.bf16.gmra.mxu0 %v10954_v13  ;;  %7612 = vmatprep.subr.bf16.mxu1 %v8413_v10 }
 0x41e   : > { %6050 = vmatmul.mubr.bf16.gmra.mxu1 %v10956_v45  ;;  %5946 = vmatprep.mubr.bf16.mxu0 %v10988_v41 }
 0x41f   : > { %6059 = vmatprep.mubr.bf16.mxu1 %v10990_v1  ;;  %7549 = vmatpush3.bf16.msra.mxu0 %v8412_v12 }
 0x420   : > { %7613 = vmatpush3.bf16.msra.mxu1 %v8414_v40  ;;  %7550 = vmatprep.subr.bf16.mxu0 %v8415_v43 }
 0x421   : > { %7614 = vmatprep.subr.bf16.mxu1 %v8417_v29 }
 0x423   : > { %7551 = vmatpush3.bf16.msra.mxu0 %v8416_v30 }
 0x424   : > { %7615 = vmatpush3.bf16.msra.mxu1 %v8418_v63  ;;  %7552 = vmatprep.subr.bf16.mxu0 %v8419_v39 }
 0x425   : > { %5947 = vmatmul.mubr.bf16.gmra.mxu0 %v10998_v27  ;;  %7616 = vmatprep.subr.bf16.mxu1 %v8421_v61 }
 0x426   : > { %6060 = vmatmul.mubr.bf16.gmra.mxu1 %v11000_v20  ;;  %5956 = vmatprep.mubr.bf16.mxu0 %v11032_v5 }
 0x427   : > { %6069 = vmatprep.mubr.bf16.mxu1 %v11034_v15  ;;  %7553 = vmatpush3.bf16.msra.mxu0 %v8420_v9 }
 0x428   : > { %7617 = vmatpush3.bf16.msra.mxu1 %v8422_v46  ;;  %7554 = vmatprep.subr.bf16.mxu0 %v8423_v17 }
 0x429   : > { %7618 = vmatprep.subr.bf16.mxu1 %v8425_v48 }
 0x42b   : > { %7555 = vmatpush3.bf16.msra.mxu0 %v8424_v37 }
 0x42c   : > { %7619 = vmatpush3.bf16.msra.mxu1 %v8426_v47  ;;  %7556 = vmatprep.subr.bf16.mxu0 %v8427_v55 }
 0x42d   : > { %5957 = vmatmul.mubr.bf16.gmra.mxu0 %v11042_v4  ;;  %7620 = vmatprep.subr.bf16.mxu1 %v8429_v42 }
 0x42e   : > { %6070 = vmatmul.mubr.bf16.gmra.mxu1 %v11044_v8  ;;  %5966 = vmatprep.mubr.bf16.mxu0 %v11076_v51 }
 0x42f   : > { %6079 = vmatprep.mubr.bf16.mxu1 %v11078_v49  ;;  %7557 = vmatpush3.bf16.msra.mxu0 %v8428_v57 }
 0x430   : > { %7621 = vmatpush3.bf16.msra.mxu1 %v8430_v36  ;;  %7558 = vmatprep.subr.bf16.mxu0 %v8431_v62 }
 0x431   : > { %7622 = vmatprep.subr.bf16.mxu1 %v8433_v33 }
 0x433   : > { %7559 = vmatpush3.bf16.msra.mxu0 %v8432_v25 }
 0x434   : > { %7623 = vmatpush3.bf16.msra.mxu1 %v8434_v14 }
 0x435   : > { %5967 = vmatmul.mubr.bf16.gmra.mxu0 %v11086_v38 }
 0x436   : > { %6080 = vmatmul.mubr.bf16.gmra.mxu1 %v11088_v2  ;;  %5976 = vmatprep.mubr.bf16.mxu0 %v11120_v11 }
 0x437   : > { %6089 = vmatprep.mubr.bf16.mxu1 %v11122_v16 }
 0x43d   : > { %5977 = vmatmul.mubr.bf16.gmra.mxu0 %v11130_v19 }
 0x43e   : > { %6090 = vmatmul.mubr.bf16.gmra.mxu1 %v11132_v50  ;;  %5986 = vmatprep.mubr.bf16.mxu0 %v11164_v18 }
 0x43f   : > { %6099 = vmatprep.mubr.bf16.mxu1 %v11166_v44 }
 0x445   : > { %5987 = vmatmul.mubr.bf16.gmra.mxu0 %v11174_v32 }
 0x446   : > { %6100 = vmatmul.mubr.bf16.gmra.mxu1 %v11176_v54  ;;  %5996 = vmatprep.mubr.bf16.mxu0 %v11208_v59 }
 0x447   : > { %6109 = vmatprep.mubr.bf16.mxu1 %v11210_v22 }
 0x44d   : > { %5997 = vmatmul.mubr.bf16.gmra.mxu0 %v11218_v21 }
 0x44e   : > { %6110 = vmatmul.mubr.bf16.gmra.mxu1 %v11220_v0  ;;  %6152 = vmatprep.mubr.bf16.mxu0 %v10903_v56 }
 0x44f   : > { %6249 = vmatprep.mubr.bf16.mxu1 %v10905_v58 }
 0x454   : > { %v5476_v60 = vpop.f32.mrf.mxu0  ;;  %v5589_v28 = vpop.f32.mrf.mxu1 }
 0x455   : > { %v5477_v10 = vadd.f32 %v5476_v60, %v11602_v52  ;;  %6153 = vmatmul.mubr.bf16.vlgmr.msra.gmra.mxu0 %v10913_v34 }
 0x456   : > { %6250 = vmatmul.mubr.bf16.vlgmr.msra.gmra.mxu1 %v10915_v3  ;;  %6160 = vmatprep.mubr.bf16.mxu0 %v10944_v53  ;;  %v5478_v56 = vpop.f32.mrf.mxu0  ;;  %v5591_v58 = vpop.f32.mrf.mxu1 }
 0x457   : > { %v5590_v12 = vadd.f32 %v5589_v28, %v5477_v10  ;;  %6257 = vmatprep.mubr.bf16.mxu1 %v10946_v23  ;;  %v5479_v6 = vadd.f32 %v5478_v56, %v11606_v7 }
 0x458   : > { %v5480_v40 = vpop.f32.mrf.mxu0  ;;  %v5593_v26 = vpop.f32.mrf.mxu1 }
 0x459   : > { %v6314_v43 = vmul.f32 0.5, %v5590_v12  ;;  %v5592_v29 = vadd.f32 %v5591_v58, %v5479_v6  ;;  %v5481_v30 = vadd.f32 %v5480_v40, %v11602_v52 }
 0x45a   : > { %v5482_v63 = vpop.f32.mrf.mxu0  ;;  %v5595_v39 = vpop.f32.mrf.mxu1 }
 0x45b   : > { %8467 = vtanh.f32 %v6314_v43  ;;  %v6315_v34 = vmul.f32 0.5, %v5592_v29  ;;  %v5594_v3 = vadd.f32 %v5593_v26, %v5481_v30  ;;  %v5483_v53 = vadd.f32 %v5482_v63, %v11606_v7 }
 0x45c   : > { %v5486_v61 = vpop.f32.mrf.mxu0  ;;  %v5599_v9 = vpop.f32.mrf.mxu1 }
 0x45d   : > { %8469 = vtanh.f32 %v6315_v34  ;;  %v6321_v46 = vmul.f32 0.5, %v5594_v3  ;;  %v5596_v23 = vadd.f32 %v5595_v39, %v5483_v53  ;;  %v5487_v17 = vadd.f32 %v5486_v61, %v11602_v52  ;;  %6161 = vmatmul.mubr.bf16.gmra.mxu0 %v10954_v13 }
 0x45e   : > { %6258 = vmatmul.mubr.bf16.gmra.mxu1 %v10956_v45  ;;  %6168 = vmatprep.mubr.bf16.mxu0 %v10988_v41  ;;  %v5488_v48 = vpop.f32.mrf.mxu0  ;;  %v5601_v37 = vpop.f32.mrf.mxu1 }
 0x45f   : > { %8471 = vtanh.f32 %v6321_v46  ;;  %v6322_v47 = vmul.f32 0.5, %v5596_v23  ;;  %v5600_v55 = vadd.f32 %v5599_v9, %v5487_v17  ;;  %6265 = vmatprep.mubr.bf16.mxu1 %v10990_v1  ;;  %v5489_v42 = vadd.f32 %v5488_v48, %v11606_v7 }
 0x460   : > { %v5490_v57 = vpop.f32.mrf.mxu0  ;;  %v5603_v36 = vpop.f32.mrf.mxu1 }
 0x461   : > { %8473 = vtanh.f32 %v6322_v47  ;;  %v6328_v62 = vmul.f32 0.5, %v5600_v55  ;;  %v5602_v33 = vadd.f32 %v5601_v37, %v5489_v42  ;;  %v5491_v13 = vadd.f32 %v5490_v57, %v11602_v52 }
 0x462   : > { %v5492_v25 = vpop.f32.mrf.mxu0  ;;  %v5605_v45 = vpop.f32.mrf.mxu1 }
 0x463   : > { %8475 = vtanh.f32 %v6328_v62  ;;  %v6329_v41 = vmul.f32 0.5, %v5602_v33  ;;  %v5604_v14 = vadd.f32 %v5603_v36, %v5491_v13  ;;  %v5493_v60 = vadd.f32 %v5492_v25, %v11606_v7 }
 0x464   : > { %v5496_v28 = vpop.f32.mrf.mxu0  ;;  %v5609_v10 = vpop.f32.mrf.mxu1 }
 0x465   : > { %8477 = vtanh.f32 %v6329_v41  ;;  %v6335_v1 = vmul.f32 0.5, %v5604_v14  ;;  %v5606_v56 = vadd.f32 %v5605_v45, %v5493_v60  ;;  %v5497_v58 = vadd.f32 %v5496_v28, %v11602_v52  ;;  %6169 = vmatmul.mubr.bf16.gmra.mxu0 %v10998_v27 }
 0x466   : > { %6266 = vmatmul.mubr.bf16.gmra.mxu1 %v11000_v20  ;;  %6176 = vmatprep.mubr.bf16.mxu0 %v11032_v5  ;;  %v5498_v12 = vpop.f32.mrf.mxu0  ;;  %v5611_v6 = vpop.f32.mrf.mxu1 }
 0x467   : > { %8479 = vtanh.f32 %v6335_v1  ;;  %v6336_v40 = vmul.f32 0.5, %v5606_v56  ;;  %v5610_v26 = vadd.f32 %v5609_v10, %v5497_v58  ;;  %6273 = vmatprep.mubr.bf16.mxu1 %v11034_v15  ;;  %v5499_v43 = vadd.f32 %v5498_v12, %v11606_v7 }
 0x468   : > { %v8468_v29 = vpop.eup %8467  ;;  %v5500_v30 = vpop.f32.mrf.mxu0 }
 0x469   : > { %v5613_v63 = vpop.f32.mrf.mxu1  ;;  %v6538_v39 = vadd.f32 1.0, %v8468_v29  ;;  %8481 = vtanh.f32 %v6336_v40  ;;  %v6342_v27 = vmul.f32 0.5, %v5610_v26  ;;  %v5612_v34 = vadd.f32 %v5611_v6, %v5499_v43 }
 0x46a   : > { %v8470_v20 = vpop.eup %8469  ;;  %v5501_v5 = vadd.f32 %v5500_v30, %v11602_v52  ;;  %v5502_v15 = vpop.f32.mrf.mxu0 }
 0x46b   : > { %v5615_v3 = vpop.f32.mrf.mxu1  ;;  %v6650_v53 = vmul.f32 0.5, %v6538_v39  ;;  %v6539_v61 = vadd.f32 1.0, %v8470_v20  ;;  %8483 = vtanh.f32 %v6342_v27  ;;  %v6343_v9 = vmul.f32 0.5, %v5612_v34 }
 0x46c   : > { %v8472_v46 = vpop.eup %8471  ;;  %v5614_v23 = vadd.f32 %v5613_v63, %v5501_v5  ;;  %v5503_v17 = vadd.f32 %v5502_v15, %v11606_v7  ;;  %v5506_v48 = vpop.f32.mrf.mxu0 }
 0x46d   : > { %v5619_v37 = vpop.f32.mrf.mxu1  ;;  %6762 = vst [vmem:[%s11635_s19] sm:$0xff] %v6650_v53  ;;  %v6651_v47 = vmul.f32 0.5, %v6539_v61  ;;  %v6545_v55 = vadd.f32 1.0, %v8472_v46  ;;  %8485 = vtanh.f32 %v6343_v9  ;;  %v5507_v42 = vadd.f32 %v5506_v48, %v11602_v52  ;;  %6177 = vmatmul.mubr.bf16.gmra.mxu0 %v11042_v4 }
 0x46e   : > { %v8474_v57 = vpop.eup %8473  ;;  %v6349_v36 = vmul.f32 0.5, %v5614_v23  ;;  %v5616_v62 = vadd.f32 %v5615_v3, %v5503_v17  ;;  %6274 = vmatmul.mubr.bf16.gmra.mxu1 %v11044_v8  ;;  %6184 = vmatprep.mubr.bf16.mxu0 %v11076_v51  ;;  %v5508_v33 = vpop.f32.mrf.mxu0 }
 0x46f   : > { %v5621_v13 = vpop.f32.mrf.mxu1  ;;  %6763 = vst [vmem:[%s11635_s19 + $0x8] sm:$0xff] %v6651_v47  ;;  %v6657_v25 = vmul.f32 0.5, %v6545_v55  ;;  %v6546_v45 = vadd.f32 1.0, %v8474_v57  ;;  %v5620_v41 = vadd.f32 %v5619_v37, %v5507_v42  ;;  %6281 = vmatprep.mubr.bf16.mxu1 %v11078_v49  ;;  %v5509_v14 = vadd.f32 %v5508_v33, %v11606_v7 }
 0x470   : > { %v8476_v4 = vpop.eup %8475  ;;  %8487 = vtanh.f32 %v6349_v36  ;;  %v6350_v60 = vmul.f32 0.5, %v5616_v62  ;;  %v5510_v28 = vpop.f32.mrf.mxu0 }
 0x471   : > { %v5623_v10 = vpop.f32.mrf.mxu1  ;;  %6769 = vst [vmem:[%s11635_s19 + $0x38] sm:$0xff] %v6657_v25  ;;  %v6658_v8 = vmul.f32 0.5, %v6546_v45  ;;  %v6552_v1 = vadd.f32 1.0, %v8476_v4  ;;  %v6356_v51 = vmul.f32 0.5, %v5620_v41  ;;  %v5622_v56 = vadd.f32 %v5621_v13, %v5509_v14 }
 0x472   : > { %v8478_v58 = vpop.eup %8477  ;;  %8489 = vtanh.f32 %v6350_v60  ;;  %v5511_v12 = vadd.f32 %v5510_v28, %v11602_v52  ;;  %v5512_v6 = vpop.f32.mrf.mxu0 }
 0x473   : > { %v5625_v49 = vpop.f32.mrf.mxu1  ;;  %6770 = vst [vmem:[%s11635_s19 + $0x40] sm:$0xff] %v6658_v8  ;;  %v6664_v40 = vmul.f32 0.5, %v6552_v1  ;;  %v6553_v26 = vadd.f32 1.0, %v8478_v58  ;;  %8491 = vtanh.f32 %v6356_v51  ;;  %v6357_v43 = vmul.f32 0.5, %v5622_v56 }
 0x474   : > { %v8480_v29 = vpop.eup %8479  ;;  %v5624_v30 = vadd.f32 %v5623_v10, %v5511_v12  ;;  %v5513_v63 = vadd.f32 %v5512_v6, %v11606_v7  ;;  %v5516_v39 = vpop.f32.mrf.mxu0 }
 0x475   : > { %v5629_v27 = vpop.f32.mrf.mxu1  ;;  %6776 = vst [vmem:[%s11635_s19 + $0x70] sm:$0xff] %v6664_v40  ;;  %v6665_v34 = vmul.f32 0.5, %v6553_v26  ;;  %v6559_v20 = vadd.f32 1.0, %v8480_v29  ;;  %8493 = vtanh.f32 %v6357_v43  ;;  %v5517_v5 = vadd.f32 %v5516_v39, %v11602_v52  ;;  %6185 = vmatmul.mubr.bf16.gmra.mxu0 %v11086_v38 }
 0x476   : > { %v8482_v15 = vpop.eup %8481  ;;  %v6363_v3 = vmul.f32 0.5, %v5624_v30  ;;  %v5626_v53 = vadd.f32 %v5625_v49, %v5513_v63  ;;  %6282 = vmatmul.mubr.bf16.gmra.mxu1 %v11088_v2  ;;  %6192 = vmatprep.mubr.bf16.mxu0 %v11120_v11  ;;  %v5518_v61 = vpop.f32.mrf.mxu0 }
 0x477   : > { %v5631_v9 = vpop.f32.mrf.mxu1  ;;  %6777 = vst [vmem:[%s11635_s19 + $0x78] sm:$0xff] %v6665_v34  ;;  %v6671_v46 = vmul.f32 0.5, %v6559_v20  ;;  %v6560_v23 = vadd.f32 1.0, %v8482_v15  ;;  %v5630_v17 = vadd.f32 %v5629_v27, %v5517_v5  ;;  %6289 = vmatprep.mubr.bf16.mxu1 %v11122_v16  ;;  %v5519_v48 = vadd.f32 %v5518_v61, %v11606_v7 }
 0x478   : > { %v8484_v38 = vpop.eup %8483  ;;  %8495 = vtanh.f32 %v6363_v3  ;;  %v6364_v37 = vmul.f32 0.5, %v5626_v53  ;;  %v5520_v47 = vpop.f32.mrf.mxu0 }
 0x479   : > { %v5633_v55 = vpop.f32.mrf.mxu1  ;;  %6783 = vst [vmem:[%s11635_s19 + $0xa8] sm:$0xff] %v6671_v46  ;;  %v6672_v2 = vmul.f32 0.5, %v6560_v23  ;;  %v6566_v42 = vadd.f32 1.0, %v8484_v38  ;;  %v6370_v11 = vmul.f32 0.5, %v5630_v17  ;;  %v5632_v57 = vadd.f32 %v5631_v9, %v5519_v48 }
 0x47a   : > { %v8486_v36 = vpop.eup %8485  ;;  %8497 = vtanh.f32 %v6364_v37  ;;  %v5521_v62 = vadd.f32 %v5520_v47, %v11602_v52  ;;  %v5522_v33 = vpop.f32.mrf.mxu0 }
 0x47b   : > { %v5635_v16 = vpop.f32.mrf.mxu1  ;;  %6784 = vst [vmem:[%s11635_s19 + $0xb0] sm:$0xff] %v6672_v2  ;;  %v6678_v13 = vmul.f32 0.5, %v6566_v42  ;;  %v6567_v25 = vadd.f32 1.0, %v8486_v36  ;;  %8499 = vtanh.f32 %v6370_v11  ;;  %v6371_v45 = vmul.f32 0.5, %v5632_v57 }
 0x47c   : > { %v5634_v41 = vadd.f32 %v5633_v55, %v5521_v62  ;;  %v5523_v14 = vadd.f32 %v5522_v33, %v11606_v7  ;;  %v5526_v4 = vpop.f32.mrf.mxu0 }
 0x47d   : > { %v5639_v60 = vpop.f32.mrf.mxu1  ;;  %v8488_v28 = vpop.eup %8487  ;;  %6790 = vst [vmem:[%s11635_s19 + $0xe0] sm:$0xff] %v6678_v13  ;;  %v6679_v10 = vmul.f32 0.5, %v6567_v25  ;;  %8501 = vtanh.f32 %v6371_v45  ;;  %v5527_v8 = vadd.f32 %v5526_v4, %v11602_v52  ;;  %6193 = vmatmul.mubr.bf16.gmra.mxu0 %v11130_v19 }
 0x47e   : > { %v6573_v1 = vadd.f32 1.0, %v8488_v28  ;;  %v6377_v51 = vmul.f32 0.5, %v5634_v41  ;;  %v5636_v56 = vadd.f32 %v5635_v16, %v5523_v14  ;;  %6290 = vmatmul.mubr.bf16.gmra.mxu1 %v11132_v50  ;;  %6200 = vmatprep.mubr.bf16.mxu0 %v11164_v18  ;;  %v5528_v58 = vpop.f32.mrf.mxu0 }
 0x47f   : > { %v5641_v12 = vpop.f32.mrf.mxu1  ;;  %v8490_v6 = vpop.eup %8489  ;;  %6791 = vst [vmem:[%s11635_s19 + $0xe8] sm:$0xff] %v6679_v10  ;;  %v5640_v49 = vadd.f32 %v5639_v60, %v5527_v8  ;;  %6297 = vmatprep.mubr.bf16.mxu1 %v11166_v44  ;;  %v5529_v40 = vadd.f32 %v5528_v58, %v11606_v7 }
 0x480   : > { %v8492_v26 = vpop.eup %8491  ;;  %v6685_v43 = vmul.f32 0.5, %v6573_v1  ;;  %v6574_v19 = vadd.f32 1.0, %v8490_v6  ;;  %8503 = vtanh.f32 %v6377_v51  ;;  %v6378_v29 = vmul.f32 0.5, %v5636_v56  ;;  %v5530_v30 = vpop.f32.mrf.mxu0 }
 0x481   : > { %v5643_v50 = vpop.f32.mrf.mxu1  ;;  %v6580_v63 = vadd.f32 1.0, %v8492_v26  ;;  %v6384_v18 = vmul.f32 0.5, %v5640_v49  ;;  %v5642_v39 = vadd.f32 %v5641_v12, %v5529_v40  ;;  %v5531_v27 = vadd.f32 %v5530_v30, %v11602_v52 }
 0x482   : > { %v8494_v34 = vpop.eup %8493  ;;  %6797 = vst [vmem:[%s11635_s19 + $0x118] sm:$0xff] %v6685_v43  ;;  %v6686_v20 = vmul.f32 0.5, %v6574_v19  ;;  %8505 = vtanh.f32 %v6378_v29  ;;  %v5532_v44 = vpop.f32.mrf.mxu0 }
 0x483   : > { %v5645_v5 = vpop.f32.mrf.mxu1  ;;  %v6692_v15 = vmul.f32 0.5, %v6580_v63  ;;  %v6581_v3 = vadd.f32 1.0, %v8494_v34  ;;  %8507 = vtanh.f32 %v6384_v18  ;;  %v6385_v53 = vmul.f32 0.5, %v5642_v39 }
 0x484   : > { %6798 = vst [vmem:[%s11635_s19 + $0x120] sm:$0xff] %v6686_v20  ;;  %v5644_v61 = vadd.f32 %v5643_v50, %v5531_v27  ;;  %v5533_v9 = vadd.f32 %v5532_v44, %v11606_v7  ;;  %v5536_v46 = vpop.f32.mrf.mxu0  ;;  %v11695_v18 = vrot.slane %v11597_v31, %v12042_v24 }
 0x485   : > { %v5649_v23 = vpop.f32.mrf.mxu1  ;;  %v8496_v17 = vpop.eup %8495  ;;  %6804 = vst [vmem:[%s11635_s19 + $0x150] sm:$0xff] %v6692_v15  ;;  %v6693_v48 = vmul.f32 0.5, %v6581_v3  ;;  %8509 = vtanh.f32 %v6385_v53  ;;  %v5537_v38 = vadd.f32 %v5536_v46, %v11602_v52  ;;  %6201 = vmatmul.mubr.bf16.gmra.mxu0 %v11174_v32  ;;  %v11701_v46 = vrot.slane %v11597_v31, %v12041_v35 }
 0x486   : > { %v6587_v37 = vadd.f32 1.0, %v8496_v17  ;;  %v6391_v47 = vmul.f32 0.5, %v5644_v61  ;;  %v5646_v55 = vadd.f32 %v5645_v5, %v5533_v9  ;;  %6298 = vmatmul.mubr.bf16.gmra.mxu1 %v11176_v54  ;;  %6208 = vmatprep.mubr.bf16.mxu0 %v11208_v59  ;;  %v5538_v2 = vpop.f32.mrf.mxu0 }
 0x487   : > { %v5651_v42 = vpop.f32.mrf.mxu1  ;;  %v8498_v11 = vpop.eup %8497  ;;  %6805 = vst [vmem:[%s11635_s19 + $0x158] sm:$0xff] %v6693_v48  ;;  %v5650_v57 = vadd.f32 %v5649_v23, %v5537_v38  ;;  %6305 = vmatprep.mubr.bf16.mxu1 %v11210_v22  ;;  %v5539_v36 = vadd.f32 %v5538_v2, %v11606_v7 }
 0x488   : > { %v8500_v62 = vpop.eup %8499  ;;  %v6699_v33 = vmul.f32 0.5, %v6587_v37  ;;  %v6588_v32 = vadd.f32 1.0, %v8498_v11  ;;  %8511 = vtanh.f32 %v6391_v47  ;;  %v6392_v16 = vmul.f32 0.5, %v5646_v55  ;;  %v5540_v13 = vpop.f32.mrf.mxu0 }
 0x489   : > { %v5653_v54 = vpop.f32.mrf.mxu1  ;;  %v6594_v25 = vadd.f32 1.0, %v8500_v62  ;;  %v6398_v59 = vmul.f32 0.5, %v5650_v57  ;;  %v5652_v45 = vadd.f32 %v5651_v42, %v5539_v36  ;;  %v5541_v41 = vadd.f32 %v5540_v13, %v11602_v52 }
 0x48a   : > { %v8502_v14 = vpop.eup %8501  ;;  %6811 = vst [vmem:[%s11635_s19 + $0x188] sm:$0xff] %v6699_v33  ;;  %v6700_v4 = vmul.f32 0.5, %v6588_v32  ;;  %8513 = vtanh.f32 %v6392_v16  ;;  %v5542_v22 = vpop.f32.mrf.mxu0 }
 0x48b   : > { %v5655_v60 = vpop.f32.mrf.mxu1  ;;  %v6706_v28 = vmul.f32 0.5, %v6594_v25  ;;  %v6595_v10 = vadd.f32 1.0, %v8502_v14  ;;  %8515 = vtanh.f32 %v6398_v59  ;;  %v6399_v8 = vmul.f32 0.5, %v5652_v45 }
 0x48c   : > { %6812 = vst [vmem:[%s11635_s19 + $0x190] sm:$0xff] %v6700_v4  ;;  %v5654_v1 = vadd.f32 %v5653_v54, %v5541_v41  ;;  %v5543_v51 = vadd.f32 %v5542_v22, %v11606_v7  ;;  %v5546_v56 = vpop.f32.mrf.mxu0 }
 0x48d   : > { %v5659_v58 = vpop.f32.mrf.mxu1  ;;  %v8504_v12 = vpop.eup %8503  ;;  %6818 = vst [vmem:[%s11635_s19 + $0x1c0] sm:$0xff] %v6706_v28  ;;  %v6707_v6 = vmul.f32 0.5, %v6595_v10  ;;  %8517 = vtanh.f32 %v6399_v8  ;;  %v5547_v49 = vadd.f32 %v5546_v56, %v11602_v52  ;;  %6209 = vmatmul.mubr.bf16.gmra.mxu0 %v11218_v21 }
 0x48e   : > { %v6601_v40 = vadd.f32 1.0, %v8504_v12  ;;  %v6405_v26 = vmul.f32 0.5, %v5654_v1  ;;  %v5656_v43 = vadd.f32 %v5655_v60, %v5543_v51  ;;  %6306 = vmatmul.mubr.bf16.gmra.mxu1 %v11220_v0  ;;  %v5548_v19 = vpop.f32.mrf.mxu0 }
 0x48f   : > { %v5661_v29 = vpop.f32.mrf.mxu1  ;;  %v8506_v30 = vpop.eup %8505  ;;  %6819 = vst [vmem:[%s11635_s19 + $0x1c8] sm:$0xff] %v6707_v6  ;;  %v5660_v50 = vadd.f32 %v5659_v58, %v5547_v49  ;;  %v5549_v63 = vadd.f32 %v5548_v19, %v11606_v7 }
 0x490   : > { %v8508_v39 = vpop.eup %8507  ;;  %v6713_v27 = vmul.f32 0.5, %v6601_v40  ;;  %v6602_v21 = vadd.f32 1.0, %v8506_v30  ;;  %8519 = vtanh.f32 %v6405_v26  ;;  %v6406_v34 = vmul.f32 0.5, %v5656_v43  ;;  %v5550_v20 = vpop.f32.mrf.mxu0 }
 0x491   : > { %v5663_v44 = vpop.f32.mrf.mxu1  ;;  %v6608_v0 = vadd.f32 1.0, %v8508_v39  ;;  %v6412_v5 = vmul.f32 0.5, %v5660_v50  ;;  %v5662_v15 = vadd.f32 %v5661_v29, %v5549_v63  ;;  %v5551_v3 = vadd.f32 %v5550_v20, %v11602_v52 }
 0x492   : > { %v8510_v53 = vpop.eup %8509  ;;  %6825 = vst [vmem:[%s11635_s19 + $0x1f8] sm:$0xff] %v6713_v27  ;;  %v6714_v61 = vmul.f32 0.5, %v6602_v21  ;;  %8521 = vtanh.f32 %v6406_v34  ;;  %v5552_v24 = vpop.f32.mrf.mxu0 }
 0x493   : > { %v5665_v9 = vpop.f32.mrf.mxu1  ;;  %v6720_v23 = vmul.f32 0.5, %v6608_v0  ;;  %v6609_v17 = vadd.f32 1.0, %v8510_v53  ;;  %8523 = vtanh.f32 %v6412_v5  ;;  %v6413_v48 = vmul.f32 0.5, %v5662_v15 }
 0x494   : > { %6826 = vst [vmem:[%s11635_s19 + $0x200] sm:$0xff] %v6714_v61  ;;  %v5664_v38 = vadd.f32 %v5663_v44, %v5551_v3  ;;  %v5553_v52 = vadd.f32 %v5552_v24, %v11606_v7  ;;  %v5702_v37 = vpop.f32.mrf.mxu0 }
 0x495   : > { %v8512_v47 = vpop.eup %8511  ;;  %6832 = vst [vmem:[%s11635_s19 + $0x230] sm:$0xff] %v6720_v23  ;;  %v6721_v55 = vmul.f32 0.5, %v6609_v17  ;;  %8525 = vtanh.f32 %v6413_v48  ;;  %v5703_v2 = vadd.f32 %v5702_v37, %v11695_v18  ;;  %v5815_v42 = vpop.f32.mrf.mxu1 }
 0x496   : > { %v6615_v11 = vadd.f32 1.0, %v8512_v47  ;;  %v6419_v35 = vmul.f32 0.5, %v5664_v38  ;;  %v5666_v31 = vadd.f32 %v5665_v9, %v5553_v52  ;;  %v5704_v57 = vpop.f32.mrf.mxu0 }
 0x497   : > { %v8514_v36 = vpop.eup %8513  ;;  %6833 = vst [vmem:[%s11635_s19 + $0x238] sm:$0xff] %v6721_v55  ;;  %v5816_v62 = vadd.f32 %v5815_v42, %v5703_v2  ;;  %v5705_v33 = vadd.f32 %v5704_v57, %v11701_v46  ;;  %v5817_v32 = vpop.f32.mrf.mxu1 }
 0x498   : > { %v8516_v7 = vpop.eup %8515  ;;  %v6727_v16 = vmul.f32 0.5, %v6615_v11  ;;  %v6616_v13 = vadd.f32 1.0, %v8514_v36  ;;  %8527 = vtanh.f32 %v6419_v35  ;;  %v6420_v54 = vmul.f32 0.5, %v5666_v31  ;;  %v5706_v25 = vpop.f32.mrf.mxu0 }
 0x499   : > { %v6622_v59 = vadd.f32 1.0, %v8516_v7  ;;  %v6316_v45 = vmul.f32 0.5, %v5816_v62  ;;  %v5818_v41 = vadd.f32 %v5817_v32, %v5705_v33  ;;  %v5707_v14 = vadd.f32 %v5706_v25, %v11695_v18  ;;  %v5819_v4 = vpop.f32.mrf.mxu1 }
 0x49a   : > { %v8518_v22 = vpop.eup %8517  ;;  %6839 = vst [vmem:[%s11635_s19 + $0x268] sm:$0xff] %v6727_v16  ;;  %v6728_v60 = vmul.f32 0.5, %v6616_v13  ;;  %8529 = vtanh.f32 %v6420_v54  ;;  %v5708_v28 = vpop.f32.mrf.mxu0 }
 0x49b   : > { %v6734_v10 = vmul.f32 0.5, %v6622_v59  ;;  %v6623_v8 = vadd.f32 1.0, %v8518_v22  ;;  %8531 = vtanh.f32 %v6316_v45  ;;  %v6317_v1 = vmul.f32 0.5, %v5818_v41  ;;  %v5821_v51 = vpop.f32.mrf.mxu1 }
 0x49c   : > { %6840 = vst [vmem:[%s11635_s19 + $0x270] sm:$0xff] %v6728_v60  ;;  %v5820_v56 = vadd.f32 %v5819_v4, %v5707_v14  ;;  %v5709_v58 = vadd.f32 %v5708_v28, %v11701_v46  ;;  %v5712_v12 = vpop.f32.mrf.mxu0 }
 0x49d   : > { %v8520_v6 = vpop.eup %8519  ;;  %6846 = vst [vmem:[%s11635_s19 + $0x2a0] sm:$0xff] %v6734_v10  ;;  %v6735_v49 = vmul.f32 0.5, %v6623_v8  ;;  %8533 = vtanh.f32 %v6317_v1  ;;  %v5713_v40 = vadd.f32 %v5712_v12, %v11695_v18  ;;  %v5825_v26 = vpop.f32.mrf.mxu1 }
 0x49e   : > { %v6629_v43 = vadd.f32 1.0, %v8520_v6  ;;  %v6323_v19 = vmul.f32 0.5, %v5820_v56  ;;  %v5822_v29 = vadd.f32 %v5821_v51, %v5709_v58  ;;  %v5714_v30 = vpop.f32.mrf.mxu0 }
 0x49f   : > { %v8522_v50 = vpop.eup %8521  ;;  %6847 = vst [vmem:[%s11635_s19 + $0x2a8] sm:$0xff] %v6735_v49  ;;  %v5826_v63 = vadd.f32 %v5825_v26, %v5713_v40  ;;  %v5715_v39 = vadd.f32 %v5714_v30, %v11701_v46  ;;  %v5827_v27 = vpop.f32.mrf.mxu1 }
 0x4a0   : > { %v8524_v21 = vpop.eup %8523  ;;  %v6741_v34 = vmul.f32 0.5, %v6629_v43  ;;  %v6630_v20 = vadd.f32 1.0, %v8522_v50  ;;  %8535 = vtanh.f32 %v6323_v19  ;;  %v6324_v44 = vmul.f32 0.5, %v5822_v29  ;;  %v5716_v0 = vpop.f32.mrf.mxu0 }
 0x4a1   : > { %v6636_v5 = vadd.f32 1.0, %v8524_v21  ;;  %v6330_v15 = vmul.f32 0.5, %v5826_v63  ;;  %v5828_v3 = vadd.f32 %v5827_v27, %v5715_v39  ;;  %v5717_v53 = vadd.f32 %v5716_v0, %v11695_v18  ;;  %v5829_v61 = vpop.f32.mrf.mxu1 }
 0x4a2   : > { %v8526_v24 = vpop.eup %8525  ;;  %6853 = vst [vmem:[%s11635_s19 + $0x2d8] sm:$0xff] %v6741_v34  ;;  %v6742_v9 = vmul.f32 0.5, %v6630_v20  ;;  %8537 = vtanh.f32 %v6324_v44  ;;  %v5718_v23 = vpop.f32.mrf.mxu0 }
 0x4a3   : > { %v6748_v17 = vmul.f32 0.5, %v6636_v5  ;;  %v6637_v48 = vadd.f32 1.0, %v8526_v24  ;;  %8539 = vtanh.f32 %v6330_v15  ;;  %v6331_v38 = vmul.f32 0.5, %v5828_v3  ;;  %v5831_v52 = vpop.f32.mrf.mxu1 }
 0x4a4   : > { %6854 = vst [vmem:[%s11635_s19 + $0x2e0] sm:$0xff] %v6742_v9  ;;  %v5830_v37 = vadd.f32 %v5829_v61, %v5717_v53  ;;  %v5719_v47 = vadd.f32 %v5718_v23, %v11701_v46  ;;  %v5722_v55 = vpop.f32.mrf.mxu0 }
 0x4a5   : > { %v8528_v2 = vpop.eup %8527  ;;  %6860 = vst [vmem:[%s11635_s19 + $0x310] sm:$0xff] %v6748_v17  ;;  %v6749_v42 = vmul.f32 0.5, %v6637_v48  ;;  %8541 = vtanh.f32 %v6331_v38  ;;  %v5723_v11 = vadd.f32 %v5722_v55, %v11695_v18  ;;  %v5835_v35 = vpop.f32.mrf.mxu1 }
 0x4a6   : > { %v6643_v31 = vadd.f32 1.0, %v8528_v2  ;;  %v6337_v57 = vmul.f32 0.5, %v5830_v37  ;;  %v5832_v36 = vadd.f32 %v5831_v52, %v5719_v47  ;;  %v5724_v62 = vpop.f32.mrf.mxu0 }
 0x4a7   : > { %v8530_v33 = vpop.eup %8529  ;;  %6861 = vst [vmem:[%s11635_s19 + $0x318] sm:$0xff] %v6749_v42  ;;  %v5836_v32 = vadd.f32 %v5835_v35, %v5723_v11  ;;  %v5725_v7 = vadd.f32 %v5724_v62, %v11701_v46  ;;  %v5837_v16 = vpop.f32.mrf.mxu1 }
 0x4a8   : > { %v8532_v13 = vpop.eup %8531  ;;  %v6755_v54 = vmul.f32 0.5, %v6643_v31  ;;  %v6644_v25 = vadd.f32 1.0, %v8530_v33  ;;  %8543 = vtanh.f32 %v6337_v57  ;;  %v6338_v59 = vmul.f32 0.5, %v5832_v36  ;;  %v5726_v45 = vpop.f32.mrf.mxu0 }
 0x4a9   : > { %v6540_v41 = vadd.f32 1.0, %v8532_v13  ;;  %v6344_v14 = vmul.f32 0.5, %v5836_v32  ;;  %v5838_v4 = vadd.f32 %v5837_v16, %v5725_v7  ;;  %v5727_v22 = vadd.f32 %v5726_v45, %v11695_v18  ;;  %v5839_v60 = vpop.f32.mrf.mxu1 }
 0x4aa   : > { %v8534_v28 = vpop.eup %8533  ;;  %6867 = vst [vmem:[%s11635_s19 + $0x348] sm:$0xff] %v6755_v54  ;;  %v6756_v10 = vmul.f32 0.5, %v6644_v25  ;;  %8545 = vtanh.f32 %v6338_v59  ;;  %v5728_v8 = vpop.f32.mrf.mxu0 }
 0x4ab   : > { %v6652_v1 = vmul.f32 0.5, %v6540_v41  ;;  %v6541_v51 = vadd.f32 1.0, %v8534_v28  ;;  %8547 = vtanh.f32 %v6344_v14  ;;  %v6345_v56 = vmul.f32 0.5, %v5838_v4  ;;  %v5841_v58 = vpop.f32.mrf.mxu1 }
 0x4ac   : > { %6868 = vst [vmem:[%s11635_s19 + $0x350] sm:$0xff] %v6756_v10  ;;  %v5840_v12 = vadd.f32 %v5839_v60, %v5727_v22  ;;  %v5729_v6 = vadd.f32 %v5728_v8, %v11701_v46  ;;  %v5732_v49 = vpop.f32.mrf.mxu0 }
 0x4ad   : > { %v8536_v40 = vpop.eup %8535  ;;  %6764 = vst [vmem:[%s11635_s19 + $0x10] sm:$0xff] %v6652_v1  ;;  %v6653_v26 = vmul.f32 0.5, %v6541_v51  ;;  %8549 = vtanh.f32 %v6345_v56  ;;  %v5733_v43 = vadd.f32 %v5732_v49, %v11695_v18  ;;  %v5845_v19 = vpop.f32.mrf.mxu1 }
 0x4ae   : > { %v6547_v29 = vadd.f32 1.0, %v8536_v40  ;;  %v6351_v30 = vmul.f32 0.5, %v5840_v12  ;;  %v5842_v50 = vadd.f32 %v5841_v58, %v5729_v6  ;;  %v5734_v63 = vpop.f32.mrf.mxu0 }
 0x4af   : > { %v8538_v39 = vpop.eup %8537  ;;  %6765 = vst [vmem:[%s11635_s19 + $0x18] sm:$0xff] %v6653_v26  ;;  %v5846_v27 = vadd.f32 %v5845_v19, %v5733_v43  ;;  %v5735_v21 = vadd.f32 %v5734_v63, %v11701_v46  ;;  %v5847_v34 = vpop.f32.mrf.mxu1 }
 0x4b0   : > { %v8540_v20 = vpop.eup %8539  ;;  %v6659_v44 = vmul.f32 0.5, %v6547_v29  ;;  %v6548_v0 = vadd.f32 1.0, %v8538_v39  ;;  %8551 = vtanh.f32 %v6351_v30  ;;  %v6352_v5 = vmul.f32 0.5, %v5842_v50  ;;  %v5736_v15 = vpop.f32.mrf.mxu0 }
 0x4b1   : > { %v6554_v3 = vadd.f32 1.0, %v8540_v20  ;;  %v6358_v53 = vmul.f32 0.5, %v5846_v27  ;;  %v5848_v61 = vadd.f32 %v5847_v34, %v5735_v21  ;;  %v5737_v24 = vadd.f32 %v5736_v15, %v11695_v18  ;;  %v5849_v9 = vpop.f32.mrf.mxu1 }
 0x4b2   : > { %v8542_v23 = vpop.eup %8541  ;;  %6771 = vst [vmem:[%s11635_s19 + $0x48] sm:$0xff] %v6659_v44  ;;  %v6660_v17 = vmul.f32 0.5, %v6548_v0  ;;  %8553 = vtanh.f32 %v6352_v5  ;;  %v5738_v48 = vpop.f32.mrf.mxu0 }
 0x4b3   : > { %v6666_v38 = vmul.f32 0.5, %v6554_v3  ;;  %v6555_v52 = vadd.f32 1.0, %v8542_v23  ;;  %8555 = vtanh.f32 %v6358_v53  ;;  %v6359_v37 = vmul.f32 0.5, %v5848_v61  ;;  %v5851_v47 = vpop.f32.mrf.mxu1 }
 0x4b4   : > { %6772 = vst [vmem:[%s11635_s19 + $0x50] sm:$0xff] %v6660_v17  ;;  %v5850_v55 = vadd.f32 %v5849_v9, %v5737_v24  ;;  %v5739_v2 = vadd.f32 %v5738_v48, %v11701_v46  ;;  %v5742_v42 = vpop.f32.mrf.mxu0 }
 0x4b5   : > { %v8544_v11 = vpop.eup %8543  ;;  %6778 = vst [vmem:[%s11635_s19 + $0x80] sm:$0xff] %v6666_v38  ;;  %v6667_v35 = vmul.f32 0.5, %v6555_v52  ;;  %8557 = vtanh.f32 %v6359_v37  ;;  %v5743_v31 = vadd.f32 %v5742_v42, %v11695_v18  ;;  %v5855_v57 = vpop.f32.mrf.mxu1 }
 0x4b6   : > { %v6561_v36 = vadd.f32 1.0, %v8544_v11  ;;  %v6365_v62 = vmul.f32 0.5, %v5850_v55  ;;  %v5852_v33 = vadd.f32 %v5851_v47, %v5739_v2  ;;  %v5744_v32 = vpop.f32.mrf.mxu0 }
 0x4b7   : > { %v8546_v7 = vpop.eup %8545  ;;  %6779 = vst [vmem:[%s11635_s19 + $0x88] sm:$0xff] %v6667_v35  ;;  %v5856_v16 = vadd.f32 %v5855_v57, %v5743_v31  ;;  %v5745_v13 = vadd.f32 %v5744_v32, %v11701_v46  ;;  %v5857_v54 = vpop.f32.mrf.mxu1 }
 0x4b8   : > { %v8548_v25 = vpop.eup %8547  ;;  %v6673_v59 = vmul.f32 0.5, %v6561_v36  ;;  %v6562_v45 = vadd.f32 1.0, %v8546_v7  ;;  %8559 = vtanh.f32 %v6365_v62  ;;  %v6366_v41 = vmul.f32 0.5, %v5852_v33  ;;  %v5746_v14 = vpop.f32.mrf.mxu0 }
 0x4b9   : > { %v6568_v4 = vadd.f32 1.0, %v8548_v25  ;;  %v6372_v22 = vmul.f32 0.5, %v5856_v16  ;;  %v5858_v60 = vadd.f32 %v5857_v54, %v5745_v13  ;;  %v5747_v28 = vadd.f32 %v5746_v14, %v11695_v18  ;;  %v5859_v10 = vpop.f32.mrf.mxu1 }
 0x4ba   : > { %v8550_v8 = vpop.eup %8549  ;;  %6785 = vst [vmem:[%s11635_s19 + $0xb8] sm:$0xff] %v6673_v59  ;;  %v6674_v1 = vmul.f32 0.5, %v6562_v45  ;;  %8561 = vtanh.f32 %v6366_v41  ;;  %v5748_v51 = vpop.f32.mrf.mxu0 }
 0x4bb   : > { %v6680_v56 = vmul.f32 0.5, %v6568_v4  ;;  %v6569_v58 = vadd.f32 1.0, %v8550_v8  ;;  %8563 = vtanh.f32 %v6372_v22  ;;  %v6373_v12 = vmul.f32 0.5, %v5858_v60  ;;  %v5861_v6 = vpop.f32.mrf.mxu1 }
 0x4bc   : > { %6786 = vst [vmem:[%s11635_s19 + $0xc0] sm:$0xff] %v6674_v1  ;;  %v5860_v49 = vadd.f32 %v5859_v10, %v5747_v28  ;;  %v5749_v40 = vadd.f32 %v5748_v51, %v11701_v46  ;;  %v5752_v26 = vpop.f32.mrf.mxu0 }
 0x4bd   : > { %v8552_v43 = vpop.eup %8551  ;;  %6792 = vst [vmem:[%s11635_s19 + $0xf0] sm:$0xff] %v6680_v56  ;;  %v6681_v19 = vmul.f32 0.5, %v6569_v58  ;;  %8565 = vtanh.f32 %v6373_v12  ;;  %v5753_v29 = vadd.f32 %v5752_v26, %v11695_v18  ;;  %v5865_v30 = vpop.f32.mrf.mxu1 }
 0x4be   : > { %v6575_v50 = vadd.f32 1.0, %v8552_v43  ;;  %v6379_v63 = vmul.f32 0.5, %v5860_v49  ;;  %v5862_v39 = vadd.f32 %v5861_v6, %v5749_v40  ;;  %v5754_v27 = vpop.f32.mrf.mxu0 }
 0x4bf   : > { %v8554_v21 = vpop.eup %8553  ;;  %6793 = vst [vmem:[%s11635_s19 + $0xf8] sm:$0xff] %v6681_v19  ;;  %v5866_v34 = vadd.f32 %v5865_v30, %v5753_v29  ;;  %v5755_v20 = vadd.f32 %v5754_v27, %v11701_v46  ;;  %v5867_v44 = vpop.f32.mrf.mxu1 }
 0x4c0   : > { %v8556_v0 = vpop.eup %8555  ;;  %v6687_v5 = vmul.f32 0.5, %v6575_v50  ;;  %v6576_v15 = vadd.f32 1.0, %v8554_v21  ;;  %8567 = vtanh.f32 %v6379_v63  ;;  %v6380_v3 = vmul.f32 0.5, %v5862_v39  ;;  %v5756_v53 = vpop.f32.mrf.mxu0 }
 0x4c1   : > { %v6582_v61 = vadd.f32 1.0, %v8556_v0  ;;  %v6386_v24 = vmul.f32 0.5, %v5866_v34  ;;  %v5868_v9 = vadd.f32 %v5867_v44, %v5755_v20  ;;  %v5757_v23 = vadd.f32 %v5756_v53, %v11695_v18  ;;  %v5869_v17 = vpop.f32.mrf.mxu1  ;;  %v12044_v20 = vld [vmem:[#allocation13_spill] sm:$0xff] }
 0x4c2   : > { %v8558_v48 = vpop.eup %8557  ;;  %6799 = vst [vmem:[%s11635_s19 + $0x128] sm:$0xff] %v6687_v5  ;;  %v6688_v38 = vmul.f32 0.5, %v6576_v15  ;;  %8569 = vtanh.f32 %v6380_v3  ;;  %v5758_v52 = vpop.f32.mrf.mxu0  ;;  %v4273_v44 = vsub.s32 4, %v12044_v20  ;;  %v4277_v53 = vsub.s32 5, %v12044_v20 }
 0x4c3   : > { %v6694_v37 = vmul.f32 0.5, %v6582_v61  ;;  %v6583_v47 = vadd.f32 1.0, %v8558_v48  ;;  %8571 = vtanh.f32 %v6386_v24  ;;  %v6387_v55 = vmul.f32 0.5, %v5868_v9  ;;  %v5871_v2 = vpop.f32.mrf.mxu1 }
 0x4c4   : > { %6800 = vst [vmem:[%s11635_s19 + $0x130] sm:$0xff] %v6688_v38  ;;  %v5870_v42 = vadd.f32 %v5869_v17, %v5757_v23  ;;  %v5759_v11 = vadd.f32 %v5758_v52, %v11701_v46  ;;  %v5762_v35 = vpop.f32.mrf.mxu0 }
 0x4c5   : > { %v8560_v31 = vpop.eup %8559  ;;  %6806 = vst [vmem:[%s11635_s19 + $0x160] sm:$0xff] %v6694_v37  ;;  %v6695_v57 = vmul.f32 0.5, %v6583_v47  ;;  %8573 = vtanh.f32 %v6387_v55  ;;  %v5763_v36 = vadd.f32 %v5762_v35, %v11695_v18  ;;  %v5875_v62 = vpop.f32.mrf.mxu1 }
 0x4c6   : > { %v6589_v33 = vadd.f32 1.0, %v8560_v31  ;;  %v6393_v32 = vmul.f32 0.5, %v5870_v42  ;;  %v5872_v7 = vadd.f32 %v5871_v2, %v5759_v11  ;;  %v5764_v16 = vpop.f32.mrf.mxu0  ;;  %v11772_v11 = vld [vmem:[%s11970_s9] sm:$0x7f] }
 0x4c7   : > { %v8562_v13 = vpop.eup %8561  ;;  %6807 = vst [vmem:[%s11635_s19 + $0x168] sm:$0xff] %v6695_v57  ;;  %v5876_v54 = vadd.f32 %v5875_v62, %v5763_v36  ;;  %v5765_v25 = vadd.f32 %v5764_v16, %v11701_v46  ;;  %v5877_v59 = vpop.f32.mrf.mxu1  ;;  %v11775_v35 = vrot.slane %v11772_v11, %v4273_v44 }
 0x4c8   : > { %v8564_v45 = vpop.eup %8563  ;;  %v6701_v41 = vmul.f32 0.5, %v6589_v33  ;;  %v6590_v14 = vadd.f32 1.0, %v8562_v13  ;;  %8575 = vtanh.f32 %v6393_v32  ;;  %v6394_v4 = vmul.f32 0.5, %v5872_v7  ;;  %v5766_v22 = vpop.f32.mrf.mxu0 }
 0x4c9   : > { %v6596_v60 = vadd.f32 1.0, %v8564_v45  ;;  %v6400_v28 = vmul.f32 0.5, %v5876_v54  ;;  %v5878_v10 = vadd.f32 %v5877_v59, %v5765_v25  ;;  %v5767_v8 = vadd.f32 %v5766_v22, %v11695_v18  ;;  %v5879_v1 = vpop.f32.mrf.mxu1 }
 0x4ca   : > { %v8566_v51 = vpop.eup %8565  ;;  %6813 = vst [vmem:[%s11635_s19 + $0x198] sm:$0xff] %v6701_v41  ;;  %v6702_v56 = vmul.f32 0.5, %v6590_v14  ;;  %8577 = vtanh.f32 %v6394_v4  ;;  %v5768_v58 = vpop.f32.mrf.mxu0  ;;  %v11781_v13 = vrot.slane %v11772_v11, %v4277_v53 }
 0x4cb   : > { %v6708_v12 = vmul.f32 0.5, %v6596_v60  ;;  %v6597_v6 = vadd.f32 1.0, %v8566_v51  ;;  %8579 = vtanh.f32 %v6400_v28  ;;  %v6401_v49 = vmul.f32 0.5, %v5878_v10  ;;  %v5881_v40 = vpop.f32.mrf.mxu1 }
 0x4cc   : > { %6814 = vst [vmem:[%s11635_s19 + $0x1a0] sm:$0xff] %v6702_v56  ;;  %v5880_v26 = vadd.f32 %v5879_v1, %v5767_v8  ;;  %v5769_v43 = vadd.f32 %v5768_v58, %v11701_v46  ;;  %v5772_v19 = vpop.f32.mrf.mxu0 }
 0x4cd   : > { %v8568_v29 = vpop.eup %8567  ;;  %6820 = vst [vmem:[%s11635_s19 + $0x1d0] sm:$0xff] %v6708_v12  ;;  %v6709_v30 = vmul.f32 0.5, %v6597_v6  ;;  %8581 = vtanh.f32 %v6401_v49  ;;  %v5773_v50 = vadd.f32 %v5772_v19, %v11695_v18  ;;  %v5885_v63 = vpop.f32.mrf.mxu1 }
 0x4ce   : > { %v6603_v39 = vadd.f32 1.0, %v8568_v29  ;;  %v6407_v27 = vmul.f32 0.5, %v5880_v26  ;;  %v5882_v21 = vadd.f32 %v5881_v40, %v5769_v43  ;;  %v5774_v34 = vpop.f32.mrf.mxu0 }
 0x4cf   : > { %v8570_v0 = vpop.eup %8569  ;;  %6821 = vst [vmem:[%s11635_s19 + $0x1d8] sm:$0xff] %v6709_v30  ;;  %v5886_v5 = vadd.f32 %v5885_v63, %v5773_v50  ;;  %v5775_v15 = vadd.f32 %v5774_v34, %v11701_v46  ;;  %v5887_v3 = vpop.f32.mrf.mxu1 }
 0x4d0   : > { %v8572_v61 = vpop.eup %8571  ;;  %v6715_v24 = vmul.f32 0.5, %v6603_v39  ;;  %v6604_v9 = vadd.f32 1.0, %v8570_v0  ;;  %8583 = vtanh.f32 %v6407_v27  ;;  %v6408_v23 = vmul.f32 0.5, %v5882_v21  ;;  %v5776_v17 = vpop.f32.mrf.mxu0 }
 0x4d1   : > { %v6610_v48 = vadd.f32 1.0, %v8572_v61  ;;  %v6414_v38 = vmul.f32 0.5, %v5886_v5  ;;  %v5888_v52 = vadd.f32 %v5887_v3, %v5775_v15  ;;  %v5777_v37 = vadd.f32 %v5776_v17, %v11695_v18  ;;  %v5889_v47 = vpop.f32.mrf.mxu1 }
 0x4d2   : > { %v8574_v55 = vpop.eup %8573  ;;  %6827 = vst [vmem:[%s11635_s19 + $0x208] sm:$0xff] %v6715_v24  ;;  %v6716_v2 = vmul.f32 0.5, %v6604_v9  ;;  %8585 = vtanh.f32 %v6408_v23  ;;  %v5778_v42 = vpop.f32.mrf.mxu0 }
 0x4d3   : > { %v6722_v31 = vmul.f32 0.5, %v6610_v48  ;;  %v6611_v57 = vadd.f32 1.0, %v8574_v55  ;;  %8587 = vtanh.f32 %v6414_v38  ;;  %v6415_v36 = vmul.f32 0.5, %v5888_v52  ;;  %v5891_v18 = vpop.f32.mrf.mxu1 }
 0x4d4   : > { %6828 = vst [vmem:[%s11635_s19 + $0x210] sm:$0xff] %v6716_v2  ;;  %v5890_v62 = vadd.f32 %v5889_v47, %v5777_v37  ;;  %v5779_v33 = vadd.f32 %v5778_v42, %v11701_v46 }
 0x4d5   : > { %v8576_v32 = vpop.eup %8575  ;;  %6834 = vst [vmem:[%s11635_s19 + $0x240] sm:$0xff] %v6722_v31  ;;  %v6723_v7 = vmul.f32 0.5, %v6611_v57  ;;  %8589 = vtanh.f32 %v6415_v36  ;;  %v5928_v16 = vpop.f32.mrf.mxu0 }
 0x4d6   : > { %v6617_v54 = vadd.f32 1.0, %v8576_v32  ;;  %v6421_v25 = vmul.f32 0.5, %v5890_v62  ;;  %v5892_v59 = vadd.f32 %v5891_v18, %v5779_v33  ;;  %v5929_v45 = vadd.f32 %v5928_v16, %v11775_v35  ;;  %v6041_v41 = vpop.f32.mrf.mxu1 }
 0x4d7   : > { %v8578_v14 = vpop.eup %8577  ;;  %6835 = vst [vmem:[%s11635_s19 + $0x248] sm:$0xff] %v6723_v7  ;;  %v5930_v4 = vpop.f32.mrf.mxu0 }
 0x4d8   : > { %v8580_v22 = vpop.eup %8579  ;;  %v6729_v46 = vmul.f32 0.5, %v6617_v54  ;;  %v6618_v60 = vadd.f32 1.0, %v8578_v14  ;;  %8591 = vtanh.f32 %v6421_v25  ;;  %v6422_v28 = vmul.f32 0.5, %v5892_v59  ;;  %v6043_v10 = vpop.f32.mrf.mxu1 }
 0x4d9   : > { %v6624_v8 = vadd.f32 1.0, %v8580_v22  ;;  %v6042_v1 = vadd.f32 %v6041_v41, %v5929_v45  ;;  %v5931_v51 = vadd.f32 %v5930_v4, %v11781_v13  ;;  %v5932_v56 = vpop.f32.mrf.mxu0 }
 0x4da   : > { %v8582_v58 = vpop.eup %8581  ;;  %6841 = vst [vmem:[%s11635_s19 + $0x278] sm:$0xff] %v6729_v46  ;;  %v6730_v12 = vmul.f32 0.5, %v6618_v60  ;;  %8593 = vtanh.f32 %v6422_v28  ;;  %v5933_v6 = vadd.f32 %v5932_v56, %v11775_v35  ;;  %v6045_v49 = vpop.f32.mrf.mxu1 }
 0x4db   : > { %v6736_v40 = vmul.f32 0.5, %v6624_v8  ;;  %v6625_v26 = vadd.f32 1.0, %v8582_v58  ;;  %v6318_v43 = vmul.f32 0.5, %v6042_v1  ;;  %v6044_v19 = vadd.f32 %v6043_v10, %v5931_v51  ;;  %v5934_v29 = vpop.f32.mrf.mxu0 }
 0x4dc   : > { %6842 = vst [vmem:[%s11635_s19 + $0x280] sm:$0xff] %v6730_v12  ;;  %v6046_v30 = vadd.f32 %v6045_v49, %v5933_v6  ;;  %v5935_v50 = vadd.f32 %v5934_v29, %v11781_v13  ;;  %v6047_v63 = vpop.f32.mrf.mxu1 }
 0x4dd   : > { %v8584_v39 = vpop.eup %8583  ;;  %6848 = vst [vmem:[%s11635_s19 + $0x2b0] sm:$0xff] %v6736_v40  ;;  %v6737_v27 = vmul.f32 0.5, %v6625_v26  ;;  %8595 = vtanh.f32 %v6318_v43  ;;  %v6319_v21 = vmul.f32 0.5, %v6044_v19  ;;  %v5938_v34 = vpop.f32.mrf.mxu0 }
 0x4de   : > { %v6631_v44 = vadd.f32 1.0, %v8584_v39  ;;  %v6325_v0 = vmul.f32 0.5, %v6046_v30  ;;  %v6048_v5 = vadd.f32 %v6047_v63, %v5935_v50  ;;  %v5939_v15 = vadd.f32 %v5938_v34, %v11775_v35  ;;  %v6051_v3 = vpop.f32.mrf.mxu1 }
 0x4df   : > { %v8586_v53 = vpop.eup %8585  ;;  %6849 = vst [vmem:[%s11635_s19 + $0x2b8] sm:$0xff] %v6737_v27  ;;  %8597 = vtanh.f32 %v6319_v21  ;;  %v5940_v61 = vpop.f32.mrf.mxu0 }
 0x4e0   : > { %v8588_v24 = vpop.eup %8587  ;;  %v6743_v9 = vmul.f32 0.5, %v6631_v44  ;;  %v6632_v23 = vadd.f32 1.0, %v8586_v53  ;;  %8599 = vtanh.f32 %v6325_v0  ;;  %v6326_v17 = vmul.f32 0.5, %v6048_v5  ;;  %v6053_v48 = vpop.f32.mrf.mxu1 }
 0x4e1   : > { %v6638_v38 = vadd.f32 1.0, %v8588_v24  ;;  %v6052_v52 = vadd.f32 %v6051_v3, %v5939_v15  ;;  %v5941_v37 = vadd.f32 %v5940_v61, %v11781_v13  ;;  %v5942_v47 = vpop.f32.mrf.mxu0 }
 0x4e2   : > { %v8590_v55 = vpop.eup %8589  ;;  %6855 = vst [vmem:[%s11635_s19 + $0x2e8] sm:$0xff] %v6743_v9  ;;  %v6744_v2 = vmul.f32 0.5, %v6632_v23  ;;  %8601 = vtanh.f32 %v6326_v17  ;;  %v5943_v42 = vadd.f32 %v5942_v47, %v11775_v35  ;;  %v6055_v31 = vpop.f32.mrf.mxu1 }
 0x4e3   : > { %v6750_v57 = vmul.f32 0.5, %v6638_v38  ;;  %v6639_v36 = vadd.f32 1.0, %v8590_v55  ;;  %v6332_v18 = vmul.f32 0.5, %v6052_v52  ;;  %v6054_v62 = vadd.f32 %v6053_v48, %v5941_v37  ;;  %v5944_v33 = vpop.f32.mrf.mxu0 }
 0x4e4   : > { %6856 = vst [vmem:[%s11635_s19 + $0x2f0] sm:$0xff] %v6744_v2  ;;  %v6056_v32 = vadd.f32 %v6055_v31, %v5943_v42  ;;  %v5945_v7 = vadd.f32 %v5944_v33, %v11781_v13  ;;  %v6057_v16 = vpop.f32.mrf.mxu1 }
 0x4e5   : > { %v8592_v54 = vpop.eup %8591  ;;  %6862 = vst [vmem:[%s11635_s19 + $0x320] sm:$0xff] %v6750_v57  ;;  %v6751_v25 = vmul.f32 0.5, %v6639_v36  ;;  %8603 = vtanh.f32 %v6332_v18  ;;  %v6333_v59 = vmul.f32 0.5, %v6054_v62  ;;  %v5948_v45 = vpop.f32.mrf.mxu0 }
 0x4e6   : > { %v6645_v41 = vadd.f32 1.0, %v8592_v54  ;;  %v6339_v14 = vmul.f32 0.5, %v6056_v32  ;;  %v6058_v4 = vadd.f32 %v6057_v16, %v5945_v7  ;;  %v5949_v22 = vadd.f32 %v5948_v45, %v11775_v35  ;;  %v6061_v46 = vpop.f32.mrf.mxu1 }
 0x4e7   : > { %v8594_v60 = vpop.eup %8593  ;;  %6863 = vst [vmem:[%s11635_s19 + $0x328] sm:$0xff] %v6751_v25  ;;  %8605 = vtanh.f32 %v6333_v59  ;;  %v5950_v28 = vpop.f32.mrf.mxu0 }
 0x4e8   : > { %v6757_v10 = vmul.f32 0.5, %v6645_v41  ;;  %v6646_v8 = vadd.f32 1.0, %v8594_v60  ;;  %8607 = vtanh.f32 %v6339_v14  ;;  %v6340_v1 = vmul.f32 0.5, %v6058_v4  ;;  %v6063_v51 = vpop.f32.mrf.mxu1 }
 0x4e9   : > { %v6062_v56 = vadd.f32 %v6061_v46, %v5949_v22  ;;  %v5951_v58 = vadd.f32 %v5950_v28, %v11781_v13  ;;  %v5952_v12 = vpop.f32.mrf.mxu0 }
 0x4ea   : > { %v8596_v6 = vpop.eup %8595  ;;  %6869 = vst [vmem:[%s11635_s19 + $0x358] sm:$0xff] %v6757_v10  ;;  %v6758_v49 = vmul.f32 0.5, %v6646_v8  ;;  %8609 = vtanh.f32 %v6340_v1  ;;  %v5953_v40 = vadd.f32 %v5952_v12, %v11775_v35  ;;  %v6065_v26 = vpop.f32.mrf.mxu1 }
 0x4eb   : > { %v6542_v43 = vadd.f32 1.0, %v8596_v6  ;;  %v6346_v19 = vmul.f32 0.5, %v6062_v56  ;;  %v6064_v29 = vadd.f32 %v6063_v51, %v5951_v58  ;;  %v5954_v30 = vpop.f32.mrf.mxu0 }
 0x4ec   : > { %v8598_v50 = vpop.eup %8597  ;;  %6870 = vst [vmem:[%s11635_s19 + $0x360] sm:$0xff] %v6758_v49  ;;  %v6066_v63 = vadd.f32 %v6065_v26, %v5953_v40  ;;  %v5955_v39 = vadd.f32 %v5954_v30, %v11781_v13  ;;  %v6067_v27 = vpop.f32.mrf.mxu1 }
 0x4ed   : > { %v8600_v21 = vpop.eup %8599  ;;  %v6654_v34 = vmul.f32 0.5, %v6542_v43  ;;  %v6543_v44 = vadd.f32 1.0, %v8598_v50  ;;  %8611 = vtanh.f32 %v6346_v19  ;;  %v6347_v0 = vmul.f32 0.5, %v6064_v29  ;;  %v5958_v5 = vpop.f32.mrf.mxu0 }
 0x4ee   : > { %v6549_v15 = vadd.f32 1.0, %v8600_v21  ;;  %v6353_v3 = vmul.f32 0.5, %v6066_v63  ;;  %v6068_v53 = vadd.f32 %v6067_v27, %v5955_v39  ;;  %v5959_v61 = vadd.f32 %v5958_v5, %v11775_v35  ;;  %v6071_v24 = vpop.f32.mrf.mxu1 }
 0x4ef   : > { %v8602_v9 = vpop.eup %8601  ;;  %6766 = vst [vmem:[%s11635_s19 + $0x20] sm:$0xff] %v6654_v34  ;;  %v6655_v23 = vmul.f32 0.5, %v6543_v44  ;;  %8613 = vtanh.f32 %v6347_v0  ;;  %v5960_v17 = vpop.f32.mrf.mxu0 }
 0x4f0   : > { %v6661_v48 = vmul.f32 0.5, %v6549_v15  ;;  %v6550_v38 = vadd.f32 1.0, %v8602_v9  ;;  %8615 = vtanh.f32 %v6353_v3  ;;  %v6354_v52 = vmul.f32 0.5, %v6068_v53  ;;  %v6073_v37 = vpop.f32.mrf.mxu1 }
 0x4f1   : > { %6767 = vst [vmem:[%s11635_s19 + $0x28] sm:$0xff] %v6655_v23  ;;  %v6072_v47 = vadd.f32 %v6071_v24, %v5959_v61  ;;  %v5961_v55 = vadd.f32 %v5960_v17, %v11781_v13  ;;  %v5962_v2 = vpop.f32.mrf.mxu0 }
 0x4f2   : > { %8706 = shalt.err (!%p8703_p3)
}
 0x4f3   : > { %s8707_s12 = scalar_lea.hbm %s11812_s14, 4096  ;;  %s8711_s13 = scalar_lea.hbm %s11972_s11, 8192 }
 0x4f4   : > { %p8708_p4 = scmp.ne.s32.totalorder %s11812_s14, %s8707_s12  ;;  %p8712_p9 = scmp.lt.s32.totalorder %s11812_s14, %s11972_s11 }
 0x4f5   : > { %p8713_p10 = scmp.lt.s32.totalorder %s8711_s13, %s8707_s12 }
 0x4f6   : > { %p8709_p7 = pnand %p8708_p4, %p8857_p5 }
 0x4f7   : > { %p8714_p11 = por %p8713_p10, %p8712_p9 }
 0x4f8   : > { %p8710_p8 = pneg %p8709_p7 }
 0x4fa   : > { %p8715_p12 = pnand %p8714_p11, %p8710_p8 }
 0x4fc   : > { %8718 = shalt.err (!%p8715_p12)
}
 0x4fd   : > { %s8757_s15 = smov 256   ;;  %s8758_s29 = smov 16   ;;  %v8604_v42 = vpop.eup %8603  ;;  %6773 = vst [vmem:[%s11635_s19 + $0x58] sm:$0xff] %v6661_v48  ;;  %v6662_v31 = vmul.f32 0.5, %v6550_v38  ;;  %8617 = vtanh.f32 %v6354_v52  ;;  %v5963_v57 = vadd.f32 %v5962_v2, %v11775_v35  ;;  %v6075_v36 = vpop.f32.mrf.mxu1  ;;  %v6360_v62 = vmul.f32 0.5, %v6072_v47 }
 0x4fe   : > { %7673 = dma.vmem_to_hbm [thread:$0]  (%p8857_p5), %s11815_s25, 4096, %s11812_s14, %s11821_s16, %s8757_s15, %s8757_s15, %s8758_s29   ;;  %v6556_v18 = vadd.f32 1.0, %v8604_v42  ;;  %v6074_v33 = vadd.f32 %v6073_v37, %v5961_v55  ;;  %v5964_v32 = vpop.f32.mrf.mxu0  ;;  %v8606_v7 = vpop.eup %8605 }
 0x4ff   : > { %6774 = vst [vmem:[%s11635_s19 + $0x60] sm:$0xff] %v6662_v31  ;;  %v6076_v16 = vadd.f32 %v6075_v36, %v5963_v57  ;;  %v5965_v54 = vadd.f32 %v5964_v32, %v11781_v13  ;;  %v6077_v25 = vpop.f32.mrf.mxu1  ;;  %v8608_v59 = vpop.eup %8607  ;;  %v6557_v41 = vadd.f32 1.0, %v8606_v7  ;;  %8619 = vtanh.f32 %v6360_v62 }
 0x500   : > { %v6668_v45 = vmul.f32 0.5, %v6556_v18  ;;  %v6361_v14 = vmul.f32 0.5, %v6074_v33  ;;  %v5968_v4 = vpop.f32.mrf.mxu0  ;;  %v6563_v22 = vadd.f32 1.0, %v8608_v59  ;;  %v8610_v8 = vpop.eup %8609 }
 0x501   : > { %v6367_v46 = vmul.f32 0.5, %v6076_v16  ;;  %v6078_v60 = vadd.f32 %v6077_v25, %v5965_v54  ;;  %v5969_v28 = vadd.f32 %v5968_v4, %v11775_v35  ;;  %v6081_v10 = vpop.f32.mrf.mxu1  ;;  %v6669_v1 = vmul.f32 0.5, %v6557_v41  ;;  %v8612_v43 = vpop.eup %8611 }
 0x502   : > { %6780 = vst [vmem:[%s11635_s19 + $0x90] sm:$0xff] %v6668_v45  ;;  %8621 = vtanh.f32 %v6361_v14  ;;  %v5970_v51 = vpop.f32.mrf.mxu0  ;;  %v6675_v56 = vmul.f32 0.5, %v6563_v22  ;;  %v6564_v58 = vadd.f32 1.0, %v8610_v8  ;;  %v6570_v50 = vadd.f32 1.0, %v8612_v43  ;;  %v8614_v21 = vpop.eup %8613 }
 0x503   : > { %8623 = vtanh.f32 %v6367_v46  ;;  %v6368_v12 = vmul.f32 0.5, %v6078_v60  ;;  %v6083_v6 = vpop.f32.mrf.mxu1  ;;  %6781 = vst [vmem:[%s11635_s19 + $0x98] sm:$0xff] %v6669_v1  ;;  %v6082_v49 = vadd.f32 %v6081_v10, %v5969_v28  ;;  %v5971_v40 = vadd.f32 %v5970_v51, %v11781_v13  ;;  %v8616_v5 = vpop.eup %8615 }
 0x504   : > { %v5972_v26 = vpop.f32.mrf.mxu0  ;;  %6787 = vst [vmem:[%s11635_s19 + $0xc8] sm:$0xff] %v6675_v56  ;;  %v6676_v19 = vmul.f32 0.5, %v6564_v58  ;;  %v6682_v15 = vmul.f32 0.5, %v6570_v50  ;;  %v6571_v3 = vadd.f32 1.0, %v8614_v21  ;;  %v6577_v24 = vadd.f32 1.0, %v8616_v5 }
 0x505   : > { %8625 = vtanh.f32 %v6368_v12  ;;  %v5973_v29 = vadd.f32 %v5972_v26, %v11775_v35  ;;  %v6085_v30 = vpop.f32.mrf.mxu1  ;;  %v6374_v63 = vmul.f32 0.5, %v6082_v49  ;;  %v6084_v39 = vadd.f32 %v6083_v6, %v5971_v40 }
 0x506   : > { %v5974_v27 = vpop.f32.mrf.mxu0  ;;  %6788 = vst [vmem:[%s11635_s19 + $0xd0] sm:$0xff] %v6676_v19  ;;  %6794 = vst [vmem:[%s11635_s19 + $0x100] sm:$0xff] %v6682_v15  ;;  %v6683_v52 = vmul.f32 0.5, %v6571_v3  ;;  %v6689_v47 = vmul.f32 0.5, %v6577_v24 }
 0x507   : > { %v6086_v34 = vadd.f32 %v6085_v30, %v5973_v29  ;;  %v5975_v44 = vadd.f32 %v5974_v27, %v11781_v13  ;;  %v6087_v0 = vpop.f32.mrf.mxu1  ;;  %8627 = vtanh.f32 %v6374_v63  ;;  %v6375_v53 = vmul.f32 0.5, %v6084_v39 }
 0x508   : > { %v5978_v61 = vpop.f32.mrf.mxu0  ;;  %6795 = vst [vmem:[%s11635_s19 + $0x108] sm:$0xff] %v6683_v52  ;;  %6801 = vst [vmem:[%s11635_s19 + $0x138] sm:$0xff] %v6689_v47 }
 0x509   : > { %v6381_v9 = vmul.f32 0.5, %v6086_v34  ;;  %v6088_v23 = vadd.f32 %v6087_v0, %v5975_v44  ;;  %v5979_v17 = vadd.f32 %v5978_v61, %v11775_v35  ;;  %v6091_v48 = vpop.f32.mrf.mxu1  ;;  %8629 = vtanh.f32 %v6375_v53 }
 0x50a   : > { %v8618_v38 = vpop.eup %8617  ;;  %v5980_v37 = vpop.f32.mrf.mxu0 }
 0x50b   : > { %v6578_v55 = vadd.f32 1.0, %v8618_v38  ;;  %8631 = vtanh.f32 %v6381_v9  ;;  %v6382_v2 = vmul.f32 0.5, %v6088_v23  ;;  %v6093_v42 = vpop.f32.mrf.mxu1  ;;  %v6092_v31 = vadd.f32 %v6091_v48, %v5979_v17 }
 0x50c   : > { %v5981_v57 = vadd.f32 %v5980_v37, %v11781_v13  ;;  %v5982_v36 = vpop.f32.mrf.mxu0  ;;  %v8620_v18 = vpop.eup %8619 }
 0x50d   : > { %v6690_v62 = vmul.f32 0.5, %v6578_v55  ;;  %8633 = vtanh.f32 %v6382_v2  ;;  %v5983_v33 = vadd.f32 %v5982_v36, %v11775_v35  ;;  %v6095_v32 = vpop.f32.mrf.mxu1  ;;  %v6584_v7 = vadd.f32 1.0, %v8620_v18 }
 0x50e   : > { %v6388_v16 = vmul.f32 0.5, %v6092_v31  ;;  %v6094_v54 = vadd.f32 %v6093_v42, %v5981_v57  ;;  %v5984_v25 = vpop.f32.mrf.mxu0 }
 0x50f   : > { %v8622_v59 = vpop.eup %8621  ;;  %6802 = vst [vmem:[%s11635_s19 + $0x140] sm:$0xff] %v6690_v62  ;;  %v6096_v45 = vadd.f32 %v6095_v32, %v5983_v33  ;;  %v5985_v41 = vadd.f32 %v5984_v25, %v11781_v13  ;;  %v6097_v14 = vpop.f32.mrf.mxu1  ;;  %v6696_v22 = vmul.f32 0.5, %v6584_v7 }
 0x510   : > { %v8624_v4 = vpop.eup %8623  ;;  %v6585_v46 = vadd.f32 1.0, %v8622_v59  ;;  %8635 = vtanh.f32 %v6388_v16  ;;  %v6389_v60 = vmul.f32 0.5, %v6094_v54  ;;  %v5988_v28 = vpop.f32.mrf.mxu0 }
 0x511   : > { %v6591_v10 = vadd.f32 1.0, %v8624_v4  ;;  %v6395_v8 = vmul.f32 0.5, %v6096_v45  ;;  %v6098_v1 = vadd.f32 %v6097_v14, %v5985_v41  ;;  %v5989_v51 = vadd.f32 %v5988_v28, %v11775_v35  ;;  %v6101_v56 = vpop.f32.mrf.mxu1  ;;  %6808 = vst [vmem:[%s11635_s19 + $0x170] sm:$0xff] %v6696_v22 }
 0x512   : > { %v8626_v58 = vpop.eup %8625  ;;  %v6697_v12 = vmul.f32 0.5, %v6585_v46  ;;  %8637 = vtanh.f32 %v6389_v60  ;;  %v5990_v6 = vpop.f32.mrf.mxu0  ;;  %v4281_v4 = vsub.s32 6, %v12044_v20 }
 0x513   : > { %v6703_v49 = vmul.f32 0.5, %v6591_v10  ;;  %v6592_v40 = vadd.f32 1.0, %v8626_v58  ;;  %8639 = vtanh.f32 %v6395_v8  ;;  %v6396_v26 = vmul.f32 0.5, %v6098_v1  ;;  %v6103_v43 = vpop.f32.mrf.mxu1 }
 0x514   : > { %6809 = vst [vmem:[%s11635_s19 + $0x178] sm:$0xff] %v6697_v12  ;;  %v6102_v19 = vadd.f32 %v6101_v56, %v5989_v51  ;;  %v5991_v29 = vadd.f32 %v5990_v6, %v11781_v13  ;;  %v5992_v30 = vpop.f32.mrf.mxu0  ;;  %v8628_v50 = vpop.eup %8627 }
 0x515   : > { %6815 = vst [vmem:[%s11635_s19 + $0x1a8] sm:$0xff] %v6703_v49  ;;  %v6704_v63 = vmul.f32 0.5, %v6592_v40  ;;  %8641 = vtanh.f32 %v6396_v26  ;;  %v5993_v39 = vadd.f32 %v5992_v30, %v11775_v35  ;;  %v6105_v27 = vpop.f32.mrf.mxu1  ;;  %v6598_v21 = vadd.f32 1.0, %v8628_v50 }
 0x516   : > { %v6402_v34 = vmul.f32 0.5, %v6102_v19  ;;  %v6104_v44 = vadd.f32 %v6103_v43, %v5991_v29  ;;  %v5994_v0 = vpop.f32.mrf.mxu0  ;;  %v8630_v5 = vpop.eup %8629  ;;  %v11883_v40 = vrot.slane %v11772_v11, %v4281_v4 }
 0x517   : > { %6816 = vst [vmem:[%s11635_s19 + $0x1b0] sm:$0xff] %v6704_v63  ;;  %v6106_v15 = vadd.f32 %v6105_v27, %v5993_v39  ;;  %v5995_v3 = vadd.f32 %v5994_v0, %v11781_v13  ;;  %v6107_v53 = vpop.f32.mrf.mxu1  ;;  %v6710_v24 = vmul.f32 0.5, %v6598_v21  ;;  %v6599_v9 = vadd.f32 1.0, %v8630_v5 }
 0x518   : > { %v8632_v61 = vpop.eup %8631  ;;  %8643 = vtanh.f32 %v6402_v34  ;;  %v6403_v23 = vmul.f32 0.5, %v6104_v44  ;;  %v5998_v17 = vpop.f32.mrf.mxu0 }
 0x519   : > { %v6605_v48 = vadd.f32 1.0, %v8632_v61  ;;  %v6409_v38 = vmul.f32 0.5, %v6106_v15  ;;  %v6108_v52 = vadd.f32 %v6107_v53, %v5995_v3  ;;  %v5999_v37 = vadd.f32 %v5998_v17, %v11775_v35  ;;  %v6111_v47 = vpop.f32.mrf.mxu1  ;;  %6822 = vst [vmem:[%s11635_s19 + $0x1e0] sm:$0xff] %v6710_v24 }
 0x51a   : > { %v8634_v55 = vpop.eup %8633  ;;  %v6711_v2 = vmul.f32 0.5, %v6599_v9  ;;  %8645 = vtanh.f32 %v6403_v23  ;;  %v6000_v42 = vpop.f32.mrf.mxu0 }
 0x51b   : > { %v6717_v31 = vmul.f32 0.5, %v6605_v48  ;;  %v6606_v57 = vadd.f32 1.0, %v8634_v55  ;;  %8647 = vtanh.f32 %v6409_v38  ;;  %v6410_v36 = vmul.f32 0.5, %v6108_v52  ;;  %v6113_v18 = vpop.f32.mrf.mxu1 }
 0x51c   : > { %6823 = vst [vmem:[%s11635_s19 + $0x1e8] sm:$0xff] %v6711_v2  ;;  %v6112_v62 = vadd.f32 %v6111_v47, %v5999_v37  ;;  %v6001_v33 = vadd.f32 %v6000_v42, %v11781_v13  ;;  %v6002_v32 = vpop.f32.mrf.mxu0 }
 0x51d   : > { %v8636_v7 = vpop.eup %8635  ;;  %6829 = vst [vmem:[%s11635_s19 + $0x218] sm:$0xff] %v6717_v31  ;;  %v6718_v16 = vmul.f32 0.5, %v6606_v57  ;;  %8649 = vtanh.f32 %v6410_v36  ;;  %v6003_v54 = vadd.f32 %v6002_v32, %v11775_v35  ;;  %v6115_v25 = vpop.f32.mrf.mxu1 }
 0x51e   : > { %v6612_v59 = vadd.f32 1.0, %v8636_v7  ;;  %v6416_v45 = vmul.f32 0.5, %v6112_v62  ;;  %v6114_v41 = vadd.f32 %v6113_v18, %v6001_v33  ;;  %v6004_v14 = vpop.f32.mrf.mxu0 }
 0x51f   : > { %v8638_v22 = vpop.eup %8637  ;;  %6830 = vst [vmem:[%s11635_s19 + $0x220] sm:$0xff] %v6718_v16  ;;  %v6116_v46 = vadd.f32 %v6115_v25, %v6003_v54  ;;  %v6005_v60 = vadd.f32 %v6004_v14, %v11781_v13  ;;  %v6117_v28 = vpop.f32.mrf.mxu1 }
 0x520   : > { %v8640_v10 = vpop.eup %8639  ;;  %v6724_v8 = vmul.f32 0.5, %v6612_v59  ;;  %v6613_v1 = vadd.f32 1.0, %v8638_v22  ;;  %8651 = vtanh.f32 %v6416_v45  ;;  %v6417_v51 = vmul.f32 0.5, %v6114_v41  ;;  %v7560_v35 = vpop.f32.mrf.mxu0 }
 0x521   : > { %v6619_v56 = vadd.f32 1.0, %v8640_v10  ;;  %v6423_v58 = vmul.f32 0.5, %v6116_v46  ;;  %v6118_v12 = vadd.f32 %v6117_v28, %v6005_v60  ;;  %v7624_v6 = vpop.f32.mrf.mxu1 }
 0x522   : > { %v8642_v20 = vpop.eup %8641  ;;  %6836 = vst [vmem:[%s11635_s19 + $0x250] sm:$0xff] %v6724_v8  ;;  %v6725_v49 = vmul.f32 0.5, %v6613_v1  ;;  %8653 = vtanh.f32 %v6417_v51  ;;  %v7561_v13 = vpop.f32.mrf.mxu0 }
 0x523   : > { %v6731_v26 = vmul.f32 0.5, %v6619_v56  ;;  %v6620_v43 = vadd.f32 1.0, %v8642_v20  ;;  %8655 = vtanh.f32 %v6423_v58  ;;  %v6424_v19 = vmul.f32 0.5, %v6118_v12  ;;  %v7625_v29 = vpop.f32.mrf.mxu1 }
 0x524   : > { %6837 = vst [vmem:[%s11635_s19 + $0x258] sm:$0xff] %v6725_v49  ;;  %v7562_v30 = vadd.f32 %v7561_v13, %v7560_v35  ;;  %v7563_v50 = vpop.f32.mrf.mxu0  ;;  %v7626_v11 = vadd.f32 %v7625_v29, %v7624_v6 }
 0x525   : > { %v8644_v63 = vpop.eup %8643  ;;  %6843 = vst [vmem:[%s11635_s19 + $0x288] sm:$0xff] %v6731_v26  ;;  %v6732_v39 = vmul.f32 0.5, %v6620_v43  ;;  %8657 = vtanh.f32 %v6424_v19  ;;  %v7627_v27 = vpop.f32.mrf.mxu1 }
 0x526   : > { %v6626_v21 = vadd.f32 1.0, %v8644_v63  ;;  %v6155_v34 = vadd.f32 %v7562_v30, %v11883_v40  ;;  %v7564_v44 = vpop.f32.mrf.mxu0 }
 0x527   : > { %v8646_v0 = vpop.eup %8645  ;;  %6844 = vst [vmem:[%s11635_s19 + $0x290] sm:$0xff] %v6732_v39  ;;  %v7565_v5 = vadd.f32 %v7564_v44, %v7563_v50  ;;  %v7628_v15 = vpop.f32.mrf.mxu1 }
 0x528   : > { %v8648_v3 = vpop.eup %8647  ;;  %v6738_v53 = vmul.f32 0.5, %v6626_v21  ;;  %v6627_v61 = vadd.f32 1.0, %v8646_v0  ;;  %v6252_v24 = vadd.f32 %v7626_v11, %v6155_v34  ;;  %v7566_v9 = vpop.f32.mrf.mxu0  ;;  %v7629_v48 = vadd.f32 %v7628_v15, %v7627_v27 }
 0x529   : > { %v6633_v23 = vadd.f32 1.0, %v8648_v3  ;;  %v6158_v17 = vadd.f32 %v7565_v5, %v11883_v40  ;;  %v7630_v38 = vpop.f32.mrf.mxu1 }
 0x52a   : > { %v8650_v52 = vpop.eup %8649  ;;  %6850 = vst [vmem:[%s11635_s19 + $0x2c0] sm:$0xff] %v6738_v53  ;;  %v6739_v37 = vmul.f32 0.5, %v6627_v61  ;;  %v6320_v47 = vmul.f32 0.5, %v6252_v24  ;;  %v7567_v55 = vpop.f32.mrf.mxu0 }
 0x52b   : > { %v6745_v2 = vmul.f32 0.5, %v6633_v23  ;;  %v6634_v42 = vadd.f32 1.0, %v8650_v52  ;;  %v6255_v31 = vadd.f32 %v7629_v48, %v6158_v17  ;;  %v7568_v57 = vadd.f32 %v7567_v55, %v7566_v9  ;;  %v7631_v36 = vpop.f32.mrf.mxu1 }
 0x52c   : > { %6851 = vst [vmem:[%s11635_s19 + $0x2c8] sm:$0xff] %v6739_v37  ;;  %8659 = vtanh.f32 %v6320_v47  ;;  %v7569_v18 = vpop.f32.mrf.mxu0  ;;  %v7632_v16 = vadd.f32 %v7631_v36, %v7630_v38 }
 0x52d   : > { %v8652_v62 = vpop.eup %8651  ;;  %6857 = vst [vmem:[%s11635_s19 + $0x2f8] sm:$0xff] %v6745_v2  ;;  %v6746_v33 = vmul.f32 0.5, %v6634_v42  ;;  %v6327_v32 = vmul.f32 0.5, %v6255_v31  ;;  %v6163_v7 = vadd.f32 %v7568_v57, %v11883_v40  ;;  %v7633_v54 = vpop.f32.mrf.mxu1 }
 0x52e   : > { %v6640_v25 = vadd.f32 1.0, %v8652_v62  ;;  %v7570_v59 = vpop.f32.mrf.mxu0 }
 0x52f   : > { %v8654_v45 = vpop.eup %8653  ;;  %6858 = vst [vmem:[%s11635_s19 + $0x300] sm:$0xff] %v6746_v33  ;;  %8661 = vtanh.f32 %v6327_v32  ;;  %v6260_v41 = vadd.f32 %v7632_v16, %v6163_v7  ;;  %v7571_v14 = vadd.f32 %v7570_v59, %v7569_v18  ;;  %v7634_v4 = vpop.f32.mrf.mxu1 }
 0x530   : > { %v8656_v22 = vpop.eup %8655  ;;  %v6752_v46 = vmul.f32 0.5, %v6640_v25  ;;  %v6641_v60 = vadd.f32 1.0, %v8654_v45  ;;  %v7572_v28 = vpop.f32.mrf.mxu0  ;;  %v7635_v51 = vadd.f32 %v7634_v4, %v7633_v54 }
 0x531   : > { %v6647_v10 = vadd.f32 1.0, %v8656_v22  ;;  %v6334_v8 = vmul.f32 0.5, %v6260_v41  ;;  %v6166_v1 = vadd.f32 %v7571_v14, %v11883_v40  ;;  %v7636_v35 = vpop.f32.mrf.mxu1 }
 0x532   : > { %v8658_v56 = vpop.eup %8657  ;;  %6864 = vst [vmem:[%s11635_s19 + $0x330] sm:$0xff] %v6752_v46  ;;  %v6753_v58 = vmul.f32 0.5, %v6641_v60  ;;  %v7573_v12 = vpop.f32.mrf.mxu0 }
 0x533   : > { %v6759_v6 = vmul.f32 0.5, %v6647_v10  ;;  %v6648_v20 = vadd.f32 1.0, %v8658_v56  ;;  %8663 = vtanh.f32 %v6334_v8  ;;  %v6263_v49 = vadd.f32 %v7635_v51, %v6166_v1  ;;  %v7637_v13 = vpop.f32.mrf.mxu1 }
 0x534   : > { %6865 = vst [vmem:[%s11635_s19 + $0x338] sm:$0xff] %v6753_v58  ;;  %v7574_v26 = vadd.f32 %v7573_v12, %v7572_v28  ;;  %v7575_v43 = vpop.f32.mrf.mxu0  ;;  %v7638_v63 = vadd.f32 %v7637_v13, %v7636_v35 }
 0x535   : > { %6871 = vst [vmem:[%s11635_s19 + $0x368] sm:$0xff] %v6759_v6  ;;  %v6760_v19 = vmul.f32 0.5, %v6648_v20  ;;  %v6341_v29 = vmul.f32 0.5, %v6263_v49  ;;  %v7639_v30 = vpop.f32.mrf.mxu1 }
 0x536   : > { %v6171_v50 = vadd.f32 %v7574_v26, %v11883_v40  ;;  %v7576_v39 = vpop.f32.mrf.mxu0 }
 0x537   : > { %6872 = vst [vmem:[%s11635_s19 + $0x370] sm:$0xff] %v6760_v19  ;;  %8665 = vtanh.f32 %v6341_v29  ;;  %v7577_v27 = vadd.f32 %v7576_v39, %v7575_v43  ;;  %v7640_v21 = vpop.f32.mrf.mxu1 }
 0x538   : > { %v6268_v34 = vadd.f32 %v7638_v63, %v6171_v50  ;;  %v7578_v11 = vpop.f32.mrf.mxu0  ;;  %v7641_v5 = vadd.f32 %v7640_v21, %v7639_v30 }
 0x539   : > { %v8660_v44 = vpop.eup %8659  ;;  %v6174_v0 = vadd.f32 %v7577_v27, %v11883_v40  ;;  %v7642_v15 = vpop.f32.mrf.mxu1 }
 0x53a   : > { %v6544_v3 = vadd.f32 1.0, %v8660_v44  ;;  %v6348_v53 = vmul.f32 0.5, %v6268_v34  ;;  %v7579_v61 = vpop.f32.mrf.mxu0 }
 0x53b   : > { %v6271_v24 = vadd.f32 %v7641_v5, %v6174_v0  ;;  %v7580_v9 = vadd.f32 %v7579_v61, %v7578_v11  ;;  %v7643_v23 = vpop.f32.mrf.mxu1 }
 0x53c   : > { %v8662_v17 = vpop.eup %8661  ;;  %v6656_v48 = vmul.f32 0.5, %v6544_v3  ;;  %8667 = vtanh.f32 %v6348_v53  ;;  %v7581_v38 = vpop.f32.mrf.mxu0  ;;  %v7644_v55 = vadd.f32 %v7643_v23, %v7642_v15 }
 0x53d   : > { %v6551_v52 = vadd.f32 1.0, %v8662_v17  ;;  %v6355_v37 = vmul.f32 0.5, %v6271_v24  ;;  %v6179_v47 = vadd.f32 %v7580_v9, %v11883_v40  ;;  %v7645_v2 = vpop.f32.mrf.mxu1 }
 0x53e   : > { %6768 = vst.msk [vmem:[%s11635_s19 + $0x30] sm:$0xff] %vm1796_vm0, %v6656_v48  ;;  %v7582_v42 = vpop.f32.mrf.mxu0 }
 0x53f   : > { %v6663_v31 = vmul.f32 0.5, %v6551_v52  ;;  %8669 = vtanh.f32 %v6355_v37  ;;  %v6276_v57 = vadd.f32 %v7644_v55, %v6179_v47  ;;  %v7583_v36 = vadd.f32 %v7582_v42, %v7581_v38  ;;  %v7646_v18 = vpop.f32.mrf.mxu1 }
 0x540   : > { %v8664_v62 = vpop.eup %8663  ;;  %v7584_v33 = vpop.f32.mrf.mxu0  ;;  %v7647_v54 = vadd.f32 %v7646_v18, %v7645_v2 }
 0x541   : > { %6775 = vst.msk [vmem:[%s11635_s19 + $0x68] sm:$0xff] %vm1796_vm0, %v6663_v31  ;;  %v6558_v32 = vadd.f32 1.0, %v8664_v62  ;;  %v6362_v7 = vmul.f32 0.5, %v6276_v57  ;;  %v6182_v16 = vadd.f32 %v7583_v36, %v11883_v40  ;;  %v7648_v25 = vpop.f32.mrf.mxu1 }
 0x542   : > { %v7585_v59 = vpop.f32.mrf.mxu0 }
 0x543   : > { %v6670_v45 = vmul.f32 0.5, %v6558_v32  ;;  %8671 = vtanh.f32 %v6362_v7  ;;  %v6279_v41 = vadd.f32 %v7647_v54, %v6182_v16  ;;  %v7586_v14 = vadd.f32 %v7585_v59, %v7584_v33  ;;  %v7649_v4 = vpop.f32.mrf.mxu1 }
 0x544   : > { %v8666_v22 = vpop.eup %8665  ;;  %v7587_v46 = vpop.f32.mrf.mxu0  ;;  %v7650_v8 = vadd.f32 %v7649_v4, %v7648_v25 }
 0x545   : > { %6782 = vst.msk [vmem:[%s11635_s19 + $0xa0] sm:$0xff] %vm1796_vm0, %v6670_v45  ;;  %v6565_v60 = vadd.f32 1.0, %v8666_v22  ;;  %v6369_v28 = vmul.f32 0.5, %v6279_v41  ;;  %v6187_v10 = vadd.f32 %v7586_v14, %v11883_v40  ;;  %v7651_v1 = vpop.f32.mrf.mxu1 }
 0x546   : > { %v7588_v51 = vpop.f32.mrf.mxu0 }
 0x547   : > { %v6677_v35 = vmul.f32 0.5, %v6565_v60  ;;  %8673 = vtanh.f32 %v6369_v28  ;;  %v6284_v56 = vadd.f32 %v7650_v8, %v6187_v10  ;;  %v7589_v58 = vadd.f32 %v7588_v51, %v7587_v46  ;;  %v7652_v12 = vpop.f32.mrf.mxu1 }
 0x548   : > { %v7590_v6 = vpop.f32.mrf.mxu0  ;;  %v7653_v26 = vadd.f32 %v7652_v12, %v7651_v1 }
 0x549   : > { %v8668_v20 = vpop.eup %8667  ;;  %6789 = vst.msk [vmem:[%s11635_s19 + $0xd8] sm:$0xff] %vm1796_vm0, %v6677_v35  ;;  %v6376_v49 = vmul.f32 0.5, %v6284_v56  ;;  %v6190_v13 = vadd.f32 %v7589_v58, %v11883_v40  ;;  %v7654_v43 = vpop.f32.mrf.mxu1 }
 0x54a   : > { %v6572_v19 = vadd.f32 1.0, %v8668_v20  ;;  %v7591_v29 = vpop.f32.mrf.mxu0 }
 0x54b   : > { %8675 = vtanh.f32 %v6376_v49  ;;  %v6287_v30 = vadd.f32 %v7653_v26, %v6190_v13  ;;  %v7592_v50 = vadd.f32 %v7591_v29, %v7590_v6  ;;  %v7655_v63 = vpop.f32.mrf.mxu1 }
 0x54c   : > { %v8670_v39 = vpop.eup %8669  ;;  %v6684_v27 = vmul.f32 0.5, %v6572_v19  ;;  %v7593_v21 = vpop.f32.mrf.mxu0  ;;  %v7656_v0 = vadd.f32 %v7655_v63, %v7654_v43 }
 0x54d   : > { %v6579_v34 = vadd.f32 1.0, %v8670_v39  ;;  %v6383_v11 = vmul.f32 0.5, %v6287_v30  ;;  %v6195_v44 = vadd.f32 %v7592_v50, %v11883_v40  ;;  %v7657_v5 = vpop.f32.mrf.mxu1 }
 0x54e   : > { %6796 = vst.msk [vmem:[%s11635_s19 + $0x110] sm:$0xff] %vm1796_vm0, %v6684_v27  ;;  %v7594_v15 = vpop.f32.mrf.mxu0 }
 0x54f   : > { %v6691_v3 = vmul.f32 0.5, %v6579_v34  ;;  %8677 = vtanh.f32 %v6383_v11  ;;  %v6292_v53 = vadd.f32 %v7656_v0, %v6195_v44  ;;  %v7595_v61 = vadd.f32 %v7594_v15, %v7593_v21  ;;  %v7658_v24 = vpop.f32.mrf.mxu1 }
 0x550   : > { %v8672_v9 = vpop.eup %8671  ;;  %v7596_v23 = vpop.f32.mrf.mxu0  ;;  %v7659_v52 = vadd.f32 %v7658_v24, %v7657_v5 }
 0x551   : > { %6803 = vst.msk [vmem:[%s11635_s19 + $0x148] sm:$0xff] %vm1796_vm0, %v6691_v3  ;;  %v6586_v17 = vadd.f32 1.0, %v8672_v9  ;;  %v6390_v48 = vmul.f32 0.5, %v6292_v53  ;;  %v6198_v38 = vadd.f32 %v7595_v61, %v11883_v40  ;;  %v7660_v37 = vpop.f32.mrf.mxu1 }
 0x552   : > { %v7597_v47 = vpop.f32.mrf.mxu0 }
 0x553   : > { %v6698_v55 = vmul.f32 0.5, %v6586_v17  ;;  %8679 = vtanh.f32 %v6390_v48  ;;  %v6295_v2 = vadd.f32 %v7659_v52, %v6198_v38  ;;  %v7598_v42 = vadd.f32 %v7597_v47, %v7596_v23  ;;  %v7661_v31 = vpop.f32.mrf.mxu1 }
 0x554   : > { %v8674_v57 = vpop.eup %8673  ;;  %v7599_v36 = vpop.f32.mrf.mxu0  ;;  %v7662_v32 = vadd.f32 %v7661_v31, %v7660_v37 }
 0x555   : > { %6810 = vst.msk [vmem:[%s11635_s19 + $0x180] sm:$0xff] %vm1796_vm0, %v6698_v55  ;;  %v6593_v18 = vadd.f32 1.0, %v8674_v57  ;;  %v6397_v62 = vmul.f32 0.5, %v6295_v2  ;;  %v6203_v33 = vadd.f32 %v7598_v42, %v11883_v40  ;;  %v7663_v7 = vpop.f32.mrf.mxu1 }
 0x556   : > { %v7600_v16 = vpop.f32.mrf.mxu0 }
 0x557   : > { %v6705_v54 = vmul.f32 0.5, %v6593_v18  ;;  %8681 = vtanh.f32 %v6397_v62  ;;  %v6300_v25 = vadd.f32 %v7662_v32, %v6203_v33  ;;  %v7601_v59 = vadd.f32 %v7600_v16, %v7599_v36  ;;  %v7664_v45 = vpop.f32.mrf.mxu1 }
 0x558   : > { %v8676_v41 = vpop.eup %8675  ;;  %v7602_v14 = vpop.f32.mrf.mxu0  ;;  %v7665_v60 = vadd.f32 %v7664_v45, %v7663_v7 }
 0x559   : > { %6817 = vst.msk [vmem:[%s11635_s19 + $0x1b8] sm:$0xff] %vm1796_vm0, %v6705_v54  ;;  %v6600_v4 = vadd.f32 1.0, %v8676_v41  ;;  %v6404_v22 = vmul.f32 0.5, %v6300_v25  ;;  %v6206_v46 = vadd.f32 %v7601_v59, %v11883_v40  ;;  %v7666_v28 = vpop.f32.mrf.mxu1 }
 0x55a   : > { %v7603_v10 = vpop.f32.mrf.mxu0 }
 0x55b   : > { %v6712_v8 = vmul.f32 0.5, %v6600_v4  ;;  %8683 = vtanh.f32 %v6404_v22  ;;  %v6303_v1 = vadd.f32 %v7665_v60, %v6206_v46  ;;  %v7604_v51 = vadd.f32 %v7603_v10, %v7602_v14  ;;  %v7667_v35 = vpop.f32.mrf.mxu1 }
 0x55c   : > { %v8678_v56 = vpop.eup %8677  ;;  %v7605_v58 = vpop.f32.mrf.mxu0  ;;  %v7668_v49 = vadd.f32 %v7667_v35, %v7666_v28 }
 0x55d   : > { %6824 = vst.msk [vmem:[%s11635_s19 + $0x1f0] sm:$0xff] %vm1796_vm0, %v6712_v8  ;;  %v6607_v12 = vadd.f32 1.0, %v8678_v56  ;;  %v6411_v6 = vmul.f32 0.5, %v6303_v1  ;;  %v6211_v20 = vadd.f32 %v7604_v51, %v11883_v40  ;;  %v7669_v13 = vpop.f32.mrf.mxu1 }
 0x55e   : > { %v7606_v26 = vpop.f32.mrf.mxu0 }
 0x55f   : > { %v6719_v43 = vmul.f32 0.5, %v6607_v12  ;;  %8685 = vtanh.f32 %v6411_v6  ;;  %v6308_v19 = vadd.f32 %v7668_v49, %v6211_v20  ;;  %v7607_v29 = vadd.f32 %v7606_v26, %v7605_v58  ;;  %v7670_v30 = vpop.f32.mrf.mxu1 }
 0x560   : > { %v8680_v50 = vpop.eup %8679  ;;  %v7671_v21 = vadd.f32 %v7670_v30, %v7669_v13 }
 0x561   : > { %6831 = vst.msk [vmem:[%s11635_s19 + $0x228] sm:$0xff] %vm1796_vm0, %v6719_v43  ;;  %v6614_v63 = vadd.f32 1.0, %v8680_v50  ;;  %v6418_v39 = vmul.f32 0.5, %v6308_v19  ;;  %v6214_v27 = vadd.f32 %v7607_v29, %v11883_v40 }
 0x563   : > { %v6726_v34 = vmul.f32 0.5, %v6614_v63  ;;  %8687 = vtanh.f32 %v6418_v39  ;;  %v6311_v11 = vadd.f32 %v7671_v21, %v6214_v27 }
 0x564   : > { %v8682_v44 = vpop.eup %8681 }
 0x565   : > { %6838 = vst.msk [vmem:[%s11635_s19 + $0x260] sm:$0xff] %vm1796_vm0, %v6726_v34  ;;  %v6621_v0 = vadd.f32 1.0, %v8682_v44  ;;  %v6425_v5 = vmul.f32 0.5, %v6311_v11 }
 0x567   : > { %v6733_v15 = vmul.f32 0.5, %v6621_v0  ;;  %8689 = vtanh.f32 %v6425_v5 }
 0x568   : > { %v8684_v3 = vpop.eup %8683 }
 0x569   : > { %6845 = vst.msk [vmem:[%s11635_s19 + $0x298] sm:$0xff] %vm1796_vm0, %v6733_v15  ;;  %v6628_v53 = vadd.f32 1.0, %v8684_v3 }
 0x56b   : > { %v6740_v40 = vmul.f32 0.5, %v6628_v53 }
 0x56c   : > { %v8686_v61 = vpop.eup %8685 }
 0x56d   : > { %6852 = vst.msk [vmem:[%s11635_s19 + $0x2d0] sm:$0xff] %vm1796_vm0, %v6740_v40  ;;  %v6635_v24 = vadd.f32 1.0, %v8686_v61 }
 0x56f   : > { %v6747_v9 = vmul.f32 0.5, %v6635_v24 }
 0x570   : > { %v8688_v23 = vpop.eup %8687 }
 0x571   : > { %6859 = vst.msk [vmem:[%s11635_s19 + $0x308] sm:$0xff] %vm1796_vm0, %v6747_v9  ;;  %v6642_v17 = vadd.f32 1.0, %v8688_v23 }
 0x573   : > { %v6754_v48 = vmul.f32 0.5, %v6642_v17 }
 0x574   : > { %v8690_v38 = vpop.eup %8689 }
 0x575   : > { %6866 = vst.msk [vmem:[%s11635_s19 + $0x340] sm:$0xff] %vm1796_vm0, %v6754_v48  ;;  %v6649_v52 = vadd.f32 1.0, %v8690_v38 }
 0x577   : > { %v6761_v37 = vmul.f32 0.5, %v6649_v52 }
 0x579   : > { %6873 = vst.msk [vmem:[%s11635_s19 + $0x378] sm:$0xff] %vm1796_vm0, %v6761_v37 }
 0x57a PF: > { %p7679_p5 = scmp.ge.s32.totalorder %s8753_s20, 2  ;;  %s6923_s27 = sand.u32 1, %s8741_s17  }
 0x57b   : > { %s6924_s25 = scalar_lea.sflag [#allocation3], %s6923_s27 }
 0x57c   : > { %p7676_p13 = pnand %p7679_p5, %p8861_p6 }
 0x57e   : > { %p7677_p0 = pneg %p7676_p13 }
 0x580   : > { %8736 = dma.done.wait (%p7677_p0), %s6924_s25, 4096  }
 0x581   : > { %8738 = vsyncadd (%p7677_p0), %s6924_s25, 4294963200  ;;  %s12046_s14 = sld [smem:[#allocation5_spill]]  ;;  %p22_p1 = scmp.ge.s32.totalorder %s8844_s23, 4  }
 0x582   : > { %s12047_s19 = sld [smem:[#allocation6_spill]]  ;;  %s12048_s17 = smov %s8745_s18 }
 0x583   : > { %s12050_s20 = smov %s8844_s23  ;;  %24 = sbr.rel (!%p22_p1) target bundleno = 3 (0x3), region = 110 }
 0x587   : > { %s12049_s18 = smov %s12046_s14 }
 0x588   :  { %6929 = vsyncpa [#allocation3], 1 }
 0x589   :  { %6931 = vsyncpa [#allocation3 + $0x1], 1 }

</bundles_post_ra>
